<compile_context>
chip_gen: v7x
topology: tpu7x:2x2x1
jax: 0.10.0
libtpu: 0.0.40
codegen_flags: <defaults>
</compile_context>

<pallas_src>
import functools
import math

import jax
import jax.numpy as jnp
from jax.experimental import pallas as pl
from jax.experimental.pallas import tpu as pltpu

LANE = 128


def _round_up(x, m):
    return (x + m - 1) // m * m


def _choose_batch_tile(B, L, max_rows=1024, min_rows=256):
    """Pick TB dividing B: target >= min_rows rows per tile (amortize per-step
    overhead / feed the MXU), cap at max_rows rows (bound FFN transients),
    and require TB % 8 == 0 unless TB == B (sublane-aligned blocks)."""
    divs = [d for d in range(1, B + 1) if B % d == 0 and (d == B or d % 8 == 0)]
    fit = [d for d in divs if d * L <= max_rows] or [min(divs)]
    for d in sorted(fit):
        if d * L >= min_rows:
            return d
    return max(fit)


def _masked_layernorm(x, gamma, beta, feat_mask, d_valid, eps=1e-5):
    """LayerNorm over the first `d_valid` (unpadded) features; pad cols stay 0."""
    inv_d = 1.0 / d_valid
    mu = jnp.sum(x * feat_mask, axis=-1, keepdims=True) * inv_d
    diff = (x - mu) * feat_mask
    var = jnp.sum(diff * diff, axis=-1, keepdims=True) * inv_d
    return diff * jax.lax.rsqrt(var + eps) * gamma + beta


# --------------------------- fused encoder kernel ---------------------------
def fused_encoder_kernel(x_ref, poolw_ref,
                         wqkv_ref, bqkv_ref, wo_ref, bo_ref,
                         w1_ref, b1_ref, w2_ref, b2_ref,
                         g1_ref, be1_ref, g2_ref, be2_ref,
                         lw_ref, lb_ref,
                         o_ref,
                         *, TB, L, D, Dp, H, hd, hdp, Kp, n_layers):
    f32 = jnp.float32
    bf16 = jnp.bfloat16
    scale = 1.0 / math.sqrt(hd)

    feat_mask = (jax.lax.broadcasted_iota(jnp.int32, (1, Dp), 1) < D).astype(f32)

    # activation (residual stream) stays in f32 registers/VMEM for the whole body
    x = x_ref[...].reshape(TB * L, Dp).astype(f32)

    # statically unrolled layer loop; all layer weights are VMEM-resident
    for l in range(n_layers):
        xb = x.astype(bf16)

        # ---- multi-head self-attention (no key-padding mask, as in reference) ----
        qkv = jnp.dot(xb, wqkv_ref[l],
                      preferred_element_type=f32) + bqkv_ref[l]      # (TB*L, 3*Kp)

        heads = []
        for h in range(H):                       # tight 32-wide per-head slabs
            cq = 0 * Kp + h * hdp
            ck = 1 * Kp + h * hdp
            cv = 2 * Kp + h * hdp
            qh = qkv[:, cq:cq + hdp].reshape(TB, L, hdp).astype(bf16)
            kh = qkv[:, ck:ck + hdp].reshape(TB, L, hdp).astype(bf16)
            vh = qkv[:, cv:cv + hdp].reshape(TB, L, hdp).astype(bf16)
            s = jnp.einsum('bqd,bkd->bqk', qh, kh,
                           preferred_element_type=f32) * scale       # (TB, L, L)
            s = s - jnp.max(s, axis=-1, keepdims=True)
            e = jnp.exp(s)
            p = e * pl.reciprocal(jnp.sum(e, axis=-1, keepdims=True), approx=True)
            oh = jnp.einsum('bqk,bkd->bqd', p.astype(bf16), vh,
                            preferred_element_type=f32)              # (TB, L, hdp)
            heads.append(oh.reshape(TB * L, hdp))

        ctx = jnp.concatenate(heads, axis=-1)                        # (TB*L, Kp)
        attn = jnp.dot(ctx.astype(bf16), wo_ref[l],
                       preferred_element_type=f32) + bo_ref[l]       # single O-proj

        # residual + post-LayerNorm 1 (dropout = identity in eval mode)
        x1 = _masked_layernorm(x + attn, g1_ref[l], be1_ref[l], feat_mask, D)

        # ---- feed-forward: relu(x W1 + b1) W2 + b2 (h1 kept in bf16) ----
        h1 = jnp.maximum(
            jnp.dot(x1.astype(bf16), w1_ref[l], preferred_element_type=f32)
            + b1_ref[l], 0.0).astype(bf16)
        ff = jnp.dot(h1, w2_ref[l], preferred_element_type=f32) + b2_ref[l]

        # residual + post-LayerNorm 2
        x = _masked_layernorm(x1 + ff, g2_ref[l], be2_ref[l], feat_mask, D)

    # ---- masked mean-pool + linear + L2-normalize ----
    xe = x.reshape(TB, L, Dp)
    pooled = jnp.sum(xe * poolw_ref[...][:, :, None], axis=1)        # (TB, Dp)
    y = jnp.dot(pooled.astype(bf16), lw_ref[...],
                preferred_element_type=f32) + lb_ref[...]            # (TB, Ep)
    nrm = jnp.sqrt(jnp.sum(y * y, axis=-1, keepdims=True))
    o_ref[...] = y / jnp.maximum(nrm, 1e-12)                         # f.normalize


# ----------------------------- parameter packing -----------------------------
def init_params(key, vocab_size, word_dim, embed_size, num_heads, num_layers,
                dim_ff=2048):
    """PyTorch-layout parameters (weights are (out_features, in_features))."""
    assert word_dim % num_heads == 0

    def u(k, shape, a):
        return jax.random.uniform(k, shape, jnp.float32, -a, a)

    keys = jax.random.split(key, num_layers + 3)
    D = word_dim
    params = {"embed": u(keys[0], (vocab_size, D), 0.1)}   # uniform(-0.1, 0.1)
    layers = []
    for i in range(num_layers):
        lk = jax.random.split(keys[1 + i], 4)
        layers.append(dict(
            wqkv=u(lk[0], (3 * D, D), 1.0 / math.sqrt(D)),
            bqkv=jnp.zeros((3 * D,), jnp.float32),
            wo=u(lk[1], (D, D), 1.0 / math.sqrt(D)),
            bo=jnp.zeros((D,), jnp.float32),
            w1=u(lk[2], (dim_ff, D), 1.0 / math.sqrt(D)),
            b1=jnp.zeros((dim_ff,), jnp.float32),
            w2=u(lk[3], (D, dim_ff), 1.0 / math.sqrt(dim_ff)),
            b2=jnp.zeros((D,), jnp.float32),
            g1=jnp.ones((D,), jnp.float32), be1=jnp.zeros((D,), jnp.float32),
            g2=jnp.ones((D,), jnp.float32), be2=jnp.zeros((D,), jnp.float32),
        ))
    params["layers"] = layers
    params["linear_w"] = u(keys[-2], (embed_size, D), 1.0 / math.sqrt(D))
    params["linear_b"] = u(keys[-1], (embed_size,), 1.0 / math.sqrt(D))
    return params


def pack_params(params, num_heads):
    """Pre-transpose, zero-pad to 128 lanes, cast matmul weights to bf16,
    stack per-layer weights along a leading layer axis, tight head packing."""
    D = params["embed"].shape[1]
    H = num_heads
    hd = D // H
    Dp = _round_up(D, LANE)
    # smallest per-head slab so H*hdp is a multiple of 128 (lane-dense slabs)
    step = LANE // math.gcd(H, LANE)
    hdp = _round_up(hd, step)
    Kp = H * hdp
    E = params["linear_w"].shape[0]
    Ep = _round_up(E, LANE)
    F = params["layers"][0]["w1"].shape[0]

    def pad2(x, r, c):
        return jnp.pad(x, ((0, r - x.shape[0]), (0, c - x.shape[1])))

    def head_pad_out(wT):                # (D, D) -> (Dp, Kp): out dim head-padded
        w = wT.reshape(D, H, hd)
        w = jnp.pad(w, ((0, Dp - D), (0, 0), (0, hdp - hd)))
        return w.reshape(Dp, Kp)

    def head_pad_in(wT):                 # (D, D) -> (Kp, Dp): in dim head-padded
        w = wT.reshape(H, hd, D)
        w = jnp.pad(w, ((0, 0), (0, hdp - hd), (0, Dp - D)))
        return w.reshape(Kp, Dp)

    def head_pad_bias(b):                # (D,) -> (Kp,)
        b = b.reshape(H, hd)
        return jnp.pad(b, ((0, 0), (0, hdp - hd))).reshape(Kp)

    def tail_pad_vec(v):                 # (D,) -> (1, Dp)
        return jnp.pad(v.reshape(1, D), ((0, 0), (0, Dp - D)))

    acc = {k: [] for k in ("wqkv", "bqkv", "wo", "bo", "w1", "b1", "w2", "b2",
                           "g1", "be1", "g2", "be2")}
    for lp in params["layers"]:
        wq, wk, wv = jnp.split(lp["wqkv"], 3, axis=0)
        bq, bk, bv = jnp.split(lp["bqkv"], 3)
        acc["wqkv"].append(jnp.concatenate(
            [head_pad_out(wq.T), head_pad_out(wk.T), head_pad_out(wv.T)],
            axis=1).astype(jnp.bfloat16))                               # (Dp, 3Kp)
        acc["bqkv"].append(jnp.concatenate(
            [head_pad_bias(bq), head_pad_bias(bk), head_pad_bias(bv)]
        ).reshape(1, 3 * Kp))
        acc["wo"].append(head_pad_in(lp["wo"].T).astype(jnp.bfloat16))  # (Kp, Dp)
        acc["bo"].append(tail_pad_vec(lp["bo"]))
        acc["w1"].append(pad2(lp["w1"].T, Dp, F).astype(jnp.bfloat16))  # (Dp, F)
        acc["b1"].append(lp["b1"].reshape(1, F))
        acc["w2"].append(pad2(lp["w2"].T, F, Dp).astype(jnp.bfloat16))  # (F, Dp)
        acc["b2"].append(tail_pad_vec(lp["b2"]))
        acc["g1"].append(tail_pad_vec(lp["g1"]))
        acc["be1"].append(tail_pad_vec(lp["be1"]))
        acc["g2"].append(tail_pad_vec(lp["g2"]))
        acc["be2"].append(tail_pad_vec(lp["be2"]))

    packed = {k: jnp.stack(v) for k, v in acc.items()}
    # embedding table pre-padded to Dp and pre-cast to bf16 (halves input DMA)
    packed["embed"] = jnp.pad(params["embed"],
                              ((0, 0), (0, Dp - D))).astype(jnp.bfloat16)
    packed["lw"] = pad2(params["linear_w"].T, Dp, Ep).astype(jnp.bfloat16)  # (Dp, Ep)
    packed["lb"] = jnp.pad(params["linear_b"].reshape(1, E), ((0, 0), (0, Ep - E)))
    packed["dims"] = dict(D=D, Dp=Dp, H=H, hd=hd, hdp=hdp, Kp=Kp, F=F, E=E, Ep=Ep)
    return packed


# --------------------------------- wrapper ----------------------------------
def attention_textencoder_forward(packed, ids, lengths, *, batch_tile=None):
    dims = packed["dims"]
    D, Dp, H, hd, hdp, Kp = (dims["D"], dims["Dp"], dims["H"], dims["hd"],
                             dims["hdp"], dims["Kp"])
    F, E, Ep = dims["F"], dims["E"], dims["Ep"]
    B, L = ids.shape
    nl = packed["wqkv"].shape[0]

    TB = _choose_batch_tile(B, L) if batch_tile is None else batch_tile
    assert B % TB == 0
    nb = B // TB

    # (1) embedding gather (plain JAX glue); table is already padded bf16
    x = jnp.take(packed["embed"], ids, axis=0)                        # (B, L, Dp) bf16

    # token mask and 1/length folded into a single pooling-weight array
    lengths_f = lengths.astype(jnp.float32)
    pos = jnp.arange(L, dtype=jnp.int32)[None, :]
    mask = (pos < lengths.astype(jnp.int32)[:, None]).astype(jnp.float32)  # (B, L)
    pool_w = mask / lengths_f[:, None]                                 # (B, L)

    kernel = functools.partial(fused_encoder_kernel, TB=TB, L=L, D=D, Dp=Dp,
                               H=H, hd=hd, hdp=hdp, Kp=Kp, n_layers=nl)

    grid_spec = pltpu.PrefetchScalarGridSpec(
        num_scalar_prefetch=0,
        grid=(nb,),
        in_specs=[
            pl.BlockSpec((TB, L, Dp), lambda bt: (bt, 0, 0)),         # x (bf16)
            pl.BlockSpec((TB, L), lambda bt: (bt, 0)),                # pooling weights
            # stacked per-layer weights: constant index_map -> VMEM-resident,
            # fetched once for the whole grid (no re-DMA per batch tile)
            pl.BlockSpec((nl, Dp, 3 * Kp), lambda bt: (0, 0, 0)),     # wqkv
            pl.BlockSpec((nl, 1, 3 * Kp), lambda bt: (0, 0, 0)),      # bqkv
            pl.BlockSpec((nl, Kp, Dp), lambda bt: (0, 0, 0)),         # wo
            pl.BlockSpec((nl, 1, Dp), lambda bt: (0, 0, 0)),          # bo
            pl.BlockSpec((nl, Dp, F), lambda bt: (0, 0, 0)),          # w1
            pl.BlockSpec((nl, 1, F), lambda bt: (0, 0, 0)),           # b1
            pl.BlockSpec((nl, F, Dp), lambda bt: (0, 0, 0)),          # w2
            pl.BlockSpec((nl, 1, Dp), lambda bt: (0, 0, 0)),          # b2
            pl.BlockSpec((nl, 1, Dp), lambda bt: (0, 0, 0)),          # g1
            pl.BlockSpec((nl, 1, Dp), lambda bt: (0, 0, 0)),          # be1
            pl.BlockSpec((nl, 1, Dp), lambda bt: (0, 0, 0)),          # g2
            pl.BlockSpec((nl, 1, Dp), lambda bt: (0, 0, 0)),          # be2
            pl.BlockSpec((Dp, Ep), lambda bt: (0, 0)),                # linear_w
            pl.BlockSpec((1, Ep), lambda bt: (0, 0)),                 # linear_b
        ],
        out_specs=pl.BlockSpec((TB, Ep), lambda bt: (bt, 0)),
    )

    out_p = pl.pallas_call(
        kernel,
        out_shape=jax.ShapeDtypeStruct((B, Ep), jnp.float32),
        grid_spec=grid_spec,
        compiler_params=pltpu.CompilerParams(
            dimension_semantics=("parallel",),
            vmem_limit_bytes=64 * 1024 * 1024),
    )(x, pool_w,
      packed["wqkv"], packed["bqkv"], packed["wo"], packed["bo"],
      packed["w1"], packed["b1"], packed["w2"], packed["b2"],
      packed["g1"], packed["be1"], packed["g2"], packed["be2"],
      packed["lw"], packed["lb"])

    return out_p[:, :E]


if __name__ == "__main__":
    key = jax.random.PRNGKey(0)
    vocab_size, word_dim, embed_size = 100, 32, 32
    num_heads, num_layers = 4, 2
    B, L = 2, 8

    pkey, ikey = jax.random.split(key)
    params = init_params(pkey, vocab_size, word_dim, embed_size,
                         num_heads, num_layers)
    packed = pack_params(params, num_heads)
    ids = jax.random.randint(ikey, (B, L), 0, vocab_size, dtype=jnp.int32)
    lengths = jnp.array([8, 5], dtype=jnp.int32)   # valid token counts per sample

    out = attention_textencoder_forward(packed, ids, lengths)
    out = jax.block_until_ready(out)
    assert out.shape == (B, embed_size)
    assert bool(jnp.all(jnp.isfinite(out)))
    print("KERNEL_OK")
</pallas_src>

<mosaic_0001>
module attributes {stable_mosaic.version = 11 : i64} {
  func.func @fused_encoder_kernel(%arg0: i32, %arg1: memref<2x8x128xbf16, #tpu.memory_space<vmem>>, %arg2: memref<2x8xf32, #tpu.memory_space<vmem>>, %arg3: memref<2x128x384xbf16, #tpu.memory_space<vmem>>, %arg4: memref<2x1x384xf32, #tpu.memory_space<vmem>>, %arg5: memref<2x128x128xbf16, #tpu.memory_space<vmem>>, %arg6: memref<2x1x128xf32, #tpu.memory_space<vmem>>, %arg7: memref<2x128x2048xbf16, #tpu.memory_space<vmem>>, %arg8: memref<2x1x2048xf32, #tpu.memory_space<vmem>>, %arg9: memref<2x2048x128xbf16, #tpu.memory_space<vmem>>, %arg10: memref<2x1x128xf32, #tpu.memory_space<vmem>>, %arg11: memref<2x1x128xf32, #tpu.memory_space<vmem>>, %arg12: memref<2x1x128xf32, #tpu.memory_space<vmem>>, %arg13: memref<2x1x128xf32, #tpu.memory_space<vmem>>, %arg14: memref<2x1x128xf32, #tpu.memory_space<vmem>>, %arg15: memref<128x128xbf16, #tpu.memory_space<vmem>>, %arg16: memref<1x128xf32, #tpu.memory_space<vmem>>, %arg17: memref<2x128xf32, #tpu.memory_space<vmem>>) attributes {dimension_semantics = [#tpu.dimension_semantics<parallel>], iteration_bounds = array<i64: 1>, scalar_prefetch = 0 : i64, scratch_operands = 0 : i64, tpu.core_type = #tpu.core_type<tc>, window_params = [{transform_indices = @transform_0, window_bounds = array<i64: 2, 8, 128>}, {transform_indices = @transform_1, window_bounds = array<i64: 2, 8>}, {pipeline_mode = #tpu.pipeline_mode<synchronous>, transform_indices = @transform_2, window_bounds = array<i64: 2, 128, 384>}, {pipeline_mode = #tpu.pipeline_mode<synchronous>, transform_indices = @transform_3, window_bounds = array<i64: 2, 1, 384>}, {pipeline_mode = #tpu.pipeline_mode<synchronous>, transform_indices = @transform_4, window_bounds = array<i64: 2, 128, 128>}, {pipeline_mode = #tpu.pipeline_mode<synchronous>, transform_indices = @transform_5, window_bounds = array<i64: 2, 1, 128>}, {pipeline_mode = #tpu.pipeline_mode<synchronous>, transform_indices = @transform_6, window_bounds = array<i64: 2, 128, 2048>}, {pipeline_mode = #tpu.pipeline_mode<synchronous>, transform_indices = @transform_7, window_bounds = array<i64: 2, 1, 2048>}, {pipeline_mode = #tpu.pipeline_mode<synchronous>, transform_indices = @transform_8, window_bounds = array<i64: 2, 2048, 128>}, {pipeline_mode = #tpu.pipeline_mode<synchronous>, transform_indices = @transform_9, window_bounds = array<i64: 2, 1, 128>}, {pipeline_mode = #tpu.pipeline_mode<synchronous>, transform_indices = @transform_10, window_bounds = array<i64: 2, 1, 128>}, {pipeline_mode = #tpu.pipeline_mode<synchronous>, transform_indices = @transform_11, window_bounds = array<i64: 2, 1, 128>}, {pipeline_mode = #tpu.pipeline_mode<synchronous>, transform_indices = @transform_12, window_bounds = array<i64: 2, 1, 128>}, {pipeline_mode = #tpu.pipeline_mode<synchronous>, transform_indices = @transform_13, window_bounds = array<i64: 2, 1, 128>}, {pipeline_mode = #tpu.pipeline_mode<synchronous>, transform_indices = @transform_14, window_bounds = array<i64: 128, 128>}, {pipeline_mode = #tpu.pipeline_mode<synchronous>, transform_indices = @transform_15, window_bounds = array<i64: 1, 128>}, {transform_indices = @transform_16, window_bounds = array<i64: 2, 128>}]} {
    %0 = tpu.iota {dimensions = array<i32: 1>} : vector<1x128xi32>
    %c32_i32 = arith.constant 32 : i32
    %1 = vector.broadcast %c32_i32 : i32 to vector<1x128xi32>
    %2 = arith.cmpi slt, %0, %1 : vector<1x128xi32>
    %3 = arith.extui %2 : vector<1x128xi1> to vector<1x128xi32>
    %4 = arith.sitofp %3 : vector<1x128xi32> to vector<1x128xf32>
    %c0 = arith.constant 0 : index
    %c0_0 = arith.constant 0 : index
    %c0_1 = arith.constant 0 : index
    %5 = vector.load %arg1[%c0, %c0_0, %c0_1] : memref<2x8x128xbf16, #tpu.memory_space<vmem>>, vector<2x8x128xbf16>
    %6 = vector.shape_cast %5 : vector<2x8x128xbf16> to vector<16x128xbf16>
    %7 = arith.extf %6 : vector<16x128xbf16> to vector<16x128xf32>
    %8 = arith.truncf %7 : vector<16x128xf32> to vector<16x128xbf16>
    %c0_2 = arith.constant 0 : index
    %c0_3 = arith.constant 0 : index
    %c0_4 = arith.constant 0 : index
    %9 = vector.load %arg3[%c0_2, %c0_3, %c0_4] : memref<2x128x384xbf16, #tpu.memory_space<vmem>>, vector<1x128x384xbf16>
    %10 = vector.shape_cast %9 : vector<1x128x384xbf16> to vector<128x384xbf16>
    %cst = arith.constant dense<0.000000e+00> : vector<16x384xf32>
    %11 = tpu.matmul %8, %10, %cst {dimension_numbers = #tpu.dot_dimension_numbers<[1], [0], [0], [1], [0, 0, 1, 1], [], []>} : vector<16x128xbf16>, vector<128x384xbf16>, vector<16x384xf32> -> vector<16x384xf32>
    %c0_5 = arith.constant 0 : index
    %c0_6 = arith.constant 0 : index
    %c0_7 = arith.constant 0 : index
    %12 = vector.load %arg4[%c0_5, %c0_6, %c0_7] : memref<2x1x384xf32, #tpu.memory_space<vmem>>, vector<1x1x384xf32>
    %13 = vector.shape_cast %12 : vector<1x1x384xf32> to vector<1x384xf32>
    %14 = vector.broadcast %13 : vector<1x384xf32> to vector<16x384xf32>
    %15 = arith.addf %11, %14 : vector<16x384xf32>
    %16 = vector.extract_strided_slice %15 {offsets = [0, 0], sizes = [16, 32], strides = [1, 1]} : vector<16x384xf32> to vector<16x32xf32>
    %17 = vector.shape_cast %16 : vector<16x32xf32> to vector<2x8x32xf32>
    %18 = arith.truncf %17 : vector<2x8x32xf32> to vector<2x8x32xbf16>
    %19 = vector.extract_strided_slice %15 {offsets = [0, 128], sizes = [16, 32], strides = [1, 1]} : vector<16x384xf32> to vector<16x32xf32>
    %20 = vector.shape_cast %19 : vector<16x32xf32> to vector<2x8x32xf32>
    %21 = arith.truncf %20 : vector<2x8x32xf32> to vector<2x8x32xbf16>
    %22 = vector.extract_strided_slice %15 {offsets = [0, 256], sizes = [16, 32], strides = [1, 1]} : vector<16x384xf32> to vector<16x32xf32>
    %23 = vector.shape_cast %22 : vector<16x32xf32> to vector<2x8x32xf32>
    %24 = arith.truncf %23 : vector<2x8x32xf32> to vector<2x8x32xbf16>
    "tpu.trace_start"() <{level = 10 : i32, message = "bqd,bkd->bqk"}> : () -> ()
    %cst_8 = arith.constant dense<0.000000e+00> : vector<2x8x8xf32>
    %25 = tpu.matmul %18, %21, %cst_8 {dimension_numbers = #tpu.dot_dimension_numbers<[2], [2], [1], [1], [0, 0, 0, 1, 1, 1], [0], [0]>} : vector<2x8x32xbf16>, vector<2x8x32xbf16>, vector<2x8x8xf32> -> vector<2x8x8xf32>
    "tpu.trace_stop"() : () -> ()
    %cst_9 = arith.constant 0.353553385 : f32
    %26 = vector.broadcast %cst_9 : f32 to vector<2x8x8xf32>
    %27 = arith.mulf %25, %26 : vector<2x8x8xf32>
    %cst_10 = arith.constant dense<0xFF800000> : vector<2x8xf32>
    %28 = vector.multi_reduction <maximumf>, %27, %cst_10 [2] : vector<2x8x8xf32> to vector<2x8xf32>
    %29 = vector.shape_cast %28 : vector<2x8xf32> to vector<2x8x1xf32>
    %30 = vector.broadcast %29 : vector<2x8x1xf32> to vector<2x8x8xf32>
    %31 = arith.subf %27, %30 : vector<2x8x8xf32>
    %32 = math.exp %31 : vector<2x8x8xf32>
    %cst_11 = arith.constant dense<0.000000e+00> : vector<2x8xf32>
    %33 = vector.multi_reduction <add>, %32, %cst_11 [2] : vector<2x8x8xf32> to vector<2x8xf32>
    %34 = vector.shape_cast %33 : vector<2x8xf32> to vector<2x8x1xf32>
    %35 = tpu.reciprocal %34 {approx = true} : vector<2x8x1xf32> -> vector<2x8x1xf32>
    %36 = vector.broadcast %35 : vector<2x8x1xf32> to vector<2x8x8xf32>
    %37 = arith.mulf %32, %36 : vector<2x8x8xf32>
    %38 = arith.truncf %37 : vector<2x8x8xf32> to vector<2x8x8xbf16>
    "tpu.trace_start"() <{level = 10 : i32, message = "bqk,bkd->bqd"}> : () -> ()
    %cst_12 = arith.constant dense<0.000000e+00> : vector<2x8x32xf32>
    %39 = tpu.matmul %38, %24, %cst_12 {dimension_numbers = #tpu.dot_dimension_numbers<[2], [1], [1], [2], [0, 0, 0, 1, 1, 2], [0], [0]>} : vector<2x8x8xbf16>, vector<2x8x32xbf16>, vector<2x8x32xf32> -> vector<2x8x32xf32>
    "tpu.trace_stop"() : () -> ()
    %40 = vector.shape_cast %39 : vector<2x8x32xf32> to vector<16x32xf32>
    %41 = vector.extract_strided_slice %15 {offsets = [0, 32], sizes = [16, 32], strides = [1, 1]} : vector<16x384xf32> to vector<16x32xf32>
    %42 = vector.shape_cast %41 : vector<16x32xf32> to vector<2x8x32xf32>
    %43 = arith.truncf %42 : vector<2x8x32xf32> to vector<2x8x32xbf16>
    %44 = vector.extract_strided_slice %15 {offsets = [0, 160], sizes = [16, 32], strides = [1, 1]} : vector<16x384xf32> to vector<16x32xf32>
    %45 = vector.shape_cast %44 : vector<16x32xf32> to vector<2x8x32xf32>
    %46 = arith.truncf %45 : vector<2x8x32xf32> to vector<2x8x32xbf16>
    %47 = vector.extract_strided_slice %15 {offsets = [0, 288], sizes = [16, 32], strides = [1, 1]} : vector<16x384xf32> to vector<16x32xf32>
    %48 = vector.shape_cast %47 : vector<16x32xf32> to vector<2x8x32xf32>
    %49 = arith.truncf %48 : vector<2x8x32xf32> to vector<2x8x32xbf16>
    "tpu.trace_start"() <{level = 10 : i32, message = "bqd,bkd->bqk"}> : () -> ()
    %cst_13 = arith.constant dense<0.000000e+00> : vector<2x8x8xf32>
    %50 = tpu.matmul %43, %46, %cst_13 {dimension_numbers = #tpu.dot_dimension_numbers<[2], [2], [1], [1], [0, 0, 0, 1, 1, 1], [0], [0]>} : vector<2x8x32xbf16>, vector<2x8x32xbf16>, vector<2x8x8xf32> -> vector<2x8x8xf32>
    "tpu.trace_stop"() : () -> ()
    %cst_14 = arith.constant 0.353553385 : f32
    %51 = vector.broadcast %cst_14 : f32 to vector<2x8x8xf32>
    %52 = arith.mulf %50, %51 : vector<2x8x8xf32>
    %cst_15 = arith.constant dense<0xFF800000> : vector<2x8xf32>
    %53 = vector.multi_reduction <maximumf>, %52, %cst_15 [2] : vector<2x8x8xf32> to vector<2x8xf32>
    %54 = vector.shape_cast %53 : vector<2x8xf32> to vector<2x8x1xf32>
    %55 = vector.broadcast %54 : vector<2x8x1xf32> to vector<2x8x8xf32>
    %56 = arith.subf %52, %55 : vector<2x8x8xf32>
    %57 = math.exp %56 : vector<2x8x8xf32>
    %cst_16 = arith.constant dense<0.000000e+00> : vector<2x8xf32>
    %58 = vector.multi_reduction <add>, %57, %cst_16 [2] : vector<2x8x8xf32> to vector<2x8xf32>
    %59 = vector.shape_cast %58 : vector<2x8xf32> to vector<2x8x1xf32>
    %60 = tpu.reciprocal %59 {approx = true} : vector<2x8x1xf32> -> vector<2x8x1xf32>
    %61 = vector.broadcast %60 : vector<2x8x1xf32> to vector<2x8x8xf32>
    %62 = arith.mulf %57, %61 : vector<2x8x8xf32>
    %63 = arith.truncf %62 : vector<2x8x8xf32> to vector<2x8x8xbf16>
    "tpu.trace_start"() <{level = 10 : i32, message = "bqk,bkd->bqd"}> : () -> ()
    %cst_17 = arith.constant dense<0.000000e+00> : vector<2x8x32xf32>
    %64 = tpu.matmul %63, %49, %cst_17 {dimension_numbers = #tpu.dot_dimension_numbers<[2], [1], [1], [2], [0, 0, 0, 1, 1, 2], [0], [0]>} : vector<2x8x8xbf16>, vector<2x8x32xbf16>, vector<2x8x32xf32> -> vector<2x8x32xf32>
    "tpu.trace_stop"() : () -> ()
    %65 = vector.shape_cast %64 : vector<2x8x32xf32> to vector<16x32xf32>
    %66 = vector.extract_strided_slice %15 {offsets = [0, 64], sizes = [16, 32], strides = [1, 1]} : vector<16x384xf32> to vector<16x32xf32>
    %67 = vector.shape_cast %66 : vector<16x32xf32> to vector<2x8x32xf32>
    %68 = arith.truncf %67 : vector<2x8x32xf32> to vector<2x8x32xbf16>
    %69 = vector.extract_strided_slice %15 {offsets = [0, 192], sizes = [16, 32], strides = [1, 1]} : vector<16x384xf32> to vector<16x32xf32>
    %70 = vector.shape_cast %69 : vector<16x32xf32> to vector<2x8x32xf32>
    %71 = arith.truncf %70 : vector<2x8x32xf32> to vector<2x8x32xbf16>
    %72 = vector.extract_strided_slice %15 {offsets = [0, 320], sizes = [16, 32], strides = [1, 1]} : vector<16x384xf32> to vector<16x32xf32>
    %73 = vector.shape_cast %72 : vector<16x32xf32> to vector<2x8x32xf32>
    %74 = arith.truncf %73 : vector<2x8x32xf32> to vector<2x8x32xbf16>
    "tpu.trace_start"() <{level = 10 : i32, message = "bqd,bkd->bqk"}> : () -> ()
    %cst_18 = arith.constant dense<0.000000e+00> : vector<2x8x8xf32>
    %75 = tpu.matmul %68, %71, %cst_18 {dimension_numbers = #tpu.dot_dimension_numbers<[2], [2], [1], [1], [0, 0, 0, 1, 1, 1], [0], [0]>} : vector<2x8x32xbf16>, vector<2x8x32xbf16>, vector<2x8x8xf32> -> vector<2x8x8xf32>
    "tpu.trace_stop"() : () -> ()
    %cst_19 = arith.constant 0.353553385 : f32
    %76 = vector.broadcast %cst_19 : f32 to vector<2x8x8xf32>
    %77 = arith.mulf %75, %76 : vector<2x8x8xf32>
    %cst_20 = arith.constant dense<0xFF800000> : vector<2x8xf32>
    %78 = vector.multi_reduction <maximumf>, %77, %cst_20 [2] : vector<2x8x8xf32> to vector<2x8xf32>
    %79 = vector.shape_cast %78 : vector<2x8xf32> to vector<2x8x1xf32>
    %80 = vector.broadcast %79 : vector<2x8x1xf32> to vector<2x8x8xf32>
    %81 = arith.subf %77, %80 : vector<2x8x8xf32>
    %82 = math.exp %81 : vector<2x8x8xf32>
    %cst_21 = arith.constant dense<0.000000e+00> : vector<2x8xf32>
    %83 = vector.multi_reduction <add>, %82, %cst_21 [2] : vector<2x8x8xf32> to vector<2x8xf32>
    %84 = vector.shape_cast %83 : vector<2x8xf32> to vector<2x8x1xf32>
    %85 = tpu.reciprocal %84 {approx = true} : vector<2x8x1xf32> -> vector<2x8x1xf32>
    %86 = vector.broadcast %85 : vector<2x8x1xf32> to vector<2x8x8xf32>
    %87 = arith.mulf %82, %86 : vector<2x8x8xf32>
    %88 = arith.truncf %87 : vector<2x8x8xf32> to vector<2x8x8xbf16>
    "tpu.trace_start"() <{level = 10 : i32, message = "bqk,bkd->bqd"}> : () -> ()
    %cst_22 = arith.constant dense<0.000000e+00> : vector<2x8x32xf32>
    %89 = tpu.matmul %88, %74, %cst_22 {dimension_numbers = #tpu.dot_dimension_numbers<[2], [1], [1], [2], [0, 0, 0, 1, 1, 2], [0], [0]>} : vector<2x8x8xbf16>, vector<2x8x32xbf16>, vector<2x8x32xf32> -> vector<2x8x32xf32>
    "tpu.trace_stop"() : () -> ()
    %90 = vector.shape_cast %89 : vector<2x8x32xf32> to vector<16x32xf32>
    %91 = vector.extract_strided_slice %15 {offsets = [0, 96], sizes = [16, 32], strides = [1, 1]} : vector<16x384xf32> to vector<16x32xf32>
    %92 = vector.shape_cast %91 : vector<16x32xf32> to vector<2x8x32xf32>
    %93 = arith.truncf %92 : vector<2x8x32xf32> to vector<2x8x32xbf16>
    %94 = vector.extract_strided_slice %15 {offsets = [0, 224], sizes = [16, 32], strides = [1, 1]} : vector<16x384xf32> to vector<16x32xf32>
    %95 = vector.shape_cast %94 : vector<16x32xf32> to vector<2x8x32xf32>
    %96 = arith.truncf %95 : vector<2x8x32xf32> to vector<2x8x32xbf16>
    %97 = vector.extract_strided_slice %15 {offsets = [0, 352], sizes = [16, 32], strides = [1, 1]} : vector<16x384xf32> to vector<16x32xf32>
    %98 = vector.shape_cast %97 : vector<16x32xf32> to vector<2x8x32xf32>
    %99 = arith.truncf %98 : vector<2x8x32xf32> to vector<2x8x32xbf16>
    "tpu.trace_start"() <{level = 10 : i32, message = "bqd,bkd->bqk"}> : () -> ()
    %cst_23 = arith.constant dense<0.000000e+00> : vector<2x8x8xf32>
    %100 = tpu.matmul %93, %96, %cst_23 {dimension_numbers = #tpu.dot_dimension_numbers<[2], [2], [1], [1], [0, 0, 0, 1, 1, 1], [0], [0]>} : vector<2x8x32xbf16>, vector<2x8x32xbf16>, vector<2x8x8xf32> -> vector<2x8x8xf32>
    "tpu.trace_stop"() : () -> ()
    %cst_24 = arith.constant 0.353553385 : f32
    %101 = vector.broadcast %cst_24 : f32 to vector<2x8x8xf32>
    %102 = arith.mulf %100, %101 : vector<2x8x8xf32>
    %cst_25 = arith.constant dense<0xFF800000> : vector<2x8xf32>
    %103 = vector.multi_reduction <maximumf>, %102, %cst_25 [2] : vector<2x8x8xf32> to vector<2x8xf32>
    %104 = vector.shape_cast %103 : vector<2x8xf32> to vector<2x8x1xf32>
    %105 = vector.broadcast %104 : vector<2x8x1xf32> to vector<2x8x8xf32>
    %106 = arith.subf %102, %105 : vector<2x8x8xf32>
    %107 = math.exp %106 : vector<2x8x8xf32>
    %cst_26 = arith.constant dense<0.000000e+00> : vector<2x8xf32>
    %108 = vector.multi_reduction <add>, %107, %cst_26 [2] : vector<2x8x8xf32> to vector<2x8xf32>
    %109 = vector.shape_cast %108 : vector<2x8xf32> to vector<2x8x1xf32>
    %110 = tpu.reciprocal %109 {approx = true} : vector<2x8x1xf32> -> vector<2x8x1xf32>
    %111 = vector.broadcast %110 : vector<2x8x1xf32> to vector<2x8x8xf32>
    %112 = arith.mulf %107, %111 : vector<2x8x8xf32>
    %113 = arith.truncf %112 : vector<2x8x8xf32> to vector<2x8x8xbf16>
    "tpu.trace_start"() <{level = 10 : i32, message = "bqk,bkd->bqd"}> : () -> ()
    %cst_27 = arith.constant dense<0.000000e+00> : vector<2x8x32xf32>
    %114 = tpu.matmul %113, %99, %cst_27 {dimension_numbers = #tpu.dot_dimension_numbers<[2], [1], [1], [2], [0, 0, 0, 1, 1, 2], [0], [0]>} : vector<2x8x8xbf16>, vector<2x8x32xbf16>, vector<2x8x32xf32> -> vector<2x8x32xf32>
    "tpu.trace_stop"() : () -> ()
    %115 = vector.shape_cast %114 : vector<2x8x32xf32> to vector<16x32xf32>
    %116 = tpu.concatenate %40, %65, %90, %115 in 1 : vector<16x32xf32>, vector<16x32xf32>, vector<16x32xf32>, vector<16x32xf32> -> vector<16x128xf32>
    %117 = arith.truncf %116 : vector<16x128xf32> to vector<16x128xbf16>
    %c0_28 = arith.constant 0 : index
    %c0_29 = arith.constant 0 : index
    %c0_30 = arith.constant 0 : index
    %118 = vector.load %arg5[%c0_28, %c0_29, %c0_30] : memref<2x128x128xbf16, #tpu.memory_space<vmem>>, vector<1x128x128xbf16>
    %119 = vector.shape_cast %118 : vector<1x128x128xbf16> to vector<128x128xbf16>
    %cst_31 = arith.constant dense<0.000000e+00> : vector<16x128xf32>
    %120 = tpu.matmul %117, %119, %cst_31 {dimension_numbers = #tpu.dot_dimension_numbers<[1], [0], [0], [1], [0, 0, 1, 1], [], []>} : vector<16x128xbf16>, vector<128x128xbf16>, vector<16x128xf32> -> vector<16x128xf32>
    %c0_32 = arith.constant 0 : index
    %c0_33 = arith.constant 0 : index
    %c0_34 = arith.constant 0 : index
    %121 = vector.load %arg6[%c0_32, %c0_33, %c0_34] : memref<2x1x128xf32, #tpu.memory_space<vmem>>, vector<1x1x128xf32>
    %122 = vector.shape_cast %121 : vector<1x1x128xf32> to vector<1x128xf32>
    %123 = vector.broadcast %122 : vector<1x128xf32> to vector<16x128xf32>
    %124 = arith.addf %120, %123 : vector<16x128xf32>
    %125 = arith.addf %7, %124 : vector<16x128xf32>
    %c0_35 = arith.constant 0 : index
    %c0_36 = arith.constant 0 : index
    %c0_37 = arith.constant 0 : index
    %126 = vector.load %arg11[%c0_35, %c0_36, %c0_37] : memref<2x1x128xf32, #tpu.memory_space<vmem>>, vector<1x1x128xf32>
    %127 = vector.shape_cast %126 : vector<1x1x128xf32> to vector<1x128xf32>
    %c0_38 = arith.constant 0 : index
    %c0_39 = arith.constant 0 : index
    %c0_40 = arith.constant 0 : index
    %128 = vector.load %arg12[%c0_38, %c0_39, %c0_40] : memref<2x1x128xf32, #tpu.memory_space<vmem>>, vector<1x1x128xf32>
    %129 = vector.shape_cast %128 : vector<1x1x128xf32> to vector<1x128xf32>
    %130 = vector.broadcast %4 : vector<1x128xf32> to vector<16x128xf32>
    %131 = arith.mulf %125, %130 : vector<16x128xf32>
    %cst_41 = arith.constant dense<0.000000e+00> : vector<16xf32>
    %132 = vector.multi_reduction <add>, %131, %cst_41 [1] : vector<16x128xf32> to vector<16xf32>
    %133 = vector.shape_cast %132 : vector<16xf32> to vector<16x1xf32>
    %cst_42 = arith.constant 3.125000e-02 : f32
    %134 = vector.broadcast %cst_42 : f32 to vector<16x1xf32>
    %135 = arith.mulf %133, %134 : vector<16x1xf32>
    %136 = vector.broadcast %135 : vector<16x1xf32> to vector<16x128xf32>
    %137 = arith.subf %125, %136 : vector<16x128xf32>
    %138 = vector.broadcast %4 : vector<1x128xf32> to vector<16x128xf32>
    %139 = arith.mulf %137, %138 : vector<16x128xf32>
    %140 = arith.mulf %139, %139 : vector<16x128xf32>
    %cst_43 = arith.constant dense<0.000000e+00> : vector<16xf32>
    %141 = vector.multi_reduction <add>, %140, %cst_43 [1] : vector<16x128xf32> to vector<16xf32>
    %142 = vector.shape_cast %141 : vector<16xf32> to vector<16x1xf32>
    %cst_44 = arith.constant 3.125000e-02 : f32
    %143 = vector.broadcast %cst_44 : f32 to vector<16x1xf32>
    %144 = arith.mulf %142, %143 : vector<16x1xf32>
    %cst_45 = arith.constant 9.99999974E-6 : f32
    %145 = vector.broadcast %cst_45 : f32 to vector<16x1xf32>
    %146 = arith.addf %144, %145 : vector<16x1xf32>
    %147 = math.rsqrt %146 : vector<16x1xf32>
    %148 = vector.broadcast %147 : vector<16x1xf32> to vector<16x128xf32>
    %149 = arith.mulf %139, %148 : vector<16x128xf32>
    %150 = vector.broadcast %127 : vector<1x128xf32> to vector<16x128xf32>
    %151 = arith.mulf %149, %150 : vector<16x128xf32>
    %152 = vector.broadcast %129 : vector<1x128xf32> to vector<16x128xf32>
    %153 = arith.addf %151, %152 : vector<16x128xf32>
    %154 = arith.truncf %153 : vector<16x128xf32> to vector<16x128xbf16>
    %c0_46 = arith.constant 0 : index
    %c0_47 = arith.constant 0 : index
    %c0_48 = arith.constant 0 : index
    %155 = vector.load %arg7[%c0_46, %c0_47, %c0_48] : memref<2x128x2048xbf16, #tpu.memory_space<vmem>>, vector<1x128x2048xbf16>
    %156 = vector.shape_cast %155 : vector<1x128x2048xbf16> to vector<128x2048xbf16>
    %cst_49 = arith.constant dense<0.000000e+00> : vector<16x2048xf32>
    %157 = tpu.matmul %154, %156, %cst_49 {dimension_numbers = #tpu.dot_dimension_numbers<[1], [0], [0], [1], [0, 0, 1, 1], [], []>} : vector<16x128xbf16>, vector<128x2048xbf16>, vector<16x2048xf32> -> vector<16x2048xf32>
    %c0_50 = arith.constant 0 : index
    %c0_51 = arith.constant 0 : index
    %c0_52 = arith.constant 0 : index
    %158 = vector.load %arg8[%c0_50, %c0_51, %c0_52] : memref<2x1x2048xf32, #tpu.memory_space<vmem>>, vector<1x1x2048xf32>
    %159 = vector.shape_cast %158 : vector<1x1x2048xf32> to vector<1x2048xf32>
    %160 = vector.broadcast %159 : vector<1x2048xf32> to vector<16x2048xf32>
    %161 = arith.addf %157, %160 : vector<16x2048xf32>
    %cst_53 = arith.constant 0.000000e+00 : f32
    %162 = vector.broadcast %cst_53 : f32 to vector<16x2048xf32>
    %163 = arith.maximumf %161, %162 : vector<16x2048xf32>
    %164 = arith.truncf %163 : vector<16x2048xf32> to vector<16x2048xbf16>
    %c0_54 = arith.constant 0 : index
    %c0_55 = arith.constant 0 : index
    %c0_56 = arith.constant 0 : index
    %165 = vector.load %arg9[%c0_54, %c0_55, %c0_56] : memref<2x2048x128xbf16, #tpu.memory_space<vmem>>, vector<1x2048x128xbf16>
    %166 = vector.shape_cast %165 : vector<1x2048x128xbf16> to vector<2048x128xbf16>
    %cst_57 = arith.constant dense<0.000000e+00> : vector<16x128xf32>
    %167 = tpu.matmul %164, %166, %cst_57 {dimension_numbers = #tpu.dot_dimension_numbers<[1], [0], [0], [1], [0, 0, 1, 1], [], []>} : vector<16x2048xbf16>, vector<2048x128xbf16>, vector<16x128xf32> -> vector<16x128xf32>
    %c0_58 = arith.constant 0 : index
    %c0_59 = arith.constant 0 : index
    %c0_60 = arith.constant 0 : index
    %168 = vector.load %arg10[%c0_58, %c0_59, %c0_60] : memref<2x1x128xf32, #tpu.memory_space<vmem>>, vector<1x1x128xf32>
    %169 = vector.shape_cast %168 : vector<1x1x128xf32> to vector<1x128xf32>
    %170 = vector.broadcast %169 : vector<1x128xf32> to vector<16x128xf32>
    %171 = arith.addf %167, %170 : vector<16x128xf32>
    %172 = arith.addf %153, %171 : vector<16x128xf32>
    %c0_61 = arith.constant 0 : index
    %c0_62 = arith.constant 0 : index
    %c0_63 = arith.constant 0 : index
    %173 = vector.load %arg13[%c0_61, %c0_62, %c0_63] : memref<2x1x128xf32, #tpu.memory_space<vmem>>, vector<1x1x128xf32>
    %174 = vector.shape_cast %173 : vector<1x1x128xf32> to vector<1x128xf32>
    %c0_64 = arith.constant 0 : index
    %c0_65 = arith.constant 0 : index
    %c0_66 = arith.constant 0 : index
    %175 = vector.load %arg14[%c0_64, %c0_65, %c0_66] : memref<2x1x128xf32, #tpu.memory_space<vmem>>, vector<1x1x128xf32>
    %176 = vector.shape_cast %175 : vector<1x1x128xf32> to vector<1x128xf32>
    %177 = vector.broadcast %4 : vector<1x128xf32> to vector<16x128xf32>
    %178 = arith.mulf %172, %177 : vector<16x128xf32>
    %cst_67 = arith.constant dense<0.000000e+00> : vector<16xf32>
    %179 = vector.multi_reduction <add>, %178, %cst_67 [1] : vector<16x128xf32> to vector<16xf32>
    %180 = vector.shape_cast %179 : vector<16xf32> to vector<16x1xf32>
    %cst_68 = arith.constant 3.125000e-02 : f32
    %181 = vector.broadcast %cst_68 : f32 to vector<16x1xf32>
    %182 = arith.mulf %180, %181 : vector<16x1xf32>
    %183 = vector.broadcast %182 : vector<16x1xf32> to vector<16x128xf32>
    %184 = arith.subf %172, %183 : vector<16x128xf32>
    %185 = vector.broadcast %4 : vector<1x128xf32> to vector<16x128xf32>
    %186 = arith.mulf %184, %185 : vector<16x128xf32>
    %187 = arith.mulf %186, %186 : vector<16x128xf32>
    %cst_69 = arith.constant dense<0.000000e+00> : vector<16xf32>
    %188 = vector.multi_reduction <add>, %187, %cst_69 [1] : vector<16x128xf32> to vector<16xf32>
    %189 = vector.shape_cast %188 : vector<16xf32> to vector<16x1xf32>
    %cst_70 = arith.constant 3.125000e-02 : f32
    %190 = vector.broadcast %cst_70 : f32 to vector<16x1xf32>
    %191 = arith.mulf %189, %190 : vector<16x1xf32>
    %cst_71 = arith.constant 9.99999974E-6 : f32
    %192 = vector.broadcast %cst_71 : f32 to vector<16x1xf32>
    %193 = arith.addf %191, %192 : vector<16x1xf32>
    %194 = math.rsqrt %193 : vector<16x1xf32>
    %195 = vector.broadcast %194 : vector<16x1xf32> to vector<16x128xf32>
    %196 = arith.mulf %186, %195 : vector<16x128xf32>
    %197 = vector.broadcast %174 : vector<1x128xf32> to vector<16x128xf32>
    %198 = arith.mulf %196, %197 : vector<16x128xf32>
    %199 = vector.broadcast %176 : vector<1x128xf32> to vector<16x128xf32>
    %200 = arith.addf %198, %199 : vector<16x128xf32>
    %201 = arith.truncf %200 : vector<16x128xf32> to vector<16x128xbf16>
    %c1 = arith.constant 1 : index
    %c0_72 = arith.constant 0 : index
    %c0_73 = arith.constant 0 : index
    %202 = vector.load %arg3[%c1, %c0_72, %c0_73] : memref<2x128x384xbf16, #tpu.memory_space<vmem>>, vector<1x128x384xbf16>
    %203 = vector.shape_cast %202 : vector<1x128x384xbf16> to vector<128x384xbf16>
    %cst_74 = arith.constant dense<0.000000e+00> : vector<16x384xf32>
    %204 = tpu.matmul %201, %203, %cst_74 {dimension_numbers = #tpu.dot_dimension_numbers<[1], [0], [0], [1], [0, 0, 1, 1], [], []>} : vector<16x128xbf16>, vector<128x384xbf16>, vector<16x384xf32> -> vector<16x384xf32>
    %c1_75 = arith.constant 1 : index
    %c0_76 = arith.constant 0 : index
    %c0_77 = arith.constant 0 : index
    %205 = vector.load %arg4[%c1_75, %c0_76, %c0_77] : memref<2x1x384xf32, #tpu.memory_space<vmem>>, vector<1x1x384xf32>
    %206 = vector.shape_cast %205 : vector<1x1x384xf32> to vector<1x384xf32>
    %207 = vector.broadcast %206 : vector<1x384xf32> to vector<16x384xf32>
    %208 = arith.addf %204, %207 : vector<16x384xf32>
    %209 = vector.extract_strided_slice %208 {offsets = [0, 0], sizes = [16, 32], strides = [1, 1]} : vector<16x384xf32> to vector<16x32xf32>
    %210 = vector.shape_cast %209 : vector<16x32xf32> to vector<2x8x32xf32>
    %211 = arith.truncf %210 : vector<2x8x32xf32> to vector<2x8x32xbf16>
    %212 = vector.extract_strided_slice %208 {offsets = [0, 128], sizes = [16, 32], strides = [1, 1]} : vector<16x384xf32> to vector<16x32xf32>
    %213 = vector.shape_cast %212 : vector<16x32xf32> to vector<2x8x32xf32>
    %214 = arith.truncf %213 : vector<2x8x32xf32> to vector<2x8x32xbf16>
    %215 = vector.extract_strided_slice %208 {offsets = [0, 256], sizes = [16, 32], strides = [1, 1]} : vector<16x384xf32> to vector<16x32xf32>
    %216 = vector.shape_cast %215 : vector<16x32xf32> to vector<2x8x32xf32>
    %217 = arith.truncf %216 : vector<2x8x32xf32> to vector<2x8x32xbf16>
    "tpu.trace_start"() <{level = 10 : i32, message = "bqd,bkd->bqk"}> : () -> ()
    %cst_78 = arith.constant dense<0.000000e+00> : vector<2x8x8xf32>
    %218 = tpu.matmul %211, %214, %cst_78 {dimension_numbers = #tpu.dot_dimension_numbers<[2], [2], [1], [1], [0, 0, 0, 1, 1, 1], [0], [0]>} : vector<2x8x32xbf16>, vector<2x8x32xbf16>, vector<2x8x8xf32> -> vector<2x8x8xf32>
    "tpu.trace_stop"() : () -> ()
    %cst_79 = arith.constant 0.353553385 : f32
    %219 = vector.broadcast %cst_79 : f32 to vector<2x8x8xf32>
    %220 = arith.mulf %218, %219 : vector<2x8x8xf32>
    %cst_80 = arith.constant dense<0xFF800000> : vector<2x8xf32>
    %221 = vector.multi_reduction <maximumf>, %220, %cst_80 [2] : vector<2x8x8xf32> to vector<2x8xf32>
    %222 = vector.shape_cast %221 : vector<2x8xf32> to vector<2x8x1xf32>
    %223 = vector.broadcast %222 : vector<2x8x1xf32> to vector<2x8x8xf32>
    %224 = arith.subf %220, %223 : vector<2x8x8xf32>
    %225 = math.exp %224 : vector<2x8x8xf32>
    %cst_81 = arith.constant dense<0.000000e+00> : vector<2x8xf32>
    %226 = vector.multi_reduction <add>, %225, %cst_81 [2] : vector<2x8x8xf32> to vector<2x8xf32>
    %227 = vector.shape_cast %226 : vector<2x8xf32> to vector<2x8x1xf32>
    %228 = tpu.reciprocal %227 {approx = true} : vector<2x8x1xf32> -> vector<2x8x1xf32>
    %229 = vector.broadcast %228 : vector<2x8x1xf32> to vector<2x8x8xf32>
    %230 = arith.mulf %225, %229 : vector<2x8x8xf32>
    %231 = arith.truncf %230 : vector<2x8x8xf32> to vector<2x8x8xbf16>
    "tpu.trace_start"() <{level = 10 : i32, message = "bqk,bkd->bqd"}> : () -> ()
    %cst_82 = arith.constant dense<0.000000e+00> : vector<2x8x32xf32>
    %232 = tpu.matmul %231, %217, %cst_82 {dimension_numbers = #tpu.dot_dimension_numbers<[2], [1], [1], [2], [0, 0, 0, 1, 1, 2], [0], [0]>} : vector<2x8x8xbf16>, vector<2x8x32xbf16>, vector<2x8x32xf32> -> vector<2x8x32xf32>
    "tpu.trace_stop"() : () -> ()
    %233 = vector.shape_cast %232 : vector<2x8x32xf32> to vector<16x32xf32>
    %234 = vector.extract_strided_slice %208 {offsets = [0, 32], sizes = [16, 32], strides = [1, 1]} : vector<16x384xf32> to vector<16x32xf32>
    %235 = vector.shape_cast %234 : vector<16x32xf32> to vector<2x8x32xf32>
    %236 = arith.truncf %235 : vector<2x8x32xf32> to vector<2x8x32xbf16>
    %237 = vector.extract_strided_slice %208 {offsets = [0, 160], sizes = [16, 32], strides = [1, 1]} : vector<16x384xf32> to vector<16x32xf32>
    %238 = vector.shape_cast %237 : vector<16x32xf32> to vector<2x8x32xf32>
    %239 = arith.truncf %238 : vector<2x8x32xf32> to vector<2x8x32xbf16>
    %240 = vector.extract_strided_slice %208 {offsets = [0, 288], sizes = [16, 32], strides = [1, 1]} : vector<16x384xf32> to vector<16x32xf32>
    %241 = vector.shape_cast %240 : vector<16x32xf32> to vector<2x8x32xf32>
    %242 = arith.truncf %241 : vector<2x8x32xf32> to vector<2x8x32xbf16>
    "tpu.trace_start"() <{level = 10 : i32, message = "bqd,bkd->bqk"}> : () -> ()
    %cst_83 = arith.constant dense<0.000000e+00> : vector<2x8x8xf32>
    %243 = tpu.matmul %236, %239, %cst_83 {dimension_numbers = #tpu.dot_dimension_numbers<[2], [2], [1], [1], [0, 0, 0, 1, 1, 1], [0], [0]>} : vector<2x8x32xbf16>, vector<2x8x32xbf16>, vector<2x8x8xf32> -> vector<2x8x8xf32>
    "tpu.trace_stop"() : () -> ()
    %cst_84 = arith.constant 0.353553385 : f32
    %244 = vector.broadcast %cst_84 : f32 to vector<2x8x8xf32>
    %245 = arith.mulf %243, %244 : vector<2x8x8xf32>
    %cst_85 = arith.constant dense<0xFF800000> : vector<2x8xf32>
    %246 = vector.multi_reduction <maximumf>, %245, %cst_85 [2] : vector<2x8x8xf32> to vector<2x8xf32>
    %247 = vector.shape_cast %246 : vector<2x8xf32> to vector<2x8x1xf32>
    %248 = vector.broadcast %247 : vector<2x8x1xf32> to vector<2x8x8xf32>
    %249 = arith.subf %245, %248 : vector<2x8x8xf32>
    %250 = math.exp %249 : vector<2x8x8xf32>
    %cst_86 = arith.constant dense<0.000000e+00> : vector<2x8xf32>
    %251 = vector.multi_reduction <add>, %250, %cst_86 [2] : vector<2x8x8xf32> to vector<2x8xf32>
    %252 = vector.shape_cast %251 : vector<2x8xf32> to vector<2x8x1xf32>
    %253 = tpu.reciprocal %252 {approx = true} : vector<2x8x1xf32> -> vector<2x8x1xf32>
    %254 = vector.broadcast %253 : vector<2x8x1xf32> to vector<2x8x8xf32>
    %255 = arith.mulf %250, %254 : vector<2x8x8xf32>
    %256 = arith.truncf %255 : vector<2x8x8xf32> to vector<2x8x8xbf16>
    "tpu.trace_start"() <{level = 10 : i32, message = "bqk,bkd->bqd"}> : () -> ()
    %cst_87 = arith.constant dense<0.000000e+00> : vector<2x8x32xf32>
    %257 = tpu.matmul %256, %242, %cst_87 {dimension_numbers = #tpu.dot_dimension_numbers<[2], [1], [1], [2], [0, 0, 0, 1, 1, 2], [0], [0]>} : vector<2x8x8xbf16>, vector<2x8x32xbf16>, vector<2x8x32xf32> -> vector<2x8x32xf32>
    "tpu.trace_stop"() : () -> ()
    %258 = vector.shape_cast %257 : vector<2x8x32xf32> to vector<16x32xf32>
    %259 = vector.extract_strided_slice %208 {offsets = [0, 64], sizes = [16, 32], strides = [1, 1]} : vector<16x384xf32> to vector<16x32xf32>
    %260 = vector.shape_cast %259 : vector<16x32xf32> to vector<2x8x32xf32>
    %261 = arith.truncf %260 : vector<2x8x32xf32> to vector<2x8x32xbf16>
    %262 = vector.extract_strided_slice %208 {offsets = [0, 192], sizes = [16, 32], strides = [1, 1]} : vector<16x384xf32> to vector<16x32xf32>
    %263 = vector.shape_cast %262 : vector<16x32xf32> to vector<2x8x32xf32>
    %264 = arith.truncf %263 : vector<2x8x32xf32> to vector<2x8x32xbf16>
    %265 = vector.extract_strided_slice %208 {offsets = [0, 320], sizes = [16, 32], strides = [1, 1]} : vector<16x384xf32> to vector<16x32xf32>
    %266 = vector.shape_cast %265 : vector<16x32xf32> to vector<2x8x32xf32>
    %267 = arith.truncf %266 : vector<2x8x32xf32> to vector<2x8x32xbf16>
    "tpu.trace_start"() <{level = 10 : i32, message = "bqd,bkd->bqk"}> : () -> ()
    %cst_88 = arith.constant dense<0.000000e+00> : vector<2x8x8xf32>
    %268 = tpu.matmul %261, %264, %cst_88 {dimension_numbers = #tpu.dot_dimension_numbers<[2], [2], [1], [1], [0, 0, 0, 1, 1, 1], [0], [0]>} : vector<2x8x32xbf16>, vector<2x8x32xbf16>, vector<2x8x8xf32> -> vector<2x8x8xf32>
    "tpu.trace_stop"() : () -> ()
    %cst_89 = arith.constant 0.353553385 : f32
    %269 = vector.broadcast %cst_89 : f32 to vector<2x8x8xf32>
    %270 = arith.mulf %268, %269 : vector<2x8x8xf32>
    %cst_90 = arith.constant dense<0xFF800000> : vector<2x8xf32>
    %271 = vector.multi_reduction <maximumf>, %270, %cst_90 [2] : vector<2x8x8xf32> to vector<2x8xf32>
    %272 = vector.shape_cast %271 : vector<2x8xf32> to vector<2x8x1xf32>
    %273 = vector.broadcast %272 : vector<2x8x1xf32> to vector<2x8x8xf32>
    %274 = arith.subf %270, %273 : vector<2x8x8xf32>
    %275 = math.exp %274 : vector<2x8x8xf32>
    %cst_91 = arith.constant dense<0.000000e+00> : vector<2x8xf32>
    %276 = vector.multi_reduction <add>, %275, %cst_91 [2] : vector<2x8x8xf32> to vector<2x8xf32>
    %277 = vector.shape_cast %276 : vector<2x8xf32> to vector<2x8x1xf32>
    %278 = tpu.reciprocal %277 {approx = true} : vector<2x8x1xf32> -> vector<2x8x1xf32>
    %279 = vector.broadcast %278 : vector<2x8x1xf32> to vector<2x8x8xf32>
    %280 = arith.mulf %275, %279 : vector<2x8x8xf32>
    %281 = arith.truncf %280 : vector<2x8x8xf32> to vector<2x8x8xbf16>
    "tpu.trace_start"() <{level = 10 : i32, message = "bqk,bkd->bqd"}> : () -> ()
    %cst_92 = arith.constant dense<0.000000e+00> : vector<2x8x32xf32>
    %282 = tpu.matmul %281, %267, %cst_92 {dimension_numbers = #tpu.dot_dimension_numbers<[2], [1], [1], [2], [0, 0, 0, 1, 1, 2], [0], [0]>} : vector<2x8x8xbf16>, vector<2x8x32xbf16>, vector<2x8x32xf32> -> vector<2x8x32xf32>
    "tpu.trace_stop"() : () -> ()
    %283 = vector.shape_cast %282 : vector<2x8x32xf32> to vector<16x32xf32>
    %284 = vector.extract_strided_slice %208 {offsets = [0, 96], sizes = [16, 32], strides = [1, 1]} : vector<16x384xf32> to vector<16x32xf32>
    %285 = vector.shape_cast %284 : vector<16x32xf32> to vector<2x8x32xf32>
    %286 = arith.truncf %285 : vector<2x8x32xf32> to vector<2x8x32xbf16>
    %287 = vector.extract_strided_slice %208 {offsets = [0, 224], sizes = [16, 32], strides = [1, 1]} : vector<16x384xf32> to vector<16x32xf32>
    %288 = vector.shape_cast %287 : vector<16x32xf32> to vector<2x8x32xf32>
    %289 = arith.truncf %288 : vector<2x8x32xf32> to vector<2x8x32xbf16>
    %290 = vector.extract_strided_slice %208 {offsets = [0, 352], sizes = [16, 32], strides = [1, 1]} : vector<16x384xf32> to vector<16x32xf32>
    %291 = vector.shape_cast %290 : vector<16x32xf32> to vector<2x8x32xf32>
    %292 = arith.truncf %291 : vector<2x8x32xf32> to vector<2x8x32xbf16>
    "tpu.trace_start"() <{level = 10 : i32, message = "bqd,bkd->bqk"}> : () -> ()
    %cst_93 = arith.constant dense<0.000000e+00> : vector<2x8x8xf32>
    %293 = tpu.matmul %286, %289, %cst_93 {dimension_numbers = #tpu.dot_dimension_numbers<[2], [2], [1], [1], [0, 0, 0, 1, 1, 1], [0], [0]>} : vector<2x8x32xbf16>, vector<2x8x32xbf16>, vector<2x8x8xf32> -> vector<2x8x8xf32>
    "tpu.trace_stop"() : () -> ()
    %cst_94 = arith.constant 0.353553385 : f32
    %294 = vector.broadcast %cst_94 : f32 to vector<2x8x8xf32>
    %295 = arith.mulf %293, %294 : vector<2x8x8xf32>
    %cst_95 = arith.constant dense<0xFF800000> : vector<2x8xf32>
    %296 = vector.multi_reduction <maximumf>, %295, %cst_95 [2] : vector<2x8x8xf32> to vector<2x8xf32>
    %297 = vector.shape_cast %296 : vector<2x8xf32> to vector<2x8x1xf32>
    %298 = vector.broadcast %297 : vector<2x8x1xf32> to vector<2x8x8xf32>
    %299 = arith.subf %295, %298 : vector<2x8x8xf32>
    %300 = math.exp %299 : vector<2x8x8xf32>
    %cst_96 = arith.constant dense<0.000000e+00> : vector<2x8xf32>
    %301 = vector.multi_reduction <add>, %300, %cst_96 [2] : vector<2x8x8xf32> to vector<2x8xf32>
    %302 = vector.shape_cast %301 : vector<2x8xf32> to vector<2x8x1xf32>
    %303 = tpu.reciprocal %302 {approx = true} : vector<2x8x1xf32> -> vector<2x8x1xf32>
    %304 = vector.broadcast %303 : vector<2x8x1xf32> to vector<2x8x8xf32>
    %305 = arith.mulf %300, %304 : vector<2x8x8xf32>
    %306 = arith.truncf %305 : vector<2x8x8xf32> to vector<2x8x8xbf16>
    "tpu.trace_start"() <{level = 10 : i32, message = "bqk,bkd->bqd"}> : () -> ()
    %cst_97 = arith.constant dense<0.000000e+00> : vector<2x8x32xf32>
    %307 = tpu.matmul %306, %292, %cst_97 {dimension_numbers = #tpu.dot_dimension_numbers<[2], [1], [1], [2], [0, 0, 0, 1, 1, 2], [0], [0]>} : vector<2x8x8xbf16>, vector<2x8x32xbf16>, vector<2x8x32xf32> -> vector<2x8x32xf32>
    "tpu.trace_stop"() : () -> ()
    %308 = vector.shape_cast %307 : vector<2x8x32xf32> to vector<16x32xf32>
    %309 = tpu.concatenate %233, %258, %283, %308 in 1 : vector<16x32xf32>, vector<16x32xf32>, vector<16x32xf32>, vector<16x32xf32> -> vector<16x128xf32>
    %310 = arith.truncf %309 : vector<16x128xf32> to vector<16x128xbf16>
    %c1_98 = arith.constant 1 : index
    %c0_99 = arith.constant 0 : index
    %c0_100 = arith.constant 0 : index
    %311 = vector.load %arg5[%c1_98, %c0_99, %c0_100] : memref<2x128x128xbf16, #tpu.memory_space<vmem>>, vector<1x128x128xbf16>
    %312 = vector.shape_cast %311 : vector<1x128x128xbf16> to vector<128x128xbf16>
    %cst_101 = arith.constant dense<0.000000e+00> : vector<16x128xf32>
    %313 = tpu.matmul %310, %312, %cst_101 {dimension_numbers = #tpu.dot_dimension_numbers<[1], [0], [0], [1], [0, 0, 1, 1], [], []>} : vector<16x128xbf16>, vector<128x128xbf16>, vector<16x128xf32> -> vector<16x128xf32>
    %c1_102 = arith.constant 1 : index
    %c0_103 = arith.constant 0 : index
    %c0_104 = arith.constant 0 : index
    %314 = vector.load %arg6[%c1_102, %c0_103, %c0_104] : memref<2x1x128xf32, #tpu.memory_space<vmem>>, vector<1x1x128xf32>
    %315 = vector.shape_cast %314 : vector<1x1x128xf32> to vector<1x128xf32>
    %316 = vector.broadcast %315 : vector<1x128xf32> to vector<16x128xf32>
    %317 = arith.addf %313, %316 : vector<16x128xf32>
    %318 = arith.addf %200, %317 : vector<16x128xf32>
    %c1_105 = arith.constant 1 : index
    %c0_106 = arith.constant 0 : index
    %c0_107 = arith.constant 0 : index
    %319 = vector.load %arg11[%c1_105, %c0_106, %c0_107] : memref<2x1x128xf32, #tpu.memory_space<vmem>>, vector<1x1x128xf32>
    %320 = vector.shape_cast %319 : vector<1x1x128xf32> to vector<1x128xf32>
    %c1_108 = arith.constant 1 : index
    %c0_109 = arith.constant 0 : index
    %c0_110 = arith.constant 0 : index
    %321 = vector.load %arg12[%c1_108, %c0_109, %c0_110] : memref<2x1x128xf32, #tpu.memory_space<vmem>>, vector<1x1x128xf32>
    %322 = vector.shape_cast %321 : vector<1x1x128xf32> to vector<1x128xf32>
    %323 = vector.broadcast %4 : vector<1x128xf32> to vector<16x128xf32>
    %324 = arith.mulf %318, %323 : vector<16x128xf32>
    %cst_111 = arith.constant dense<0.000000e+00> : vector<16xf32>
    %325 = vector.multi_reduction <add>, %324, %cst_111 [1] : vector<16x128xf32> to vector<16xf32>
    %326 = vector.shape_cast %325 : vector<16xf32> to vector<16x1xf32>
    %cst_112 = arith.constant 3.125000e-02 : f32
    %327 = vector.broadcast %cst_112 : f32 to vector<16x1xf32>
    %328 = arith.mulf %326, %327 : vector<16x1xf32>
    %329 = vector.broadcast %328 : vector<16x1xf32> to vector<16x128xf32>
    %330 = arith.subf %318, %329 : vector<16x128xf32>
    %331 = vector.broadcast %4 : vector<1x128xf32> to vector<16x128xf32>
    %332 = arith.mulf %330, %331 : vector<16x128xf32>
    %333 = arith.mulf %332, %332 : vector<16x128xf32>
    %cst_113 = arith.constant dense<0.000000e+00> : vector<16xf32>
    %334 = vector.multi_reduction <add>, %333, %cst_113 [1] : vector<16x128xf32> to vector<16xf32>
    %335 = vector.shape_cast %334 : vector<16xf32> to vector<16x1xf32>
    %cst_114 = arith.constant 3.125000e-02 : f32
    %336 = vector.broadcast %cst_114 : f32 to vector<16x1xf32>
    %337 = arith.mulf %335, %336 : vector<16x1xf32>
    %cst_115 = arith.constant 9.99999974E-6 : f32
    %338 = vector.broadcast %cst_115 : f32 to vector<16x1xf32>
    %339 = arith.addf %337, %338 : vector<16x1xf32>
    %340 = math.rsqrt %339 : vector<16x1xf32>
    %341 = vector.broadcast %340 : vector<16x1xf32> to vector<16x128xf32>
    %342 = arith.mulf %332, %341 : vector<16x128xf32>
    %343 = vector.broadcast %320 : vector<1x128xf32> to vector<16x128xf32>
    %344 = arith.mulf %342, %343 : vector<16x128xf32>
    %345 = vector.broadcast %322 : vector<1x128xf32> to vector<16x128xf32>
    %346 = arith.addf %344, %345 : vector<16x128xf32>
    %347 = arith.truncf %346 : vector<16x128xf32> to vector<16x128xbf16>
    %c1_116 = arith.constant 1 : index
    %c0_117 = arith.constant 0 : index
    %c0_118 = arith.constant 0 : index
    %348 = vector.load %arg7[%c1_116, %c0_117, %c0_118] : memref<2x128x2048xbf16, #tpu.memory_space<vmem>>, vector<1x128x2048xbf16>
    %349 = vector.shape_cast %348 : vector<1x128x2048xbf16> to vector<128x2048xbf16>
    %cst_119 = arith.constant dense<0.000000e+00> : vector<16x2048xf32>
    %350 = tpu.matmul %347, %349, %cst_119 {dimension_numbers = #tpu.dot_dimension_numbers<[1], [0], [0], [1], [0, 0, 1, 1], [], []>} : vector<16x128xbf16>, vector<128x2048xbf16>, vector<16x2048xf32> -> vector<16x2048xf32>
    %c1_120 = arith.constant 1 : index
    %c0_121 = arith.constant 0 : index
    %c0_122 = arith.constant 0 : index
    %351 = vector.load %arg8[%c1_120, %c0_121, %c0_122] : memref<2x1x2048xf32, #tpu.memory_space<vmem>>, vector<1x1x2048xf32>
    %352 = vector.shape_cast %351 : vector<1x1x2048xf32> to vector<1x2048xf32>
    %353 = vector.broadcast %352 : vector<1x2048xf32> to vector<16x2048xf32>
    %354 = arith.addf %350, %353 : vector<16x2048xf32>
    %cst_123 = arith.constant 0.000000e+00 : f32
    %355 = vector.broadcast %cst_123 : f32 to vector<16x2048xf32>
    %356 = arith.maximumf %354, %355 : vector<16x2048xf32>
    %357 = arith.truncf %356 : vector<16x2048xf32> to vector<16x2048xbf16>
    %c1_124 = arith.constant 1 : index
    %c0_125 = arith.constant 0 : index
    %c0_126 = arith.constant 0 : index
    %358 = vector.load %arg9[%c1_124, %c0_125, %c0_126] : memref<2x2048x128xbf16, #tpu.memory_space<vmem>>, vector<1x2048x128xbf16>
    %359 = vector.shape_cast %358 : vector<1x2048x128xbf16> to vector<2048x128xbf16>
    %cst_127 = arith.constant dense<0.000000e+00> : vector<16x128xf32>
    %360 = tpu.matmul %357, %359, %cst_127 {dimension_numbers = #tpu.dot_dimension_numbers<[1], [0], [0], [1], [0, 0, 1, 1], [], []>} : vector<16x2048xbf16>, vector<2048x128xbf16>, vector<16x128xf32> -> vector<16x128xf32>
    %c1_128 = arith.constant 1 : index
    %c0_129 = arith.constant 0 : index
    %c0_130 = arith.constant 0 : index
    %361 = vector.load %arg10[%c1_128, %c0_129, %c0_130] : memref<2x1x128xf32, #tpu.memory_space<vmem>>, vector<1x1x128xf32>
    %362 = vector.shape_cast %361 : vector<1x1x128xf32> to vector<1x128xf32>
    %363 = vector.broadcast %362 : vector<1x128xf32> to vector<16x128xf32>
    %364 = arith.addf %360, %363 : vector<16x128xf32>
    %365 = arith.addf %346, %364 : vector<16x128xf32>
    %c1_131 = arith.constant 1 : index
    %c0_132 = arith.constant 0 : index
    %c0_133 = arith.constant 0 : index
    %366 = vector.load %arg13[%c1_131, %c0_132, %c0_133] : memref<2x1x128xf32, #tpu.memory_space<vmem>>, vector<1x1x128xf32>
    %367 = vector.shape_cast %366 : vector<1x1x128xf32> to vector<1x128xf32>
    %c1_134 = arith.constant 1 : index
    %c0_135 = arith.constant 0 : index
    %c0_136 = arith.constant 0 : index
    %368 = vector.load %arg14[%c1_134, %c0_135, %c0_136] : memref<2x1x128xf32, #tpu.memory_space<vmem>>, vector<1x1x128xf32>
    %369 = vector.shape_cast %368 : vector<1x1x128xf32> to vector<1x128xf32>
    %370 = vector.broadcast %4 : vector<1x128xf32> to vector<16x128xf32>
    %371 = arith.mulf %365, %370 : vector<16x128xf32>
    %cst_137 = arith.constant dense<0.000000e+00> : vector<16xf32>
    %372 = vector.multi_reduction <add>, %371, %cst_137 [1] : vector<16x128xf32> to vector<16xf32>
    %373 = vector.shape_cast %372 : vector<16xf32> to vector<16x1xf32>
    %cst_138 = arith.constant 3.125000e-02 : f32
    %374 = vector.broadcast %cst_138 : f32 to vector<16x1xf32>
    %375 = arith.mulf %373, %374 : vector<16x1xf32>
    %376 = vector.broadcast %375 : vector<16x1xf32> to vector<16x128xf32>
    %377 = arith.subf %365, %376 : vector<16x128xf32>
    %378 = vector.broadcast %4 : vector<1x128xf32> to vector<16x128xf32>
    %379 = arith.mulf %377, %378 : vector<16x128xf32>
    %380 = arith.mulf %379, %379 : vector<16x128xf32>
    %cst_139 = arith.constant dense<0.000000e+00> : vector<16xf32>
    %381 = vector.multi_reduction <add>, %380, %cst_139 [1] : vector<16x128xf32> to vector<16xf32>
    %382 = vector.shape_cast %381 : vector<16xf32> to vector<16x1xf32>
    %cst_140 = arith.constant 3.125000e-02 : f32
    %383 = vector.broadcast %cst_140 : f32 to vector<16x1xf32>
    %384 = arith.mulf %382, %383 : vector<16x1xf32>
    %cst_141 = arith.constant 9.99999974E-6 : f32
    %385 = vector.broadcast %cst_141 : f32 to vector<16x1xf32>
    %386 = arith.addf %384, %385 : vector<16x1xf32>
    %387 = math.rsqrt %386 : vector<16x1xf32>
    %388 = vector.broadcast %387 : vector<16x1xf32> to vector<16x128xf32>
    %389 = arith.mulf %379, %388 : vector<16x128xf32>
    %390 = vector.broadcast %367 : vector<1x128xf32> to vector<16x128xf32>
    %391 = arith.mulf %389, %390 : vector<16x128xf32>
    %392 = vector.broadcast %369 : vector<1x128xf32> to vector<16x128xf32>
    %393 = arith.addf %391, %392 : vector<16x128xf32>
    %394 = vector.shape_cast %393 : vector<16x128xf32> to vector<2x8x128xf32>
    %c0_142 = arith.constant 0 : index
    %c0_143 = arith.constant 0 : index
    %395 = vector.load %arg2[%c0_142, %c0_143] : memref<2x8xf32, #tpu.memory_space<vmem>>, vector<2x8xf32>
    %396 = vector.shape_cast %395 : vector<2x8xf32> to vector<2x8x1xf32>
    %397 = vector.broadcast %396 : vector<2x8x1xf32> to vector<2x8x128xf32>
    %398 = arith.mulf %394, %397 : vector<2x8x128xf32>
    %cst_144 = arith.constant dense<0.000000e+00> : vector<2x128xf32>
    %399 = vector.multi_reduction <add>, %398, %cst_144 [1] : vector<2x8x128xf32> to vector<2x128xf32>
    %400 = arith.truncf %399 : vector<2x128xf32> to vector<2x128xbf16>
    %c0_145 = arith.constant 0 : index
    %c0_146 = arith.constant 0 : index
    %401 = vector.load %arg15[%c0_145, %c0_146] : memref<128x128xbf16, #tpu.memory_space<vmem>>, vector<128x128xbf16>
    %cst_147 = arith.constant dense<0.000000e+00> : vector<2x128xf32>
    %402 = tpu.matmul %400, %401, %cst_147 {dimension_numbers = #tpu.dot_dimension_numbers<[1], [0], [0], [1], [0, 0, 1, 1], [], []>} : vector<2x128xbf16>, vector<128x128xbf16>, vector<2x128xf32> -> vector<2x128xf32>
    %c0_148 = arith.constant 0 : index
    %c0_149 = arith.constant 0 : index
    %403 = vector.load %arg16[%c0_148, %c0_149] : memref<1x128xf32, #tpu.memory_space<vmem>>, vector<1x128xf32>
    %404 = vector.broadcast %403 : vector<1x128xf32> to vector<2x128xf32>
    %405 = arith.addf %402, %404 : vector<2x128xf32>
    %406 = arith.mulf %405, %405 : vector<2x128xf32>
    %cst_150 = arith.constant dense<0.000000e+00> : vector<2xf32>
    %407 = vector.multi_reduction <add>, %406, %cst_150 [1] : vector<2x128xf32> to vector<2xf32>
    %408 = vector.shape_cast %407 : vector<2xf32> to vector<2x1xf32>
    %409 = math.sqrt %408 : vector<2x1xf32>
    %cst_151 = arith.constant 9.99999996E-13 : f32
    %410 = vector.broadcast %cst_151 : f32 to vector<2x1xf32>
    %411 = arith.maximumf %409, %410 : vector<2x1xf32>
    %412 = vector.broadcast %411 : vector<2x1xf32> to vector<2x128xf32>
    %413 = arith.divf %405, %412 : vector<2x128xf32>
    %c0_152 = arith.constant 0 : index
    %c0_153 = arith.constant 0 : index
    %414 = vector.load %arg17[%c0_152, %c0_153] : memref<2x128xf32, #tpu.memory_space<vmem>>, vector<2x128xf32>
    tpu.vector_store %arg17[%c0_152, %c0_153], %413 {strides = array<i32>} : memref<2x128xf32, #tpu.memory_space<vmem>>, vector<2x128xf32>,
    return
  }
  func.func @transform_0(%arg0: i32) -> (i32, i32, i32) {
    %c0_i32 = arith.constant 0 : i32
    %c0_i32_0 = arith.constant 0 : i32
    %c0_i32_1 = arith.constant 0 : i32
    return %arg0, %c0_i32, %c0_i32_0 : i32, i32, i32
  }
  func.func @transform_1(%arg0: i32) -> (i32, i32) {
    %c0_i32 = arith.constant 0 : i32
    %c0_i32_0 = arith.constant 0 : i32
    return %arg0, %c0_i32 : i32, i32
  }
  func.func @transform_2(%arg0: i32) -> (i32, i32, i32) {
    %c0_i32 = arith.constant 0 : i32
    %c0_i32_0 = arith.constant 0 : i32
    %c0_i32_1 = arith.constant 0 : i32
    %c0_i32_2 = arith.constant 0 : i32
    return %c0_i32, %c0_i32_0, %c0_i32_1 : i32, i32, i32
  }
  func.func @transform_3(%arg0: i32) -> (i32, i32, i32) {
    %c0_i32 = arith.constant 0 : i32
    %c0_i32_0 = arith.constant 0 : i32
    %c0_i32_1 = arith.constant 0 : i32
    %c0_i32_2 = arith.constant 0 : i32
    return %c0_i32, %c0_i32_0, %c0_i32_1 : i32, i32, i32
  }
  func.func @transform_4(%arg0: i32) -> (i32, i32, i32) {
    %c0_i32 = arith.constant 0 : i32
    %c0_i32_0 = arith.constant 0 : i32
    %c0_i32_1 = arith.constant 0 : i32
    %c0_i32_2 = arith.constant 0 : i32
    return %c0_i32, %c0_i32_0, %c0_i32_1 : i32, i32, i32
  }
  func.func @transform_5(%arg0: i32) -> (i32, i32, i32) {
    %c0_i32 = arith.constant 0 : i32
    %c0_i32_0 = arith.constant 0 : i32
    %c0_i32_1 = arith.constant 0 : i32
    %c0_i32_2 = arith.constant 0 : i32
    return %c0_i32, %c0_i32_0, %c0_i32_1 : i32, i32, i32
  }
  func.func @transform_6(%arg0: i32) -> (i32, i32, i32) {
    %c0_i32 = arith.constant 0 : i32
    %c0_i32_0 = arith.constant 0 : i32
    %c0_i32_1 = arith.constant 0 : i32
    %c0_i32_2 = arith.constant 0 : i32
    return %c0_i32, %c0_i32_0, %c0_i32_1 : i32, i32, i32
  }
  func.func @transform_7(%arg0: i32) -> (i32, i32, i32) {
    %c0_i32 = arith.constant 0 : i32
    %c0_i32_0 = arith.constant 0 : i32
    %c0_i32_1 = arith.constant 0 : i32
    %c0_i32_2 = arith.constant 0 : i32
    return %c0_i32, %c0_i32_0, %c0_i32_1 : i32, i32, i32
  }
  func.func @transform_8(%arg0: i32) -> (i32, i32, i32) {
    %c0_i32 = arith.constant 0 : i32
    %c0_i32_0 = arith.constant 0 : i32
    %c0_i32_1 = arith.constant 0 : i32
    %c0_i32_2 = arith.constant 0 : i32
    return %c0_i32, %c0_i32_0, %c0_i32_1 : i32, i32, i32
  }
  func.func @transform_9(%arg0: i32) -> (i32, i32, i32) {
    %c0_i32 = arith.constant 0 : i32
    %c0_i32_0 = arith.constant 0 : i32
    %c0_i32_1 = arith.constant 0 : i32
    %c0_i32_2 = arith.constant 0 : i32
    return %c0_i32, %c0_i32_0, %c0_i32_1 : i32, i32, i32
  }
  func.func @transform_10(%arg0: i32) -> (i32, i32, i32) {
    %c0_i32 = arith.constant 0 : i32
    %c0_i32_0 = arith.constant 0 : i32
    %c0_i32_1 = arith.constant 0 : i32
    %c0_i32_2 = arith.constant 0 : i32
    return %c0_i32, %c0_i32_0, %c0_i32_1 : i32, i32, i32
  }
  func.func @transform_11(%arg0: i32) -> (i32, i32, i32) {
    %c0_i32 = arith.constant 0 : i32
    %c0_i32_0 = arith.constant 0 : i32
    %c0_i32_1 = arith.constant 0 : i32
    %c0_i32_2 = arith.constant 0 : i32
    return %c0_i32, %c0_i32_0, %c0_i32_1 : i32, i32, i32
  }
  func.func @transform_12(%arg0: i32) -> (i32, i32, i32) {
    %c0_i32 = arith.constant 0 : i32
    %c0_i32_0 = arith.constant 0 : i32
    %c0_i32_1 = arith.constant 0 : i32
    %c0_i32_2 = arith.constant 0 : i32
    return %c0_i32, %c0_i32_0, %c0_i32_1 : i32, i32, i32
  }
  func.func @transform_13(%arg0: i32) -> (i32, i32, i32) {
    %c0_i32 = arith.constant 0 : i32
    %c0_i32_0 = arith.constant 0 : i32
    %c0_i32_1 = arith.constant 0 : i32
    %c0_i32_2 = arith.constant 0 : i32
    return %c0_i32, %c0_i32_0, %c0_i32_1 : i32, i32, i32
  }
  func.func @transform_14(%arg0: i32) -> (i32, i32) {
    %c0_i32 = arith.constant 0 : i32
    %c0_i32_0 = arith.constant 0 : i32
    %c0_i32_1 = arith.constant 0 : i32
    return %c0_i32, %c0_i32_0 : i32, i32
  }
  func.func @transform_15(%arg0: i32) -> (i32, i32) {
    %c0_i32 = arith.constant 0 : i32
    %c0_i32_0 = arith.constant 0 : i32
    %c0_i32_1 = arith.constant 0 : i32
    return %c0_i32, %c0_i32_0 : i32, i32
  }
  func.func @transform_16(%arg0: i32) -> (i32, i32) {
    %c0_i32 = arith.constant 0 : i32
    %c0_i32_0 = arith.constant 0 : i32
    return %arg0, %c0_i32 : i32, i32
  }
}

</mosaic_0001>

<bundles_post_ra>
// kernel: tpu_custom_call.1
= control target key start
LH: loop header
LB: loop body
LE: loop exit
PB: predicated region body
PF: predicated region fallthrough
CT: control target
= control target key end

     0   :  { %s11715_s0 = inlined_call_operand.hbm [shape: bf16[2,8,128], index: 0, kind: input, shape index: {}]   ;;  %s11716_s1 = inlined_call_operand.hbm [shape: f32[2,8], index: 1, kind: input, shape index: {}]   ;;  %s11717_s2 = inlined_call_operand.hbm [shape: bf16[2,128,384], index: 2, kind: input, shape index: {}]   ;;  %s11718_s3 = inlined_call_operand.hbm [shape: f32[2,1,384], index: 3, kind: input, shape index: {}]   ;;  %s11719_s4 = inlined_call_operand.hbm [shape: bf16[2,128,128], index: 4, kind: input, shape index: {}]   ;;  %s11720_s5 = inlined_call_operand.hbm [shape: f32[2,1,128], index: 5, kind: input, shape index: {}]   ;;  %s11721_s6 = inlined_call_operand.hbm [shape: bf16[2,128,2048], index: 6, kind: input, shape index: {}]   ;;  %s11722_s7 = inlined_call_operand.hbm [shape: f32[2,1,2048], index: 7, kind: input, shape index: {}]   ;;  %s11723_s8 = inlined_call_operand.hbm [shape: bf16[2,2048,128], index: 8, kind: input, shape index: {}]   ;;  %s11724_s9 = inlined_call_operand.hbm [shape: f32[2,1,128], index: 9, kind: input, shape index: {}]   ;;  %s11725_s10 = inlined_call_operand.hbm [shape: f32[2,1,128], index: 10, kind: input, shape index: {}]   ;;  %s11726_s11 = inlined_call_operand.hbm [shape: f32[2,1,128], index: 11, kind: input, shape index: {}]   ;;  %s11727_s12 = inlined_call_operand.hbm [shape: f32[2,1,128], index: 12, kind: input, shape index: {}]   ;;  %s11728_s13 = inlined_call_operand.hbm [shape: f32[2,1,128], index: 13, kind: input, shape index: {}]   ;;  %s11729_s14 = inlined_call_operand.hbm [shape: bf16[128,128], index: 14, kind: input, shape index: {}]   ;;  %s11730_s15 = inlined_call_operand.hbm [shape: f32[1,128], index: 15, kind: input, shape index: {}]   ;;  %s11731_s16 = inlined_call_operand.hbm [shape: f32[2,128], index: 16, kind: output, shape index: {}]  }
   0x1   :  { %11733 = sst [smem:[#allocation39_spill]] %s11715_s0 }
   0x2   :  { %21 = vsyncpa [#allocation3], 0 }
   0x3   :  { %22 = vsyncpa [#allocation6], 0 }
   0x4   :  { %23 = vsyncpa [#allocation9], 0 }
   0x5   :  { %24 = vsyncpa [#allocation12], 0 }
   0x6   :  { %25 = vsyncpa [#allocation15], 0 }
   0x7   :  { %26 = vsyncpa [#allocation18], 0 }
   0x8   :  { %27 = vsyncpa [#allocation21], 0 }
   0x9   :  { %28 = vsyncpa [#allocation24], 0 }
   0xa   :  { %29 = vsyncpa [#allocation27], 0 }
   0xb   :  { %30 = vsyncpa [#allocation4], 0  ;;  %s10737_s21 = smov [#allocation5]   ;;  %s10738_s23 = smov [#allocation8]  }
   0xc   :  { %s49_s22 = sshll.u32 %s10737_s21, 4  ;;  %s70_s24 = sshll.u32 %s10738_s23, 4  ;;  %s50_s22 = int_to_ptr.vmem [resolvable:$true] %s49_s22  ;;  %s10854_s24 = int_to_ptr.vmem [resolvable:$true] %s70_s24 }
   0xd   :  { %s10343_s27 = scalar_lea.hbm %s11716_s1, 32 }
   0xe   :  { %p10344_p0 = scmp.ne.s32.totalorder %s11716_s1, %s10343_s27  ;;  %p10347_p1 = scmp.lt.u32.totalorder %s10343_s27, %s11716_s1 }
  0x10   :  { %p10349_p2 = pnand %p10347_p1, %p10344_p0 }
  0x12   :  { %10352 = shalt.err (!%p10349_p2)
}
  0x13   :  { %s10353_s17 = scalar_lea.vmem %s50_s22, 32  ;;  %p10358_p4 = scmp.lt.s32.totalorder %s50_s22, %s50_s22 }
  0x14   :  { %p10354_p3 = scmp.ne.s32.totalorder %s50_s22, %s10353_s17  ;;  %p10359_p5 = scmp.lt.s32.totalorder %s10353_s17, %s10353_s17 }
  0x16   :  { %p10360_p6 = por %p10359_p5, %p10358_p4 }
  0x18   :  { %p10361_p7 = pnand %p10360_p6, %p10354_p3 }
  0x1a   :  { %10364 = shalt.err (!%p10361_p7)
}
  0x1b   :  { %52 = dma.hbm_to_vmem [thread:$0]  %s11716_s1, 32, %s50_s22, [#allocation6]  }
  0x1c   :  { %s10365_s23 = scalar_lea.hbm %s11718_s3, 96 }
  0x1d   :  { %p10366_p8 = scmp.ne.s32.totalorder %s11718_s3, %s10365_s23  ;;  %p10369_p9 = scmp.lt.u32.totalorder %s10365_s23, %s11718_s3 }
  0x1f   :  { %p10371_p10 = pnand %p10369_p9, %p10366_p8 }
  0x21   :  { %10374 = shalt.err (!%p10371_p10)
}
  0x22   :  { %s10375_s29 = scalar_lea.vmem %s10854_s24, 96  ;;  %p10380_p12 = scmp.lt.s32.totalorder %s10854_s24, %s10854_s24 }
  0x23   :  { %p10376_p11 = scmp.ne.s32.totalorder %s10854_s24, %s10375_s29  ;;  %p10381_p13 = scmp.lt.s32.totalorder %s10375_s29, %s10375_s29 }
  0x25   :  { %p10382_p0 = por %p10381_p13, %p10380_p12 }
  0x27   :  { %p10383_p1 = pnand %p10382_p0, %p10376_p11 }
  0x29   :  { %10386 = shalt.err (!%p10383_p1)
}
  0x2a   :  { %s10739_s1 = smov 48   ;;  %s10740_s22 = smov 3  }
  0x2b   :  { %76 = dma.hbm_to_vmem [thread:$0]  %s11718_s3, 96, %s10854_s24, [#allocation9], %s10739_s1, %s10739_s1, %s10740_s22  }
  0x2c   :  { %s10741_s17 = smov [#allocation11]   ;;  %s10387_s21 = scalar_lea.hbm %s11720_s5, 32 }
  0x2d   :  { %s94_s18 = sshll.u32 %s10741_s17, 4  ;;  %p10388_p2 = scmp.ne.s32.totalorder %s11720_s5, %s10387_s21  ;;  %s95_s18 = int_to_ptr.vmem [resolvable:$true] %s94_s18 }
  0x2e   :  { %p10391_p3 = scmp.lt.u32.totalorder %s10387_s21, %s11720_s5 }
  0x30   :  { %p10393_p4 = pnand %p10391_p3, %p10388_p2 }
  0x32   :  { %10396 = shalt.err (!%p10393_p4)
}
  0x33   :  { %s10397_s28 = scalar_lea.vmem %s95_s18, 32  ;;  %p10402_p6 = scmp.lt.s32.totalorder %s95_s18, %s95_s18 }
  0x34   :  { %p10398_p5 = scmp.ne.s32.totalorder %s95_s18, %s10397_s28  ;;  %p10403_p7 = scmp.lt.s32.totalorder %s10397_s28, %s10397_s28 }
  0x36   :  { %p10404_p8 = por %p10403_p7, %p10402_p6 }
  0x38   :  { %p10405_p9 = pnand %p10404_p8, %p10398_p5 }
  0x3a   :  { %10408 = shalt.err (!%p10405_p9)
}
  0x3b   :  { %s10742_s3 = smov 16   ;;  %s10743_s24 = smov 1  }
  0x3c   :  { %100 = dma.hbm_to_vmem [thread:$0]  %s11720_s5, 32, %s95_s18, [#allocation12], %s10742_s3, %s10742_s3, %s10743_s24  }
  0x3d   :  { %s10744_s22 = smov [#allocation14]   ;;  %s10409_s19 = scalar_lea.hbm %s11722_s7, 512 }
  0x3e   :  { %s118_s30 = sshll.u32 %s10744_s22, 4  ;;  %p10410_p10 = scmp.ne.s32.totalorder %s11722_s7, %s10409_s19  ;;  %s119_s30 = int_to_ptr.vmem [resolvable:$true] %s118_s30 }
  0x3f   :  { %p10413_p11 = scmp.lt.u32.totalorder %s10409_s19, %s11722_s7 }
  0x41   :  { %p10415_p12 = pnand %p10413_p11, %p10410_p10 }
  0x43   :  { %10418 = shalt.err (!%p10415_p12)
}
  0x44   :  { %s10419_s26 = scalar_lea.vmem %s119_s30, 512  ;;  %p10424_p0 = scmp.lt.s32.totalorder %s119_s30, %s119_s30 }
  0x45   :  { %p10420_p13 = scmp.ne.s32.totalorder %s119_s30, %s10419_s26  ;;  %p10425_p1 = scmp.lt.s32.totalorder %s10419_s26, %s10419_s26 }
  0x47   :  { %p10426_p2 = por %p10425_p1, %p10424_p0 }
  0x49   :  { %p10427_p3 = pnand %p10426_p2, %p10420_p13 }
  0x4b   :  { %10430 = shalt.err (!%p10427_p3)
}
  0x4c   :  { %s10745_s5 = smov 256   ;;  %s10746_s28 = smov [#allocation17]  }
  0x4d   :  { %124 = dma.hbm_to_vmem [thread:$0]  %s11722_s7, 512, %s119_s30, [#allocation15], %s10745_s5, %s10745_s5, %s10742_s3  }
  0x4e   :  { %s142_s29 = sshll.u32 %s10746_s28, 4  ;;  %s10747_s1 = smov [#allocation20]   ;;  %s143_s29 = int_to_ptr.vmem [resolvable:$true] %s142_s29 }
  0x4f   :  { %s166_s22 = sshll.u32 %s10747_s1, 4  ;;  %s10431_s19 = scalar_lea.hbm %s11724_s9, 32  ;;  %s167_s22 = int_to_ptr.vmem [resolvable:$true] %s166_s22 }
  0x50   :  { %p10432_p4 = scmp.ne.s32.totalorder %s11724_s9, %s10431_s19  ;;  %p10435_p5 = scmp.lt.u32.totalorder %s10431_s19, %s11724_s9 }
  0x52   :  { %p10437_p6 = pnand %p10435_p5, %p10432_p4 }
  0x54   :  { %10440 = shalt.err (!%p10437_p6)
}
  0x55   :  { %s10441_s7 = scalar_lea.vmem %s143_s29, 32  ;;  %p10446_p8 = scmp.lt.s32.totalorder %s143_s29, %s143_s29 }
  0x56   :  { %p10442_p7 = scmp.ne.s32.totalorder %s143_s29, %s10441_s7  ;;  %p10447_p9 = scmp.lt.s32.totalorder %s10441_s7, %s10441_s7 }
  0x58   :  { %p10448_p10 = por %p10447_p9, %p10446_p8 }
  0x5a   :  { %p10449_p11 = pnand %p10448_p10, %p10442_p7 }
  0x5c   :  { %10452 = shalt.err (!%p10449_p11)
}
  0x5d   :  { %148 = dma.hbm_to_vmem [thread:$0]  %s11724_s9, 32, %s143_s29, [#allocation18], %s10742_s3, %s10742_s3, %s10743_s24  }
  0x5e   :  { %s10453_s27 = scalar_lea.hbm %s11726_s11, 32 }
  0x5f   :  { %p10454_p12 = scmp.ne.s32.totalorder %s11726_s11, %s10453_s27  ;;  %p10457_p13 = scmp.lt.u32.totalorder %s10453_s27, %s11726_s11 }
  0x61   :  { %p10459_p0 = pnand %p10457_p13, %p10454_p12 }
  0x63   :  { %10462 = shalt.err (!%p10459_p0)
}
  0x64   :  { %s10463_s19 = scalar_lea.vmem %s167_s22, 32  ;;  %p10468_p2 = scmp.lt.s32.totalorder %s167_s22, %s167_s22 }
  0x65   :  { %p10464_p1 = scmp.ne.s32.totalorder %s167_s22, %s10463_s19  ;;  %p10469_p3 = scmp.lt.s32.totalorder %s10463_s19, %s10463_s19 }
  0x67   :  { %p10470_p4 = por %p10469_p3, %p10468_p2 }
  0x69   :  { %p10471_p5 = pnand %p10470_p4, %p10464_p1 }
  0x6b   :  { %10474 = shalt.err (!%p10471_p5)
}
  0x6c   :  { %172 = dma.hbm_to_vmem [thread:$0]  %s11726_s11, 32, %s167_s22, [#allocation21], %s10742_s3, %s10742_s3, %s10743_s24  }
  0x6d   :  { %s10748_s20 = smov [#allocation23]   ;;  %s10749_s23 = smov [#allocation2]  }
  0x6e   :  { %s190_s21 = sshll.u32 %s10748_s20, 4  ;;  %s36_s25 = sshll.u32 %s10749_s23, 4  ;;  %s191_s21 = int_to_ptr.vmem [resolvable:$true] %s190_s21  ;;  %s37_s25 = int_to_ptr.vmem [resolvable:$true] %s36_s25 }
  0x6f   :  { %s10475_s26 = scalar_lea.hbm %s11728_s13, 32 }
  0x70   :  { %p10476_p6 = scmp.ne.s32.totalorder %s11728_s13, %s10475_s26  ;;  %p10479_p7 = scmp.lt.u32.totalorder %s10475_s26, %s11728_s13 }
  0x72   :  { %p10481_p8 = pnand %p10479_p7, %p10476_p6 }
  0x74   :  { %10484 = shalt.err (!%p10481_p8)
}
  0x75   :  { %s10485_s11 = scalar_lea.vmem %s191_s21, 32  ;;  %p10490_p10 = scmp.lt.s32.totalorder %s191_s21, %s191_s21 }
  0x76   :  { %p10486_p9 = scmp.ne.s32.totalorder %s191_s21, %s10485_s11  ;;  %p10491_p11 = scmp.lt.s32.totalorder %s10485_s11, %s10485_s11 }
  0x78   :  { %p10492_p12 = por %p10491_p11, %p10490_p10 }
  0x7a   :  { %p10493_p13 = pnand %p10492_p12, %p10486_p9 }
  0x7c   :  { %10496 = shalt.err (!%p10493_p13)
}
  0x7d   :  { %196 = dma.hbm_to_vmem [thread:$0]  %s11728_s13, 32, %s191_s21, [#allocation24], %s10742_s3, %s10742_s3, %s10743_s24  }
  0x7e   :  { %s11734_s19 = sld [smem:[#allocation39_spill]] }
  0x84   :  { %s10497_s9 = scalar_lea.hbm %s11734_s19, 128 }
  0x85   :  { %p10498_p0 = scmp.ne.s32.totalorder %s11734_s19, %s10497_s9  ;;  %p10501_p1 = scmp.lt.u32.totalorder %s10497_s9, %s11734_s19 }
  0x87   :  { %p10503_p2 = pnand %p10501_p1, %p10498_p0 }
  0x89   :  { %10506 = shalt.err (!%p10503_p2)
}
  0x8a   :  { %s10507_s30 = scalar_lea.vmem %s37_s25, 128  ;;  %p10512_p4 = scmp.lt.s32.totalorder %s37_s25, %s37_s25 }
  0x8b   :  { %p10508_p3 = scmp.ne.s32.totalorder %s37_s25, %s10507_s30  ;;  %p10513_p5 = scmp.lt.s32.totalorder %s10507_s30, %s10507_s30 }
  0x8d   :  { %p10514_p6 = por %p10513_p5, %p10512_p4 }
  0x8f   :  { %p10515_p7 = pnand %p10514_p6, %p10508_p3 }
  0x91   :  { %10518 = shalt.err (!%p10515_p7)
}
  0x92   :  { %s10750_s13 = smov 64   ;;  %s10751_s21 = smov 4  }
  0x93   :  { %42 = dma.hbm_to_vmem [thread:$0]  %s11734_s19, 128, %s37_s25, [#allocation3], %s10750_s13, %s10750_s13, %s10751_s21  }
  0x94   :  { %s10752_s18 = smov [#allocation7]   ;;  %s10519_s22 = scalar_lea.hbm %s11717_s2, 6144 }
  0x95   :  { %s58_s27 = sshll.u32 %s10752_s18, 4  ;;  %p10520_p8 = scmp.ne.s32.totalorder %s11717_s2, %s10519_s22  ;;  %s59_s27 = int_to_ptr.vmem [resolvable:$true] %s58_s27 }
  0x96   :  { %p10523_p9 = scmp.lt.u32.totalorder %s10519_s22, %s11717_s2 }
  0x98   :  { %p10525_p10 = pnand %p10523_p9, %p10520_p8 }
  0x9a   :  { %10528 = shalt.err (!%p10525_p10)
}
  0x9b   :  { %s10529_s29 = scalar_lea.vmem %s59_s27, 6144  ;;  %p10534_p12 = scmp.lt.s32.totalorder %s59_s27, %s59_s27 }
  0x9c   :  { %p10530_p11 = scmp.ne.s32.totalorder %s59_s27, %s10529_s29  ;;  %p10535_p13 = scmp.lt.s32.totalorder %s10529_s29, %s10529_s29 }
  0x9e   :  { %p10536_p0 = por %p10535_p13, %p10534_p12 }
  0xa0   :  { %p10537_p1 = pnand %p10536_p0, %p10530_p11 }
  0xa2   :  { %10540 = shalt.err (!%p10537_p1)
}
  0xa3   :  { %s10753_s25 = smov 192   ;;  %s10754_s19 = smov 12  }
  0xa4   :  { %64 = dma.hbm_to_vmem [thread:$0]  %s11717_s2, 6144, %s59_s27, [#allocation6], %s10753_s25, %s10753_s25, %s10754_s19  }
  0xa5   :  { %s10755_s7 = smov [#allocation10]   ;;  %s10756_s26 = smov [#allocation13]  }
  0xa6   :  { %s82_s30 = sshll.u32 %s10755_s7, 4  ;;  %s106_s5 = sshll.u32 %s10756_s26, 4  ;;  %s83_s30 = int_to_ptr.vmem [resolvable:$true] %s82_s30  ;;  %s10985_s5 = int_to_ptr.vmem [resolvable:$true] %s106_s5 }
  0xa7   :  { %s10541_s11 = scalar_lea.hbm %s11719_s4, 2048 }
  0xa8   :  { %p10542_p2 = scmp.ne.s32.totalorder %s11719_s4, %s10541_s11  ;;  %p10545_p3 = scmp.lt.u32.totalorder %s10541_s11, %s11719_s4 }
  0xaa   :  { %p10547_p4 = pnand %p10545_p3, %p10542_p2 }
  0xac   :  { %10550 = shalt.err (!%p10547_p4)
}
  0xad   :  { %s10551_s2 = scalar_lea.vmem %s83_s30, 2048  ;;  %p10556_p6 = scmp.lt.s32.totalorder %s83_s30, %s83_s30 }
  0xae   :  { %p10552_p5 = scmp.ne.s32.totalorder %s83_s30, %s10551_s2  ;;  %p10557_p7 = scmp.lt.s32.totalorder %s10551_s2, %s10551_s2 }
  0xb0   :  { %p10558_p8 = por %p10557_p7, %p10556_p6 }
  0xb2   :  { %p10559_p9 = pnand %p10558_p8, %p10552_p5 }
  0xb4   :  { %10562 = shalt.err (!%p10559_p9)
}
  0xb5   :  { %88 = dma.hbm_to_vmem [thread:$0]  %s11719_s4, 2048, %s83_s30, [#allocation9], %s10750_s13, %s10750_s13, %s10751_s21  }
  0xb6   :  { %s10563_s19 = scalar_lea.hbm %s11721_s6, 32768 }
  0xb7   :  { %p10564_p10 = scmp.ne.s32.totalorder %s11721_s6, %s10563_s19  ;;  %p10567_p11 = scmp.lt.u32.totalorder %s10563_s19, %s11721_s6 }
  0xb9   :  { %p10569_p12 = pnand %p10567_p11, %p10564_p10 }
  0xbb   :  { %10572 = shalt.err (!%p10569_p12)
}
  0xbc   :  { %s10573_s18 = scalar_lea.vmem %s10985_s5, 32768  ;;  %p10578_p0 = scmp.lt.s32.totalorder %s10985_s5, %s10985_s5 }
  0xbd   :  { %p10574_p13 = scmp.ne.s32.totalorder %s10985_s5, %s10573_s18  ;;  %p10579_p1 = scmp.lt.s32.totalorder %s10573_s18, %s10573_s18 }
  0xbf   :  { %p10580_p2 = por %p10579_p1, %p10578_p0 }
  0xc1   :  { %p10581_p3 = pnand %p10580_p2, %p10574_p13 }
  0xc3   :  { %10584 = shalt.err (!%p10581_p3)
}
  0xc4   :  { %s10757_s4 = smov 1024   ;;  %s10758_s11 = smov [#allocation16]  }
  0xc5   :  { %112 = dma.hbm_to_vmem [thread:$0]  %s11721_s6, 32768, %s10985_s5, [#allocation12], %s10757_s4, %s10757_s4, %s10750_s13  }
  0xc6   :  { %s130_s22 = sshll.u32 %s10758_s11, 4  ;;  %s10759_s1 = smov [#allocation19]   ;;  %s131_s22 = int_to_ptr.vmem [resolvable:$true] %s130_s22 }
  0xc7   :  { %s154_s0 = sshll.u32 %s10759_s1, 4  ;;  %s10585_s27 = scalar_lea.hbm %s11723_s8, 32768  ;;  %s155_s0 = int_to_ptr.vmem [resolvable:$true] %s154_s0 }
  0xc8   :  { %p10586_p4 = scmp.ne.s32.totalorder %s11723_s8, %s10585_s27  ;;  %p10589_p5 = scmp.lt.u32.totalorder %s10585_s27, %s11723_s8 }
  0xca   :  { %p10591_p6 = pnand %p10589_p5, %p10586_p4 }
  0xcc   :  { %10594 = shalt.err (!%p10591_p6)
}
  0xcd   :  { %s10595_s6 = scalar_lea.vmem %s131_s22, 32768  ;;  %p10600_p8 = scmp.lt.s32.totalorder %s131_s22, %s131_s22 }
  0xce   :  { %p10596_p7 = scmp.ne.s32.totalorder %s131_s22, %s10595_s6  ;;  %p10601_p9 = scmp.lt.s32.totalorder %s10595_s6, %s10595_s6 }
  0xd0   :  { %p10602_p10 = por %p10601_p9, %p10600_p8 }
  0xd2   :  { %p10603_p11 = pnand %p10602_p10, %p10596_p7 }
  0xd4   :  { %10606 = shalt.err (!%p10603_p11)
}
  0xd5   :  { %136 = dma.hbm_to_vmem [thread:$0]  %s11723_s8, 32768, %s131_s22, [#allocation15], %s10750_s13, %s10750_s13, %s10751_s21  }
  0xd6   :  { %s10607_s26 = scalar_lea.hbm %s11725_s10, 32 }
  0xd7   :  { %p10608_p12 = scmp.ne.s32.totalorder %s11725_s10, %s10607_s26  ;;  %p10611_p13 = scmp.lt.u32.totalorder %s10607_s26, %s11725_s10 }
  0xd9   :  { %p10613_p0 = pnand %p10611_p13, %p10608_p12 }
  0xdb   :  { %10616 = shalt.err (!%p10613_p0)
}
  0xdc   :  { %s10617_s11 = scalar_lea.vmem %s155_s0, 32  ;;  %p10622_p2 = scmp.lt.s32.totalorder %s155_s0, %s155_s0 }
  0xdd   :  { %p10618_p1 = scmp.ne.s32.totalorder %s155_s0, %s10617_s11  ;;  %p10623_p3 = scmp.lt.s32.totalorder %s10617_s11, %s10617_s11 }
  0xdf   :  { %p10624_p4 = por %p10623_p3, %p10622_p2 }
  0xe1   :  { %p10625_p5 = pnand %p10624_p4, %p10618_p1 }
  0xe3   :  { %10628 = shalt.err (!%p10625_p5)
}
  0xe4   :  { %160 = dma.hbm_to_vmem [thread:$0]  %s11725_s10, 32, %s155_s0, [#allocation18], %s10742_s3, %s10742_s3, %s10743_s24  }
  0xe5   :  { %s10760_s1 = smov [#allocation22]   ;;  %s10761_s2 = smov [#allocation25]  }
  0xe6   :  { %s178_s17 = sshll.u32 %s10760_s1, 4  ;;  %s202_s27 = sshll.u32 %s10761_s2, 4  ;;  %s179_s17 = int_to_ptr.vmem [resolvable:$true] %s178_s17  ;;  %s203_s27 = int_to_ptr.vmem [resolvable:$true] %s202_s27 }
  0xe7   :  { %s10629_s25 = scalar_lea.hbm %s11727_s12, 32 }
  0xe8   :  { %p10630_p6 = scmp.ne.s32.totalorder %s11727_s12, %s10629_s25  ;;  %p10633_p7 = scmp.lt.u32.totalorder %s10629_s25, %s11727_s12 }
  0xea   :  { %p10635_p8 = pnand %p10633_p7, %p10630_p6 }
  0xec   :  { %10638 = shalt.err (!%p10635_p8)
}
  0xed   :  { %s10639_s10 = scalar_lea.vmem %s179_s17, 32  ;;  %p10644_p10 = scmp.lt.s32.totalorder %s179_s17, %s179_s17 }
  0xee   :  { %p10640_p9 = scmp.ne.s32.totalorder %s179_s17, %s10639_s10  ;;  %p10645_p11 = scmp.lt.s32.totalorder %s10639_s10, %s10639_s10 }
  0xf0   :  { %p10646_p12 = por %p10645_p11, %p10644_p10 }
  0xf2   :  { %p10647_p13 = pnand %p10646_p12, %p10640_p9 }
  0xf4   :  { %10650 = shalt.err (!%p10647_p13)
}
  0xf5   :  { %184 = dma.hbm_to_vmem [thread:$0]  %s11727_s12, 32, %s179_s17, [#allocation21], %s10742_s3, %s10742_s3, %s10743_s24  }
  0xf6   :  { %s10651_s18 = scalar_lea.hbm %s11729_s14, 1024 }
  0xf7   :  { %p10652_p0 = scmp.ne.s32.totalorder %s11729_s14, %s10651_s18  ;;  %p10655_p1 = scmp.lt.u32.totalorder %s10651_s18, %s11729_s14 }
  0xf9   :  { %p10657_p2 = pnand %p10655_p1, %p10652_p0 }
  0xfb   :  { %10660 = shalt.err (!%p10657_p2)
}
  0xfc   :  { %s10661_s8 = scalar_lea.vmem %s203_s27, 1024  ;;  %p10666_p4 = scmp.lt.s32.totalorder %s203_s27, %s203_s27 }
  0xfd   :  { %p10662_p3 = scmp.ne.s32.totalorder %s203_s27, %s10661_s8  ;;  %p10667_p5 = scmp.lt.s32.totalorder %s10661_s8, %s10661_s8 }
  0xff   :  { %p10668_p6 = por %p10667_p5, %p10666_p4 }
 0x101   :  { %p10669_p7 = pnand %p10668_p6, %p10662_p3 }
 0x103   :  { %10672 = shalt.err (!%p10669_p7)
}
 0x104   :  { %208 = dma.hbm_to_vmem [thread:$0]  %s11729_s14, 1024, %s203_s27, [#allocation24], %s10750_s13, %s10750_s13, %s10751_s21  }
 0x105   :  { %s10762_s24 = smov [#allocation26]   ;;  %s10673_s2 = scalar_lea.hbm %s11730_s15, 16 }
 0x106   :  { %s215_s22 = sshll.u32 %s10762_s24, 4  ;;  %p10674_p8 = scmp.ne.s32.totalorder %s11730_s15, %s10673_s2  ;;  %s216_s22 = int_to_ptr.vmem [resolvable:$true] %s215_s22 }
 0x107   :  { %p10677_p9 = scmp.lt.u32.totalorder %s10673_s2, %s11730_s15 }
 0x109   :  { %p10679_p10 = pnand %p10677_p9, %p10674_p8 }
 0x10b   :  { %10682 = shalt.err (!%p10679_p10)
}
 0x10c   :  { %s10683_s6 = scalar_lea.vmem %s216_s22, 16  ;;  %s10687_s14 = scalar_lea.vmem %s216_s22, 32 }
 0x10d   :  { %p10684_p11 = scmp.ne.s32.totalorder %s216_s22, %s10683_s6  ;;  %p10688_p12 = scmp.lt.s32.totalorder %s216_s22, %s216_s22 }
 0x10e   :  { %p10689_p13 = scmp.lt.s32.totalorder %s10687_s14, %s10683_s6 }
 0x110   :  { %p10690_p0 = por %p10689_p13, %p10688_p12 }
 0x112   :  { %p10691_p1 = pnand %p10690_p0, %p10684_p11 }
 0x114   :  { %10694 = shalt.err (!%p10691_p1)
}
 0x115   :  { %218 = dma.hbm_to_vmem [thread:$0]  %s11730_s15, 16, %s216_s22, [#allocation27]  }
 0x116   :  { %10717 = dma.done.wait [#allocation3], 128  }
 0x117   :  { %10718 = vsyncadd [#allocation3], 4294967168 }
 0x118   :  { %10719 = dma.done.wait [#allocation6], 6176  }
 0x119   :  { %10720 = vsyncadd [#allocation6], 4294961120 }
 0x11a   :  { %10721 = dma.done.wait [#allocation9], 2144  }
 0x11b   :  { %10722 = vsyncadd [#allocation9], 4294965152 }
 0x11c   :  { %10723 = dma.done.wait [#allocation12], 32800  }
 0x11d   :  { %10724 = vsyncadd [#allocation12], 4294934496 }
 0x11e   :  { %10725 = dma.done.wait [#allocation15], 33280  }
 0x11f   :  { %10726 = vsyncadd [#allocation15], 4294934016 }
 0x120   :  { %10727 = dma.done.wait [#allocation18], 64  }
 0x121   :  { %10728 = vsyncadd [#allocation18], 4294967232 }
 0x122   :  { %10729 = dma.done.wait [#allocation21], 64  }
 0x123   :  { %10730 = vsyncadd [#allocation21], 4294967232 }
 0x124   :  { %10731 = dma.done.wait [#allocation24], 1056  }
 0x125   :  { %10732 = vsyncadd [#allocation24], 4294966240 }
 0x126   :  { %10733 = dma.done.wait [#allocation27], 16  }
 0x127   :  { %10734 = vsyncadd [#allocation27], 4294967280  ;;  %v10763_v0 = vmov 0   ;;  %v10764_v1 = vmov 0.0   ;;  %v9912_v2 = vld [vmem:[#allocation7 + $0x4] ss:$12 sps:$4 sm:$0xff]   ;;  %v268_v27 = vlaneseq }
 0x128   :  { %492 = vmatprep.mubr.bf16.mxu0 %v10763_v0  ;;  %9558 = vmatprep.subr.bf16.mxu1 %v10764_v1  ;;  %v9914_v3 = vld [vmem:[#allocation7] ss:$12 sps:$4 sm:$0xff]   ;;  %v9915_v4 = vld [vmem:[#allocation7 + $0x1c] ss:$12 sps:$4 sm:$0xff]   ;;  %v9917_v5 = vld [vmem:[#allocation7 + $0x18] ss:$12 sps:$4 sm:$0xff]  }
 0x129   :  { %460 = vmatprep.subr.bf16.mxu0 %v9912_v2  ;;  %v9918_v6 = vld [vmem:[#allocation7 + $0x34] ss:$12 sps:$4 sm:$0xff]   ;;  %v9920_v7 = vld [vmem:[#allocation7 + $0x30] ss:$12 sps:$4 sm:$0xff]   ;;  %v9921_v8 = vld [vmem:[#allocation7 + $0x4c] ss:$12 sps:$4 sm:$0xff]  }
 0x12a   :  { %461 = vmatpush1.bf16.msra.mxu0 %v9914_v3  ;;  %v9923_v9 = vld [vmem:[#allocation7 + $0x48] ss:$12 sps:$4 sm:$0xff]   ;;  %v9924_v11 = vld [vmem:[#allocation7 + $0x64] ss:$12 sps:$4 sm:$0xff]   ;;  %v9938_v12 = vld [vmem:[#allocation7 + $0x20] ss:$12 sps:$4 sm:$0xff]  }
 0x12b   :  { %462 = vmatprep.subr.bf16.mxu0 %v9915_v4  ;;  %v9937_v10 = vld [vmem:[#allocation7 + $0x8] ss:$12 sps:$4 sm:$0xff]   ;;  %v9926_v13 = vld [vmem:[#allocation7 + $0x60] ss:$12 sps:$4 sm:$0xff]   ;;  %v9929_v15 = vld [vmem:[#allocation7 + $0x78] ss:$12 sps:$4 sm:$0xff]  }
 0x12c   :  { %9559 = vmatpush3.bf16.msra.mxu1 %v9937_v10  ;;  %v9927_v14 = vld [vmem:[#allocation7 + $0x7c] ss:$12 sps:$4 sm:$0xff]   ;;  %v9939_v16 = vld [vmem:[#allocation7 + $0x38] ss:$12 sps:$4 sm:$0xff]   ;;  %v9930_v17 = vld [vmem:[#allocation7 + $0x94] ss:$12 sps:$4 sm:$0xff]  }
 0x12d   :  { %9560 = vmatprep.subr.bf16.mxu1 %v10764_v1  ;;  %v9940_v18 = vld [vmem:[#allocation7 + $0x50] ss:$12 sps:$4 sm:$0xff]   ;;  %v9933_v20 = vld [vmem:[#allocation7 + $0xac] ss:$12 sps:$4 sm:$0xff]   ;;  %v9941_v21 = vld [vmem:[#allocation7 + $0x68] ss:$12 sps:$4 sm:$0xff]  }
 0x12e   :  { %463 = vmatpush1.bf16.msra.mxu0 %v9917_v5  ;;  %v9932_v19 = vld [vmem:[#allocation7 + $0x90] ss:$12 sps:$4 sm:$0xff]   ;;  %v9935_v22 = vld [vmem:[#allocation7 + $0xa8] ss:$12 sps:$4 sm:$0xff]   ;;  %v9942_v24 = vld [vmem:[#allocation7 + $0x80] ss:$12 sps:$4 sm:$0xff]  }
 0x12f   :  { %464 = vmatprep.subr.bf16.mxu0 %v9918_v6  ;;  %v273_v23 = vld [vmem:[#allocation2] sm:$0xff]   ;;  %vm10765_vm0 = vmmov 0   ;;  %v11110_v28 = vshrl.u32 %v268_v27, 7  ;;  %v309_v30 = vld [vmem:[#allocation8] sm:$0x7]  ;;  %vm550_vm1 = vcmask 261120  }
 0x130   :  { %9561 = vmatpush3.bf16.msra.mxu1 %v9938_v12  ;;  %v9943_v25 = vld [vmem:[#allocation7 + $0x98] ss:$12 sps:$4 sm:$0xff]   ;;  %v9944_v26 = vld [vmem:[#allocation7 + $0xb0] ss:$12 sps:$4 sm:$0xff]   ;;  %9574 = vmatprep.mubr.msk.bf16.mxu1 %vm10765_vm0, %v10764_v1  ;;  %s10766_s15 = smov 96   ;;  %vm673_vm2 = vcmask 1043456  }
 0x131   :  { %9562 = vmatprep.subr.bf16.mxu1 %v10764_v1  ;;  %v11113_v29 = vsub.s32 1, %v11110_v28  ;;  %v11117_v32 = vsub.s32 0, %v11110_v28  ;;  %v11145_v48 = vsub.s32 2, %v11110_v28  ;;  %vm645_vm3 = vcmask 64512   ;;  %s10767_s5 = smov 32  }
 0x132   :  { %465 = vmatpush1.bf16.msra.mxu0 %v9920_v7  ;;  %vm1461_vm4 = vcmask 523264   ;;  %vm1464_vm5 = vcmask 785408   ;;  %vm8335_vm7 = vcmask 1041409   ;;  %vm8428_vm8 = vcmask 1041408  }
 0x133   :  { %466 = vmatprep.subr.bf16.mxu0 %v9921_v8  ;;  %v318_v31 = vrot.slane %v309_v30, %v11113_v29  ;;  %v314_v38 = vrot.slane %v309_v30, %v11117_v32  ;;  %v322_v49 = vrot.slane %v309_v30, %v11145_v48 }
 0x134   :  { %9563 = vmatpush3.bf16.msra.mxu1 %v9939_v16 }
 0x135   :  { %9564 = vmatprep.subr.bf16.mxu1 %v10764_v1 }
 0x136   :  { %467 = vmatpush1.bf16.msra.mxu0 %v9923_v9 }
 0x137   :  { %468 = vmatprep.subr.bf16.mxu0 %v9924_v11 }
 0x138   :  { %9565 = vmatpush3.bf16.msra.mxu1 %v9940_v18 }
 0x139   :  { %9566 = vmatprep.subr.bf16.mxu1 %v10764_v1 }
 0x13a   :  { %469 = vmatpush1.bf16.msra.mxu0 %v9926_v13 }
 0x13b   :  { %470 = vmatprep.subr.bf16.mxu0 %v9927_v14 }
 0x13c   :  { %9567 = vmatpush3.bf16.msra.mxu1 %v9941_v21 }
 0x13d   :  { %9568 = vmatprep.subr.bf16.mxu1 %v10764_v1 }
 0x13e   :  { %471 = vmatpush1.bf16.msra.mxu0 %v9929_v15 }
 0x13f   :  { %472 = vmatprep.subr.bf16.mxu0 %v9930_v17 }
 0x140   :  { %9569 = vmatpush3.bf16.msra.mxu1 %v9942_v24 }
 0x141   :  { %9570 = vmatprep.subr.bf16.mxu1 %v10764_v1 }
 0x142   :  { %473 = vmatpush1.bf16.msra.mxu0 %v9932_v19 }
 0x143   :  { %474 = vmatprep.subr.bf16.mxu0 %v9933_v20 }
 0x144   :  { %9571 = vmatpush3.bf16.msra.mxu1 %v9943_v25 }
 0x145   :  { %9572 = vmatprep.subr.bf16.mxu1 %v10764_v1 }
 0x146   :  { %475 = vmatpush1.bf16.msra.mxu0 %v9935_v22 }
 0x147   :  { %9578 = vmatprep.subr.bf16.mxu0 %v10764_v1 }
 0x148   :  { %9573 = vmatpush3.bf16.msra.mxu1 %v9944_v26 }
 0x149   :  { %493 = vmatmul.mubr.bf16.vlgmr.msra.gmra.mrb[0].mxu0 %v273_v23  ;;  %9584 = vmatprep.subr.bf16.mxu1 %v10764_v1 }
 0x14a   :  { %9580 = vmatprep.mubr.msk.bf16.mxu0 %vm10765_vm0, %v10764_v1 }
 0x14b   :  { %9575 = vmatmul.mubr.bf16.vlgmr.msra.gmra.mrb[0].mxu1 %v273_v23 }
 0x14c   :  { %9586 = vmatprep.mubr.msk.bf16.mxu1 %vm10765_vm0, %v10764_v1 }
 0x21c   :  { %v494_v33 = vpop.f32.mrb[0].mxu0 }
 0x21d   :  { %v496_v34 = vpop.f32.mrb[1].mxu0  ;;  %v495_v43 = vadd.f32 %v494_v33, %v314_v38 }
 0x21e   :  { %v497_v35 = vadd.f32 %v496_v34, %v318_v31  ;;  %v498_v36 = vpop.f32.mrb[2].mxu0  ;;  %v537_v50 = vpop.f32.mrb[0].mxu1 }
 0x21f   :  { %v500_v37 = vpop.f32.mrb[3].mxu0  ;;  %v499_v45 = vadd.f32 %v498_v36, %v314_v38  ;;  %v11132_v46 = vpack.c.bf16 %v495_v43, %v495_v43  ;;  %v538_v51 = vadd.f32 %v537_v50, %v322_v49  ;;  %v9576_v52 = vpop.f32.mrb[1].mxu1 }
 0x220   :  { %v11120_v39 = vpack.c.bf16 %v497_v35, %v497_v35  ;;  %v501_v40 = vadd.f32 %v500_v37, %v318_v31  ;;  %v540_v53 = vpop.f32.mrb[2].mxu1 }
 0x221   :  { %v11134_v47 = vpack.c.bf16 %v499_v45, %v499_v45  ;;  %v541_v54 = vadd.f32 %v540_v53, %v322_v49  ;;  %v9577_v55 = vpop.f32.mrb[3].mxu1  ;;  %v11148_v56 = vpack.c.bf16 %v538_v51, %v538_v51 }
 0x222   :  { %v11122_v41 = vpack.c.bf16 %v501_v40, %v501_v40  ;;  %v555_v42 = vsel %vm550_vm1, %v11120_v39, 0 }
 0x223   :  { %9579 = vmatpush3.bf16.xpose.msra.mxu0 %v555_v42  ;;  %v11150_v57 = vpack.c.bf16 %v541_v54, %v541_v54  ;;  %v675_v58 = vsel %vm673_vm2, %v11148_v56, 0 }
 0x224   :  { %819 = vrot.lane.b32.xlu1 %v11122_v41, %s10766_s15  ;;  %v601_v44 = vsel %vm550_vm1, %v11122_v41, 0  ;;  %9590 = vmatprep.subr.bf16.mxu0 %v10764_v1 }
 0x225   :  { %9585 = vmatpush3.bf16.xpose.msra.mxu1 %v601_v44  ;;  %v721_v59 = vsel %vm673_vm2, %v11150_v57, 0 }
 0x226   :  { %9596 = vmatprep.subr.bf16.mxu1 %v10764_v1 }
 0x22a   :  { %9581 = vmatmul.mubr.msk.bf16.vlgmr.msra.gmra.mrb[4].mxu0 %vm550_vm1, %v11132_v46 }
 0x22b   :  { %9592 = vmatprep.mubr.msk.bf16.mxu0 %vm10765_vm0, %v10764_v1  ;;  %9591 = vmatpush3.bf16.msra.mxu0 %v675_v58 }
 0x22c   :  { %9587 = vmatmul.mubr.msk.bf16.vlgmr.msra.gmra.mrb[4].mxu1 %vm550_vm1, %v11134_v47  ;;  %9602 = vmatprep.subr.bf16.mxu0 %v10764_v1 }
 0x22d   :  { %9598 = vmatprep.mubr.msk.bf16.mxu1 %vm10765_vm0, %v10764_v1  ;;  %9597 = vmatpush3.bf16.msra.mxu1 %v721_v59 }
 0x22e   :  { %9608 = vmatprep.subr.bf16.mxu1 %v10764_v1 }
 0x296   :  { %v820_v20 = vpop.permute.xlu1 %819 }
 0x297   :  { %v825_v35 = vsel %vm550_vm1, %v820_v20, 0 }
 0x2fd   :  { %v591_v60 = vpop.f32.mrb[4].mxu0 }
 0x2fe   :  { %v643_v61 = vmul.f32 0.35355338, %v591_v60  ;;  %v9582_v62 = vpop.f32.mrb[5].mxu0 }
 0x2ff   :  { %v594_v63 = vpop.f32.mrb[6].mxu0  ;;  %v637_v2 = vpop.f32.mrb[4].mxu1 }
 0x300   :  { %v644_v3 = vmul.f32 0.35355338, %v637_v2  ;;  %v9583_v4 = vpop.f32.mrb[7].mxu0  ;;  %v9588_v5 = vpop.f32.mrb[5].mxu1  ;;  %v646_v6 = vsel %vm645_vm3, %v643_v61, -inf }
 0x301   :  { %v640_v7 = vpop.f32.mrb[6].mxu1  ;;  %647 = vmax.xlane.f32.xlu0 %v646_v6 }
 0x302   :  { %v9589_v8 = vpop.f32.mrb[7].mxu1  ;;  %v649_v9 = vsel %vm645_vm3, %v644_v3, -inf }
 0x305   :  { %650 = vmax.xlane.f32.xlu0 %v649_v9 }
 0x31b   :  { %767 = vrot.lane.b32.xlu0 %v11120_v39, %s10766_s15 }
 0x38e   :  { %v648_v10 = vpop.xlane.xlu0 %647 }
 0x38f   :  { %v652_v11 = vsub.f32 %v643_v61, %v648_v10 }
 0x391   :  { %v654_v12 = vmul.f32 1.442695, %v652_v11 }
 0x392   :  { %v651_v13 = vpop.xlane.xlu0 %650 }
 0x393   :  { %10258 = vpow2.f32 %v654_v12  ;;  %v653_v14 = vsub.f32 %v644_v3, %v651_v13 }
 0x395   :  { %v656_v15 = vmul.f32 1.442695, %v653_v14 }
 0x396   :  { %v768_v25 = vpop.permute.xlu0 %767 }
 0x397   :  { %10260 = vpow2.f32 %v656_v15  ;;  %v773_v31 = vsel %vm550_vm1, %v768_v25, 0 }
 0x39d   :  { %v10259_v16 = vpop.eup %10258 }
 0x39e   :  { %v658_v17 = vsel %vm645_vm3, %v10259_v16, 0.0 }
 0x39f   :  { %659 = vadd.xlane.f32.xlu1 %v658_v17 }
 0x3a1   :  { %v10261_v18 = vpop.eup %10260 }
 0x3a2   :  { %v661_v19 = vsel %vm645_vm3, %v10261_v18, 0.0 }
 0x3a3   :  { %662 = vadd.xlane.f32.xlu1 %v661_v19 }
 0x3b4   :  { %764 = vrot.lane.b32.xlu1 %v11132_v46, %s10766_s15 }
 0x3b8   :  { %816 = vrot.lane.b32.xlu1 %v11134_v47, %s10766_s15 }
 0x42c   :  { %v660_v21 = vpop.xlane.xlu1 %659 }
 0x42d   :  { %10262 = vrcp.f32 %v660_v21 }
 0x430   :  { %v663_v22 = vpop.xlane.xlu1 %662 }
 0x431   :  { %10264 = vrcp.f32 %v663_v22 }
 0x434   :  { %v765_v36 = vpop.permute.xlu1 %764 }
 0x437   :  { %v10263_v23 = vpop.eup %10262 }
 0x438   :  { %v666_v24 = vmul.f32 %v10263_v23, %v10259_v16  ;;  %v817_v37 = vpop.permute.xlu1 %816 }
 0x43a   :  { %v668_v26 = vpack.c.bf16 %v666_v24, %v666_v24 }
 0x43b   :  { %v10265_v30 = vpop.eup %10264 }
 0x43c   :  { %v667_v33 = vmul.f32 %v10265_v30, %v10261_v18  ;;  %9593 = vmatmul.mubr.msk.bf16.vlgmr.msra.gmra.mrb[8].mxu0 %vm645_vm3, %v668_v26 }
 0x43d   :  { %9603 = vmatpush3.bf16.xpose.msra.mxu0 %v773_v31  ;;  %9604 = vmatprep.mubr.msk.bf16.mxu0 %vm10765_vm0, %v10764_v1 }
 0x43e   :  { %v669_v34 = vpack.c.bf16 %v667_v33, %v667_v33  ;;  %9614 = vmatprep.subr.bf16.mxu0 %v10764_v1 }
 0x440   :  { %9599 = vmatmul.mubr.msk.bf16.vlgmr.msra.gmra.mrb[8].mxu1 %vm645_vm3, %v669_v34 }
 0x441   :  { %9609 = vmatpush3.bf16.xpose.msra.mxu1 %v825_v35  ;;  %9610 = vmatprep.mubr.msk.bf16.mxu1 %vm10765_vm0, %v10764_v1 }
 0x442   :  { %9620 = vmatprep.subr.bf16.mxu1 %v10764_v1 }
 0x444   :  { %9605 = vmatmul.mubr.msk.bf16.vlgmr.msra.gmra.mrb[12].mxu0 %vm550_vm1, %v765_v36 }
 0x445   :  { %9616 = vmatprep.mubr.msk.bf16.mxu0 %vm10765_vm0, %v10764_v1 }
 0x448   :  { %9611 = vmatmul.mubr.msk.bf16.vlgmr.msra.gmra.mrb[12].mxu1 %vm550_vm1, %v817_v37 }
 0x449   :  { %9622 = vmatprep.mubr.msk.bf16.mxu1 %vm10765_vm0, %v10764_v1 }
 0x50f   :  { %v11184_v38 = vpop.f32.mrb[8].mxu0 }
 0x510   :  { %v9594_v40 = vpop.f32.mrb[9].mxu0 }
 0x511   :  { %v714_v42 = vpop.f32.mrb[10].mxu0 }
 0x512   :  { %v9595_v43 = vpop.f32.mrb[11].mxu0 }
 0x513   :  { %v11186_v44 = vpop.f32.mrb[8].mxu1 }
 0x514   :  { %v9600_v45 = vpop.f32.mrb[9].mxu1 }
 0x515   :  { %v760_v49 = vpop.f32.mrb[10].mxu1 }
 0x516   :  { %v9601_v50 = vpop.f32.mrb[11].mxu1 }
 0x517   :  { %v809_v51 = vpop.f32.mrb[12].mxu0 }
 0x518   :  { %v867_v52 = vmul.f32 0.35355338, %v809_v51  ;;  %v9606_v53 = vpop.f32.mrb[13].mxu0 }
 0x519   :  { %v812_v54 = vpop.f32.mrb[14].mxu0 }
 0x51a   :  { %v9607_v55 = vpop.f32.mrb[15].mxu0  ;;  %v869_v58 = vsel %vm645_vm3, %v867_v52, -inf }
 0x51b   :  { %v861_v59 = vpop.f32.mrb[12].mxu1  ;;  %870 = vmax.xlane.f32.xlu0 %v869_v58 }
 0x51c   :  { %v868_v60 = vmul.f32 0.35355338, %v861_v59  ;;  %v9612_v61 = vpop.f32.mrb[13].mxu1 }
 0x51d   :  { %v864_v62 = vpop.f32.mrb[14].mxu1 }
 0x51e   :  { %v9613_v63 = vpop.f32.mrb[15].mxu1  ;;  %v872_v2 = vsel %vm645_vm3, %v868_v60, -inf }
 0x51f   :  { %873 = vmax.xlane.f32.xlu1 %v872_v2 }
 0x530   :  { %943 = vrot.lane.b32.xlu1 %v11150_v57, %s10766_s15 }
 0x534   :  { %993 = vrot.lane.b32.xlu1 %v11120_v39, %s10750_s13 }
 0x538   :  { %1043 = vrot.lane.b32.xlu1 %v11122_v41, %s10750_s13 }
 0x53c   :  { %1041 = vrot.lane.b32.xlu1 %v11134_v47, %s10750_s13 }
 0x5a8   :  { %v871_v3 = vpop.xlane.xlu0 %870 }
 0x5a9   :  { %v875_v4 = vsub.f32 %v867_v52, %v871_v3 }
 0x5ab   :  { %v877_v5 = vmul.f32 1.442695, %v875_v4 }
 0x5ac   :  { %v874_v6 = vpop.xlane.xlu1 %873 }
 0x5ad   :  { %10266 = vpow2.f32 %v877_v5  ;;  %v876_v7 = vsub.f32 %v868_v60, %v874_v6 }
 0x5af   :  { %v879_v8 = vmul.f32 1.442695, %v876_v7 }
 0x5b0   :  { %v944_v9 = vpop.permute.xlu1 %943 }
 0x5b1   :  { %10268 = vpow2.f32 %v879_v8  ;;  %v949_v10 = vsel %vm673_vm2, %v944_v9, 0 }
 0x5b2   :  { %9621 = vmatpush3.bf16.msra.mxu1 %v949_v10 }
 0x5b3   :  { %9632 = vmatprep.subr.bf16.mxu1 %v10764_v1 }
 0x5b4   :  { %v994_v20 = vpop.permute.xlu1 %993 }
 0x5b5   :  { %v999_v26 = vsel %vm550_vm1, %v994_v20, 0 }
 0x5b7   :  { %v10267_v11 = vpop.eup %10266 }
 0x5b8   :  { %v881_v12 = vsel %vm645_vm3, %v10267_v11, 0.0  ;;  %v1044_v25 = vpop.permute.xlu1 %1043 }
 0x5b9   :  { %882 = vadd.xlane.f32.xlu0 %v881_v12  ;;  %v1049_v31 = vsel %vm550_vm1, %v1044_v25, 0 }
 0x5bb   :  { %v10269_v13 = vpop.eup %10268 }
 0x5bc   :  { %v884_v14 = vsel %vm645_vm3, %v10269_v13, 0.0  ;;  %v1042_v34 = vpop.permute.xlu1 %1041 }
 0x5bd   :  { %885 = vadd.xlane.f32.xlu0 %v884_v14 }
 0x5d3   :  { %894 = vrot.lane.b32.xlu0 %v11148_v56, %s10766_s15 }
 0x5d7   :  { %991 = vrot.lane.b32.xlu0 %v11132_v46, %s10750_s13 }
 0x646   :  { %v883_v15 = vpop.xlane.xlu0 %882 }
 0x647   :  { %10270 = vrcp.f32 %v883_v15 }
 0x64a   :  { %v886_v16 = vpop.xlane.xlu0 %885 }
 0x64b   :  { %10272 = vrcp.f32 %v886_v16 }
 0x64e   :  { %v895_v17 = vpop.permute.xlu0 %894 }
 0x64f   :  { %v900_v18 = vsel %vm673_vm2, %v895_v17, 0 }
 0x650   :  { %9615 = vmatpush3.bf16.msra.mxu0 %v900_v18 }
 0x651   :  { %v10271_v19 = vpop.eup %10270  ;;  %9626 = vmatprep.subr.bf16.mxu0 %v10764_v1 }
 0x652   :  { %v889_v21 = vmul.f32 %v10271_v19, %v10267_v11  ;;  %v992_v33 = vpop.permute.xlu0 %991 }
 0x654   :  { %v891_v22 = vpack.c.bf16 %v889_v21, %v889_v21 }
 0x655   :  { %v10273_v23 = vpop.eup %10272 }
 0x656   :  { %v890_v24 = vmul.f32 %v10273_v23, %v10269_v13  ;;  %9617 = vmatmul.mubr.msk.bf16.vlgmr.msra.gmra.mrb[16].mxu0 %vm645_vm3, %v891_v22 }
 0x657   :  { %9628 = vmatprep.mubr.msk.bf16.mxu0 %vm10765_vm0, %v10764_v1 }
 0x658   :  { %v892_v30 = vpack.c.bf16 %v890_v24, %v890_v24 }
 0x659   :  { %9627 = vmatpush3.bf16.xpose.msra.mxu0 %v999_v26 }
 0x65a   :  { %9623 = vmatmul.mubr.msk.bf16.vlgmr.msra.gmra.mrb[16].mxu1 %vm645_vm3, %v892_v30  ;;  %9638 = vmatprep.subr.bf16.mxu0 %v10764_v1 }
 0x65b   :  { %9633 = vmatpush3.bf16.xpose.msra.mxu1 %v1049_v31  ;;  %9634 = vmatprep.mubr.msk.bf16.mxu1 %vm10765_vm0, %v10764_v1 }
 0x65c   :  { %9644 = vmatprep.subr.bf16.mxu1 %v10764_v1 }
 0x660   :  { %9629 = vmatmul.mubr.msk.bf16.vlgmr.msra.gmra.mrb[20].mxu0 %vm550_vm1, %v992_v33 }
 0x661   :  { %9640 = vmatprep.mubr.msk.bf16.mxu0 %vm10765_vm0, %v10764_v1 }
 0x662   :  { %9635 = vmatmul.mubr.msk.bf16.vlgmr.msra.gmra.mrb[20].mxu1 %vm550_vm1, %v1042_v34 }
 0x663   :  { %9646 = vmatprep.mubr.msk.bf16.mxu1 %vm10765_vm0, %v10764_v1 }
 0x729   :  { %v11224_v35 = vpop.f32.mrb[16].mxu0 }
 0x72a   :  { %v9618_v36 = vpop.f32.mrb[17].mxu0 }
 0x72b   :  { %v939_v37 = vpop.f32.mrb[18].mxu0 }
 0x72c   :  { %v9619_v40 = vpop.f32.mrb[19].mxu0 }
 0x72d   :  { %v11226_v42 = vpop.f32.mrb[16].mxu1 }
 0x72e   :  { %v9882_v43 = vpack.i.bf16 %v11226_v42, %v11224_v35  ;;  %v9624_v45 = vpop.f32.mrb[17].mxu1 }
 0x72f   :  { %v988_v49 = vpop.f32.mrb[18].mxu1 }
 0x730   :  { %v9625_v50 = vpop.f32.mrb[19].mxu1 }
 0x733   :  { %v1035_v51 = vpop.f32.mrb[20].mxu0 }
 0x734   :  { %v1091_v52 = vmul.f32 0.35355338, %v1035_v51  ;;  %v9630_v53 = vpop.f32.mrb[21].mxu0 }
 0x735   :  { %v1038_v54 = vpop.f32.mrb[22].mxu0  ;;  %v1085_v55 = vpop.f32.mrb[20].mxu1 }
 0x736   :  { %v1092_v58 = vmul.f32 0.35355338, %v1085_v55  ;;  %v9631_v59 = vpop.f32.mrb[23].mxu0  ;;  %v9636_v60 = vpop.f32.mrb[21].mxu1  ;;  %v1093_v61 = vsel %vm645_vm3, %v1091_v52, -inf }
 0x737   :  { %v1088_v62 = vpop.f32.mrb[22].mxu1  ;;  %1094 = vmax.xlane.f32.xlu0 %v1093_v61 }
 0x738   :  { %v9637_v63 = vpop.f32.mrb[23].mxu1  ;;  %v1096_v2 = vsel %vm645_vm3, %v1092_v58, -inf }
 0x739   :  { %1097 = vmax.xlane.f32.xlu1 %v1096_v2 }
 0x74a   :  { %1165 = vrot.lane.b32.xlu1 %v11150_v57, %s10750_s13 }
 0x74e   :  { %1215 = vrot.lane.b32.xlu1 %v11120_v39, %s10767_s5 }
 0x752   :  { %1265 = vrot.lane.b32.xlu1 %v11122_v41, %s10767_s5 }
 0x756   :  { %1263 = vrot.lane.b32.xlu1 %v11134_v47, %s10767_s5 }
 0x7c4   :  { %v1095_v3 = vpop.xlane.xlu0 %1094 }
 0x7c5   :  { %v1099_v4 = vsub.f32 %v1091_v52, %v1095_v3 }
 0x7c6   :  { %v1098_v5 = vpop.xlane.xlu1 %1097 }
 0x7c7   :  { %v1101_v6 = vmul.f32 1.442695, %v1099_v4  ;;  %v1100_v7 = vsub.f32 %v1092_v58, %v1098_v5 }
 0x7c9   :  { %10274 = vpow2.f32 %v1101_v6  ;;  %v1103_v8 = vmul.f32 1.442695, %v1100_v7 }
 0x7ca   :  { %v1166_v9 = vpop.permute.xlu1 %1165 }
 0x7cb   :  { %10276 = vpow2.f32 %v1103_v8  ;;  %v1171_v10 = vsel %vm673_vm2, %v1166_v9, 0 }
 0x7cc   :  { %9645 = vmatpush3.bf16.msra.mxu1 %v1171_v10 }
 0x7cd   :  { %9656 = vmatprep.subr.bf16.mxu1 %v10764_v1 }
 0x7ce   :  { %v1216_v17 = vpop.permute.xlu1 %1215 }
 0x7d2   :  { %v1266_v22 = vpop.permute.xlu1 %1265 }
 0x7d3   :  { %v10275_v39 = vpop.eup %10274  ;;  %v1271_v24 = vsel %vm550_vm1, %v1266_v22, 0  ;;  %v9951_v22 = vld [vmem:[#allocation10 + $0x30] sm:$0xff]  }
 0x7d4   :  { %v1105_v41 = vsel %vm645_vm3, %v10275_v39, 0.0 }
 0x7d5   :  { %v10277_v11 = vpop.eup %10276  ;;  %1106 = vadd.xlane.f32.xlu0 %v1105_v41 }
 0x7d6   :  { %v1108_v47 = vsel %vm645_vm3, %v10277_v11, 0.0  ;;  %v1264_v26 = vpop.permute.xlu1 %1263 }
 0x7d9   :  { %1109 = vadd.xlane.f32.xlu0 %v1108_v47 }
 0x7ef   :  { %1117 = vrot.lane.b32.xlu0 %v11148_v56, %s10750_s13 }
 0x7f3   :  { %1213 = vrot.lane.b32.xlu0 %v11132_v46, %s10767_s5  ;;  %v1221_v46 = vsel %vm550_vm1, %v1216_v17, 0  ;;  %v9946_v17 = vld [vmem:[#allocation10 + $0x8] sm:$0xff]  }
 0x862   :  { %v1107_v12 = vpop.xlane.xlu0 %1106 }
 0x863   :  { %10278 = vrcp.f32 %v1107_v12 }
 0x866   :  { %v1110_v13 = vpop.xlane.xlu0 %1109 }
 0x867   :  { %10280 = vrcp.f32 %v1110_v13 }
 0x86a   :  { %v1118_v14 = vpop.permute.xlu0 %1117 }
 0x86b   :  { %v1123_v15 = vsel %vm673_vm2, %v1118_v14, 0 }
 0x86c   :  { %9639 = vmatpush3.bf16.msra.mxu0 %v1123_v15 }
 0x86d   :  { %v10279_v16 = vpop.eup %10278  ;;  %9650 = vmatprep.subr.bf16.mxu0 %v10764_v1 }
 0x86e   :  { %v1113_v18 = vmul.f32 %v10279_v16, %v10275_v39  ;;  %v1214_v25 = vpop.permute.xlu0 %1213  ;;  %v9945_v16 = vld [vmem:[#allocation10] sm:$0xff]  }
 0x870   :  { %v1115_v19 = vpack.c.bf16 %v1113_v18, %v1113_v18  ;;  %v9947_v18 = vld [vmem:[#allocation10 + $0x10] sm:$0xff]  }
 0x871   :  { %v10281_v20 = vpop.eup %10280 }
 0x872   :  { %v1114_v21 = vmul.f32 %v10281_v20, %v10277_v11  ;;  %9641 = vmatmul.mubr.msk.bf16.vlgmr.msra.gmra.mrb[24].mxu0 %vm645_vm3, %v1115_v19  ;;  %v9948_v19 = vld [vmem:[#allocation10 + $0x18] sm:$0xff]   ;;  %v9949_v20 = vld [vmem:[#allocation10 + $0x20] sm:$0xff]  }
 0x873   :  { %9652 = vmatprep.mubr.msk.bf16.mxu0 %vm10765_vm0, %v10764_v1 }
 0x874   :  { %v1116_v23 = vpack.c.bf16 %v1114_v21, %v1114_v21  ;;  %v9950_v21 = vld [vmem:[#allocation10 + $0x28] sm:$0xff]  }
 0x875   :  { %9651 = vmatpush3.bf16.xpose.msra.mxu0 %v1221_v46  ;;  %v9952_v46 = vld [vmem:[#allocation10 + $0x38] sm:$0xff]  }
 0x876   :  { %9647 = vmatmul.mubr.msk.bf16.vlgmr.msra.gmra.mrb[24].mxu1 %vm645_vm3, %v1116_v23  ;;  %9662 = vmatprep.subr.bf16.mxu0 %v10764_v1 }
 0x877   :  { %9657 = vmatpush3.bf16.xpose.msra.mxu1 %v1271_v24  ;;  %9658 = vmatprep.mubr.msk.bf16.mxu1 %vm10765_vm0, %v10764_v1 }
 0x878   :  { %9668 = vmatprep.subr.bf16.mxu1 %v10764_v1 }
 0x87c   :  { %9653 = vmatmul.mubr.msk.bf16.vlgmr.msra.gmra.mrb[28].mxu0 %vm550_vm1, %v1214_v25 }
 0x87d   :  { %9664 = vmatprep.mubr.msk.bf16.mxu0 %vm10765_vm0, %v10764_v1 }
 0x87e   :  { %9659 = vmatmul.mubr.msk.bf16.vlgmr.msra.gmra.mrb[28].mxu1 %vm550_vm1, %v1264_v26 }
 0x87f   :  { %9670 = vmatprep.mubr.msk.bf16.mxu1 %vm10765_vm0, %v10764_v1 }
 0x945   :  { %v1159_v30 = vpop.f32.mrb[24].mxu0 }
 0x946   :  { %v9642_v31 = vpop.f32.mrb[25].mxu0 }
 0x947   :  { %v1162_v33 = vpop.f32.mrb[26].mxu0 }
 0x948   :  { %v9643_v34 = vpop.f32.mrb[27].mxu0 }
 0x949   :  { %v1207_v36 = vpop.f32.mrb[24].mxu1 }
 0x94a   :  { %v9887_v37 = vpack.i.bf16 %v1207_v36, %v1159_v30  ;;  %v9648_v40 = vpop.f32.mrb[25].mxu1 }
 0x94b   :  { %v1210_v45 = vpop.f32.mrb[26].mxu1 }
 0x94c   :  { %v9649_v49 = vpop.f32.mrb[27].mxu1 }
 0x94f   :  { %v1257_v50 = vpop.f32.mrb[28].mxu0 }
 0x950   :  { %v1313_v51 = vmul.f32 0.35355338, %v1257_v50  ;;  %v9654_v52 = vpop.f32.mrb[29].mxu0 }
 0x951   :  { %v1260_v53 = vpop.f32.mrb[30].mxu0  ;;  %v1307_v54 = vpop.f32.mrb[28].mxu1 }
 0x952   :  { %v1314_v55 = vmul.f32 0.35355338, %v1307_v54  ;;  %v9655_v58 = vpop.f32.mrb[31].mxu0  ;;  %v9660_v59 = vpop.f32.mrb[29].mxu1  ;;  %v1315_v60 = vsel %vm645_vm3, %v1313_v51, -inf }
 0x953   :  { %v1310_v61 = vpop.f32.mrb[30].mxu1  ;;  %1316 = vmax.xlane.f32.xlu0 %v1315_v60 }
 0x954   :  { %v9661_v62 = vpop.f32.mrb[31].mxu1  ;;  %v1318_v63 = vsel %vm645_vm3, %v1314_v55, -inf }
 0x955   :  { %1319 = vmax.xlane.f32.xlu1 %v1318_v63 }
 0x966   :  { %1387 = vrot.lane.b32.xlu1 %v11150_v57, %s10767_s5 }
 0x96a   :  { %9883 = vrot.lane.b32.xlu1 %v9882_v43, %s10767_s5 }
 0x96e   :  { %9888 = vrot.lane.b32.xlu1 %v9887_v37, %s10750_s13 }
 0x9e0   :  { %v1317_v2 = vpop.xlane.xlu0 %1316 }
 0x9e1   :  { %v1321_v3 = vsub.f32 %v1313_v51, %v1317_v2  ;;  %v269_v2 = vand.u32 127, %v268_v27 }
 0x9e2   :  { %v1320_v4 = vpop.xlane.xlu1 %1319 }
 0x9e3   :  { %v1323_v5 = vmul.f32 1.442695, %v1321_v3  ;;  %v1322_v6 = vsub.f32 %v1314_v55, %v1320_v4  ;;  %vm270_vm6 = vcmp.lt.s32.totalorder %v269_v2, 32  ;;  %v10342_v3 = vld [vmem:[#allocation2] sm:$0xff]   ;;  %v1691_v2 = vld [vmem:[#allocation13 + $0x200] sm:$0xff] }
 0x9e5   :  { %10282 = vpow2.f32 %v1323_v5  ;;  %v1325_v7 = vmul.f32 1.442695, %v1322_v6 }
 0x9e6   :  { %v1388_v8 = vpop.permute.xlu1 %1387 }
 0x9e7   :  { %10284 = vpow2.f32 %v1325_v7  ;;  %v1393_v9 = vsel %vm673_vm2, %v1388_v8, 0  ;;  %v276_v7 = vunpack.c.h.bf16 %v10342_v3  ;;  %v11306_v8 = vsel %vm270_vm6, 1.0, %v10764_v1 }
 0x9e8   :  { %9669 = vmatpush3.bf16.msra.mxu1 %v1393_v9 }
 0x9ea   :  { %v9884_v37 = vpop.permute.xlu1 %9883 }
 0x9eb   :  { %v9886_v45 = vunpack.i.h.bf16 %v9884_v37  ;;  %v9885_v49 = vunpack.i.l.bf16 %v9884_v37  ;;  %v1659_v37 = vld [vmem:[#allocation13 + $0x100] sm:$0xff] }
 0x9ed   :  { %v1460_v53 = vsel %vm550_vm1, %v11186_v44, %v9886_v45  ;;  %v1459_v54 = vsel %vm550_vm1, %v11184_v38, %v9885_v49  ;;  %v8508_v44 = vld [vmem:[#allocation11] ss:$0 sm:$0xff]  ;;  %v275_v38 = vunpack.c.l.bf16 %v10342_v3  ;;  %v1660_v45 = vld [vmem:[#allocation13 + $0x108] sm:$0xff] }
 0x9ee   :  { %v9889_v40 = vpop.permute.xlu1 %9888  ;;  %v1692_v3 = vld [vmem:[#allocation13 + $0x208] sm:$0xff] }
 0x9ef   :  { %v10283_v57 = vpop.eup %10282  ;;  %v9891_v50 = vunpack.i.h.bf16 %v9889_v40  ;;  %v9890_v51 = vunpack.i.l.bf16 %v9889_v40  ;;  %v1667_v40 = vld [vmem:[#allocation13 + $0x140] sm:$0xff] }
 0x9f0   :  { %v1327_v10 = vsel %vm645_vm3, %v10283_v57, 0.0  ;;  %v8552_v49 = vcombine.high %v1659_v37, %v1667_v40 }
 0x9f1   :  { %v10285_v39 = vpop.eup %10284  ;;  %1328 = vadd.xlane.f32.xlu0 %v1327_v10  ;;  %v1463_v59 = vsel %vm1461_vm4, %v1460_v53, %v9891_v50  ;;  %v1462_v60 = vsel %vm1461_vm4, %v1459_v54, %v9890_v51  ;;  %v1668_v50 = vld [vmem:[#allocation13 + $0x148] sm:$0xff]  ;;  %v8551_v51 = vcombine.low %v1659_v37, %v1667_v40  ;;  %v1675_v54 = vld [vmem:[#allocation13 + $0x180] sm:$0xff] }
 0x9f2   :  { %v1330_v35 = vsel %vm645_vm3, %v10285_v39, 0.0  ;;  %v8554_v53 = vcombine.high %v1660_v45, %v1668_v50 }
 0x9f5   :  { %1331 = vadd.xlane.f32.xlu0 %v1330_v35 }
 0xa0b   :  { %1339 = vrot.lane.b32.xlu0 %v11148_v56, %s10767_s5 }
 0xa7e   :  { %v1329_v42 = vpop.xlane.xlu0 %1328 }
 0xa7f   :  { %10286 = vrcp.f32 %v1329_v42 }
 0xa82   :  { %v1332_v43 = vpop.xlane.xlu0 %1331 }
 0xa83   :  { %10288 = vrcp.f32 %v1332_v43  ;;  %v1627_v43 = vld [vmem:[#allocation13] sm:$0xff] }
 0xa86   :  { %v1340_v41 = vpop.permute.xlu0 %1339 }
 0xa87   :  { %v1345_v11 = vsel %vm673_vm2, %v1340_v41, 0  ;;  %v1635_v41 = vld [vmem:[#allocation13 + $0x40] sm:$0xff] }
 0xa88   :  { %9663 = vmatpush3.bf16.msra.mxu0 %v1345_v11  ;;  %v1628_v11 = vld [vmem:[#allocation13 + $0x8] sm:$0xff] }
 0xa89   :  { %v10287_v47 = vpop.eup %10286  ;;  %9674 = vmatprep.subr.bf16.mxu0 %v10764_v1 }
 0xa8a   :  { %v1335_v12 = vmul.f32 %v10287_v47, %v10283_v57  ;;  %v8519_v47 = vcombine.low %v1627_v43, %v1635_v41 }
 0xa8c   :  { %v1337_v13 = vpack.c.bf16 %v1335_v12, %v1335_v12  ;;  %v8520_v12 = vcombine.high %v1627_v43, %v1635_v41  ;;  %v1723_v41 = vld [vmem:[#allocation13 + $0x300] sm:$0xff] }
 0xa8d   :  { %v10289_v14 = vpop.eup %10288 }
 0xa8e   :  { %v1336_v15 = vmul.f32 %v10289_v14, %v10285_v39  ;;  %9665 = vmatmul.mubr.msk.bf16.vlgmr.msra.gmra.mrb[32].mxu0 %vm645_vm3, %v1337_v13  ;;  %v1636_v13 = vld [vmem:[#allocation13 + $0x48] sm:$0xff]  ;;  %v1643_v14 = vld [vmem:[#allocation13 + $0x80] sm:$0xff]  ;;  %2479 = vmatprep.subr.bf16.mxu1 %v8520_v12 }
 0xa8f   :  { %9690 = vmatprep.mubr.msk.bf16.mxu0 %vm10765_vm0, %v10764_v1  ;;  %9675 = vmatpush3.bf16.msra.mxu0 %v9945_v16  ;;  %v8522_v16 = vcombine.high %v1628_v11, %v1636_v13 }
 0xa90   :  { %v1338_v56 = vpack.c.bf16 %v1336_v15, %v1336_v15  ;;  %9676 = vmatprep.subr.bf16.mxu0 %v10764_v1  ;;  %v1651_v15 = vld [vmem:[#allocation13 + $0xc0] sm:$0xff] }
 0xa92   :  { %9671 = vmatmul.mubr.msk.bf16.vlgmr.msra.gmra.mrb[32].mxu1 %vm645_vm3, %v1338_v56  ;;  %v8521_v56 = vcombine.low %v1628_v11, %v1636_v13  ;;  %v1731_v11 = vld [vmem:[#allocation13 + $0x340] sm:$0xff]  ;;  %v1732_v13 = vld [vmem:[#allocation13 + $0x348] sm:$0xff] }
 0xa93   :  { %2511 = vmatprep.mubr.bf16.mxu1 %v10763_v0  ;;  %9677 = vmatpush3.bf16.msra.mxu0 %v9946_v17  ;;  %v8536_v17 = vcombine.high %v1643_v14, %v1651_v15  ;;  %v8616_v12 = vcombine.high %v1723_v41, %v1731_v11 }
 0xa94   :  { %9678 = vmatprep.subr.bf16.mxu0 %v10764_v1  ;;  %2480 = vmatpush1.bf16.msra.mxu1 %v8519_v47  ;;  %v1724_v47 = vld [vmem:[#allocation13 + $0x308] sm:$0xff] }
 0xa95   :  { %2481 = vmatprep.subr.bf16.mxu1 %v8536_v17  ;;  %v1747_v17 = vld [vmem:[#allocation13 + $0x3c0] sm:$0xff] }
 0xa97   :  { %9679 = vmatpush3.bf16.msra.mxu0 %v9947_v18  ;;  %v1644_v18 = vld [vmem:[#allocation13 + $0x88] sm:$0xff] }
 0xa98   :  { %9680 = vmatprep.subr.bf16.mxu0 %v10764_v1 }
 0xa9b   :  { %9681 = vmatpush3.bf16.msra.mxu0 %v9948_v19  ;;  %v1652_v19 = vld [vmem:[#allocation13 + $0xc8] sm:$0xff] }
 0xa9c   :  { %9682 = vmatprep.subr.bf16.mxu0 %v10764_v1 }
 0xa9f   :  { %9683 = vmatpush3.bf16.msra.mxu0 %v9949_v20  ;;  %v8538_v20 = vcombine.high %v1644_v18, %v1652_v19 }
 0xaa0   :  { %9684 = vmatprep.subr.bf16.mxu0 %v10764_v1 }
 0xaa3   :  { %9685 = vmatpush3.bf16.msra.mxu0 %v9950_v21  ;;  %v8535_v21 = vcombine.low %v1643_v14, %v1651_v15  ;;  %v8615_v14 = vcombine.low %v1723_v41, %v1731_v11  ;;  %v8617_v15 = vcombine.low %v1724_v47, %v1732_v13  ;;  %v1678_v41 = vld [vmem:[#allocation13 + $0x198] sm:$0xff] }
 0xaa4   :  { %9686 = vmatprep.subr.bf16.mxu0 %v10764_v1  ;;  %v1686_v11 = vld [vmem:[#allocation13 + $0x1d8] sm:$0xff] }
 0xaa5   :  { %2482 = vmatpush1.bf16.msra.mxu1 %v8535_v21 }
 0xaa6   :  { %2483 = vmatprep.subr.bf16.mxu1 %v8552_v49 }
 0xaa7   :  { %9687 = vmatpush3.bf16.msra.mxu0 %v9951_v22  ;;  %v8537_v22 = vcombine.low %v1644_v18, %v1652_v19  ;;  %v1740_v18 = vld [vmem:[#allocation13 + $0x388] sm:$0xff] }
 0xaa8   :  { %9688 = vmatprep.subr.bf16.mxu0 %v10764_v1 }
 0xaa9   :  { %2484 = vmatpush1.bf16.msra.mxu1 %v8551_v51 }
 0xaab   :  { %9689 = vmatpush3.bf16.msra.mxu0 %v9952_v46 }
 0xaac   :  { %2522 = vmatprep.subr.bf16.mxu0 %v8522_v16  ;;  %v1739_v16 = vld [vmem:[#allocation13 + $0x380] sm:$0xff] }
 0xaad   :  { %v8632_v19 = vcombine.high %v1739_v16, %v1747_v17  ;;  %v8631_v21 = vcombine.low %v1739_v16, %v1747_v17  ;;  %v1694_v16 = vld [vmem:[#allocation13 + $0x218] sm:$0xff] }
 0xaae   :  { %v1702_v17 = vld [vmem:[#allocation13 + $0x258] sm:$0xff] }
 0xb61   :  { %v1381_v23 = vpop.f32.mrb[32].mxu0 }
 0xb62   :  { %v9666_v24 = vpop.f32.mrb[33].mxu0 }
 0xb63   :  { %v1384_v25 = vpop.f32.mrb[34].mxu0 }
 0xb64   :  { %v9667_v26 = vpop.f32.mrb[35].mxu0 }
 0xb65   :  { %v1429_v30 = vpop.f32.mrb[32].mxu1 }
 0xb66   :  { %v9892_v31 = vpack.i.bf16 %v1429_v30, %v1381_v23  ;;  %v9672_v33 = vpop.f32.mrb[33].mxu1 }
 0xb67   :  { %v1432_v34 = vpop.f32.mrb[34].mxu1 }
 0xb68   :  { %v9673_v36 = vpop.f32.mrb[35].mxu1  ;;  %9893 = vrot.lane.b32.xlu0 %v9892_v31, %s10766_s15 }
 0xbda   :  { %v9894_v52 = vpop.permute.xlu0 %9893 }
 0xbdb   :  { %v9896_v55 = vunpack.i.h.bf16 %v9894_v52  ;;  %v9895_v58 = vunpack.i.l.bf16 %v9894_v52  ;;  %v8553_v52 = vcombine.low %v1660_v45, %v1668_v50 }
 0xbdd   :  { %v1466_v61 = vsel %vm1464_vm5, %v1463_v59, %v9896_v55  ;;  %v1465_v62 = vsel %vm1464_vm5, %v1462_v60, %v9895_v58  ;;  %v1683_v55 = vld [vmem:[#allocation13 + $0x1c0] sm:$0xff]  ;;  %v1676_v58 = vld [vmem:[#allocation13 + $0x188] sm:$0xff] }
 0xbde   :  { %v1467_v63 = vpack.c.bf16 %v1466_v61, %v1465_v62  ;;  %v8568_v59 = vcombine.high %v1675_v54, %v1683_v55  ;;  %v1684_v60 = vld [vmem:[#allocation13 + $0x1c8] sm:$0xff]  ;;  %v8567_v61 = vcombine.low %v1675_v54, %v1683_v55  ;;  %v8517_v55 = vld [vmem:[#allocation19] ss:$0 sm:$0xff] }
 0xbdf   :  { %v8569_v62 = vcombine.low %v1676_v58, %v1684_v60 }
 0xbe0   :  { %9691 = vmatmul.mubr.bf16.vlgmr.msra.gmra.mrb[36].mxu0 %v1467_v63  ;;  %v8570_v63 = vcombine.high %v1676_v58, %v1684_v60  ;;  %2485 = vmatprep.subr.bf16.mxu1 %v8568_v59 }
 0xbe1   :  { %2554 = vmatprep.mubr.bf16.mxu0 %v10763_v0  ;;  %2523 = vmatpush1.bf16.msra.mxu0 %v8521_v56  ;;  %v8618_v56 = vcombine.high %v1724_v47, %v1732_v13 }
 0xbe2   :  { %2524 = vmatprep.subr.bf16.mxu0 %v8538_v20  ;;  %2486 = vmatpush1.bf16.msra.mxu1 %v8567_v61  ;;  %v1748_v20 = vld [vmem:[#allocation13 + $0x3c8] sm:$0xff]  ;;  %v8518_v61 = vld [vmem:[#allocation20] ss:$0 sm:$0xff] }
 0xbe5   :  { %2525 = vmatpush1.bf16.msra.mxu0 %v8537_v22  ;;  %v8633_v22 = vcombine.low %v1740_v18, %v1748_v20 }
 0xbe6   :  { %2526 = vmatprep.subr.bf16.mxu0 %v8554_v53 }
 0xbe9   :  { %2527 = vmatpush1.bf16.msra.mxu0 %v8553_v52 }
 0xbea   :  { %2528 = vmatprep.subr.bf16.mxu0 %v8570_v63  ;;  %v1645_v63 = vld [vmem:[#allocation13 + $0x90] sm:$0xff] }
 0xbed   :  { %2529 = vmatpush1.bf16.msra.mxu0 %v8569_v62 }
 0xcb3   :  { %v1573_v4 = vpop.f32.mrb[36].mxu0 }
 0xcb4   :  { %v1574_v5 = vadd.f32 %v8508_v44, %v1573_v4  ;;  %v9692_v6 = vpop.f32.mrb[37].mxu0  ;;  %v1700_v4 = vld [vmem:[#allocation13 + $0x248] sm:$0xff] }
 0xcb5   :  { %v1576_v9 = vpop.f32.mrb[38].mxu0  ;;  %v8585_v6 = vcombine.low %v1692_v3, %v1700_v4 }
 0xcb6   :  { %v1580_v57 = vadd.f32 %v1574_v5, %v275_v38  ;;  %v1577_v10 = vadd.f32 %v8508_v44, %v1576_v9  ;;  %v9693_v39 = vpop.f32.mrb[39].mxu0  ;;  %v1699_v44 = vld [vmem:[#allocation13 + $0x240] sm:$0xff] }
 0xcb7   :  { %v8584_v38 = vcombine.high %v1691_v2, %v1699_v44  ;;  %v8583_v5 = vcombine.low %v1691_v2, %v1699_v44  ;;  %v1707_v9 = vld [vmem:[#allocation13 + $0x280] sm:$0xff]  ;;  %v1653_v2 = vld [vmem:[#allocation13 + $0xd0] sm:$0xff]  ;;  %v1646_v44 = vld [vmem:[#allocation13 + $0x98] sm:$0xff] }
 0xcb8   :  { %v1581_v35 = vadd.f32 %v1577_v10, %v276_v7  ;;  %v1584_v42 = vmul.f32 %v11306_v8, %v1580_v57  ;;  %v8586_v7 = vcombine.high %v1692_v3, %v1700_v4  ;;  %v1708_v10 = vld [vmem:[#allocation13 + $0x288] sm:$0xff]  ;;  %v1654_v3 = vld [vmem:[#allocation13 + $0xd8] sm:$0xff] }
 0xcb9   :  { %2487 = vmatprep.subr.bf16.mxu1 %v8584_v38 }
 0xcba   :  { %1586 = vadd.xlane.f32.xlu1 %v1584_v42  ;;  %v1585_v27 = vmul.f32 %v11306_v8, %v1581_v35  ;;  %2530 = vmatprep.subr.bf16.mxu0 %v8586_v7  ;;  %v1661_v7 = vld [vmem:[#allocation13 + $0x110] sm:$0xff] }
 0xcbb   :  { %2488 = vmatpush1.bf16.msra.mxu1 %v8583_v5  ;;  %2531 = vmatpush1.bf16.msra.mxu0 %v8585_v6  ;;  %v8542_v6 = vcombine.high %v1646_v44, %v1654_v3 }
 0xcbc   :  { %1588 = vadd.xlane.f32.xlu0 %v1585_v27 }
 0xd47   :  { %v1587_v46 = vpop.xlane.xlu1 %1586 }
 0xd48   :  { %v1590_v23 = vmul.f32 0.03125, %v1587_v46  ;;  %v8634_v46 = vcombine.high %v1740_v18, %v1748_v20 }
 0xd49   :  { %v1589_v24 = vpop.xlane.xlu0 %1588 }
 0xd4a   :  { %v1592_v25 = vsub.f32 %v1580_v57, %v1590_v23  ;;  %v1591_v26 = vmul.f32 0.03125, %v1589_v24  ;;  %v1715_v57 = vld [vmem:[#allocation13 + $0x2c0] sm:$0xff]  ;;  %v1629_v23 = vld [vmem:[#allocation13 + $0x10] sm:$0xff] }
 0xd4b   :  { %v8600_v39 = vcombine.high %v1707_v9, %v1715_v57  ;;  %v8599_v42 = vcombine.low %v1707_v9, %v1715_v57  ;;  %v1637_v24 = vld [vmem:[#allocation13 + $0x50] sm:$0xff]  ;;  %v1662_v57 = vld [vmem:[#allocation13 + $0x118] sm:$0xff] }
 0xd4c   :  { %v1593_v30 = vsub.f32 %v1581_v35, %v1591_v26  ;;  %v11311_v31 = vmul.f32 %v11306_v8, %v1592_v25  ;;  %v1716_v35 = vld [vmem:[#allocation13 + $0x2c8] sm:$0xff]  ;;  %v1630_v25 = vld [vmem:[#allocation13 + $0x18] sm:$0xff]  ;;  %v8523_v26 = vcombine.low %v1629_v23, %v1637_v24  ;;  %v1669_v9 = vld [vmem:[#allocation13 + $0x150] sm:$0xff] }
 0xd4d   :  { %v8601_v27 = vcombine.low %v1708_v10, %v1716_v35  ;;  %v8602_v43 = vcombine.high %v1708_v10, %v1716_v35  ;;  %2489 = vmatprep.subr.bf16.mxu1 %v8600_v39  ;;  %v8539_v10 = vcombine.low %v1645_v63, %v1653_v2  ;;  %v8541_v39 = vcombine.low %v1646_v44, %v1654_v3  ;;  %v1632_v44 = vld [vmem:[#allocation13 + $0x28] sm:$0xff] }
 0xd4e   :  { %v1596_v33 = vmul.f32 %v11311_v31, %v11311_v31  ;;  %v11316_v34 = vmul.f32 %v11306_v8, %v1593_v30  ;;  %2490 = vmatpush1.bf16.msra.mxu1 %v8599_v42  ;;  %v8524_v30 = vcombine.high %v1629_v23, %v1637_v24  ;;  %v8556_v35 = vcombine.high %v1661_v7, %v1669_v9  ;;  %v1710_v23 = vld [vmem:[#allocation13 + $0x298] sm:$0xff]  ;;  %v1640_v3 = vld [vmem:[#allocation13 + $0x68] sm:$0xff] }
 0xd4f   :  { %2532 = vmatprep.subr.bf16.mxu0 %v8602_v43  ;;  %2491 = vmatprep.subr.bf16.mxu1 %v8616_v12  ;;  %v1685_v43 = vld [vmem:[#allocation13 + $0x1d0] sm:$0xff]  ;;  %v8555_v47 = vcombine.low %v1661_v7, %v1669_v9  ;;  %v1718_v24 = vld [vmem:[#allocation13 + $0x2d8] sm:$0xff]  ;;  %v8530_v9 = vcombine.high %v1632_v44, %v1640_v3 }
 0xd50   :  { %1598 = vadd.xlane.f32.xlu0 %v1596_v33  ;;  %v1597_v36 = vmul.f32 %v11316_v34, %v11316_v34  ;;  %2533 = vmatpush1.bf16.msra.mxu0 %v8601_v27  ;;  %v1638_v33 = vld [vmem:[#allocation13 + $0x58] sm:$0xff]  ;;  %v1677_v27 = vld [vmem:[#allocation13 + $0x190] sm:$0xff] }
 0xd51   :  { %2534 = vmatprep.subr.bf16.mxu0 %v8618_v56  ;;  %v8526_v37 = vcombine.high %v1630_v25, %v1638_v33  ;;  %v8572_v13 = vcombine.high %v1677_v27, %v1685_v43  ;;  %v1701_v56 = vld [vmem:[#allocation13 + $0x250] sm:$0xff]  ;;  %v8571_v18 = vcombine.low %v1677_v27, %v1685_v43 }
 0xd52   :  { %2492 = vmatpush1.bf16.msra.mxu1 %v8615_v14  ;;  %v8574_v14 = vcombine.high %v1678_v41, %v1686_v11 }
 0xd53   :  { %2493 = vmatprep.subr.bf16.mxu1 %v8632_v19  ;;  %v8573_v19 = vcombine.low %v1678_v41, %v1686_v11  ;;  %v1663_v41 = vld [vmem:[#allocation13 + $0x120] sm:$0xff] }
 0xd54   :  { %1600 = vadd.xlane.f32.xlu0 %v1597_v36  ;;  %2535 = vmatpush1.bf16.msra.mxu0 %v8617_v15  ;;  %v8525_v36 = vcombine.low %v1630_v25, %v1638_v33  ;;  %v1693_v15 = vld [vmem:[#allocation13 + $0x210] sm:$0xff]  ;;  %v8606_v33 = vcombine.high %v1710_v23, %v1718_v24  ;;  %v1671_v11 = vld [vmem:[#allocation13 + $0x160] sm:$0xff] }
 0xd55   :  { %2536 = vmatprep.subr.bf16.mxu0 %v8634_v46  ;;  %v8588_v20 = vcombine.high %v1693_v15, %v1701_v56  ;;  %v1717_v46 = vld [vmem:[#allocation13 + $0x2d0] sm:$0xff]  ;;  %v8587_v25 = vcombine.low %v1693_v15, %v1701_v56  ;;  %v8560_v15 = vcombine.high %v1663_v41, %v1671_v11 }
 0xd56   :  { %2494 = vmatpush1.bf16.msra.mxu1 %v8631_v21  ;;  %v8590_v21 = vcombine.high %v1694_v16, %v1702_v17 }
 0xd57   :  { %2565 = vmatprep.subr.bf16.mxu1 %v8524_v30 }
 0xd58   :  { %2537 = vmatpush1.bf16.msra.mxu0 %v8633_v22  ;;  %v1709_v22 = vld [vmem:[#allocation13 + $0x290] sm:$0xff] }
 0xd59   :  { %2608 = vmatprep.subr.bf16.mxu0 %v8526_v37  ;;  %v8604_v30 = vcombine.high %v1709_v22, %v1717_v46  ;;  %v1733_v37 = vld [vmem:[#allocation13 + $0x350] sm:$0xff] }
 0xddd   :  { %v1599_v40 = vpop.xlane.xlu0 %1598 }
 0xdde   :  { %v1602_v45 = vmul.f32 0.03125, %v1599_v40  ;;  %v1726_v40 = vld [vmem:[#allocation13 + $0x318] sm:$0xff] }
 0xde0   :  { %v1604_v49 = vadd.f32 1e-05, %v1602_v45  ;;  %v1734_v45 = vld [vmem:[#allocation13 + $0x358] sm:$0xff] }
 0xde1   :  { %v1601_v50 = vpop.xlane.xlu0 %1600 }
 0xde2   :  { %10290 = vrsqrt.f32 %v1604_v49  ;;  %v1603_v51 = vmul.f32 0.03125, %v1601_v50  ;;  %v8603_v49 = vcombine.low %v1709_v22, %v1717_v46  ;;  %v8605_v50 = vcombine.low %v1710_v23, %v1718_v24  ;;  %v1695_v23 = vld [vmem:[#allocation13 + $0x220] sm:$0xff] }
 0xde3   :  { %v1703_v24 = vld [vmem:[#allocation13 + $0x260] sm:$0xff] }
 0xde4   :  { %v1605_v52 = vadd.f32 1e-05, %v1603_v51 }
 0xde6   :  { %10292 = vrsqrt.f32 %v1605_v52  ;;  %v8622_v52 = vcombine.high %v1726_v40, %v1734_v45 }
 0xdec   :  { %v10291_v53 = vpop.eup %10290 }
 0xded   :  { %v1608_v54 = vmul.f32 %v10291_v53, %v11311_v31  ;;  %v8540_v31 = vcombine.high %v1645_v63, %v1653_v2  ;;  %v1741_v53 = vld [vmem:[#allocation13 + $0x390] sm:$0xff]  ;;  %v1631_v63 = vld [vmem:[#allocation13 + $0x20] sm:$0xff] }
 0xdee   :  { %v1639_v2 = vld [vmem:[#allocation13 + $0x60] sm:$0xff] }
 0xdef   :  { %v1616_v59 = vmul.f32 %v8517_v55, %v1608_v54  ;;  %v1749_v54 = vld [vmem:[#allocation13 + $0x3d0] sm:$0xff]  ;;  %v8528_v7 = vcombine.high %v1631_v63, %v1639_v2 }
 0xdf0   :  { %v10293_v58 = vpop.eup %10292 }
 0xdf1   :  { %v1609_v60 = vmul.f32 %v10293_v58, %v11316_v34  ;;  %v11322_v38 = vadd.f32 %v8518_v61, %v1616_v59  ;;  %v1670_v34 = vld [vmem:[#allocation13 + $0x158] sm:$0xff] }
 0xdf2   :  { %v8558_v42 = vcombine.high %v1662_v57, %v1670_v34  ;;  %v8557_v12 = vcombine.low %v1662_v57, %v1670_v34  ;;  %v1750_v58 = vld [vmem:[#allocation13 + $0x3d8] sm:$0xff]  ;;  %v1647_v57 = vld [vmem:[#allocation13 + $0xa0] sm:$0xff] }
 0xdf3   :  { %v1617_v62 = vmul.f32 %v8517_v55, %v1609_v60  ;;  %v1742_v55 = vld [vmem:[#allocation13 + $0x398] sm:$0xff]  ;;  %v8621_v60 = vcombine.low %v1726_v40, %v1734_v45  ;;  %v1655_v34 = vld [vmem:[#allocation13 + $0xe0] sm:$0xff] }
 0xdf4   :  { %v8544_v27 = vcombine.high %v1647_v57, %v1655_v34  ;;  %v1711_v40 = vld [vmem:[#allocation13 + $0x2a0] sm:$0xff] }
 0xdf5   :  { %v11324_v4 = vadd.f32 %v8518_v61, %v1617_v62  ;;  %v8636_v61 = vcombine.high %v1741_v53, %v1749_v54  ;;  %v8638_v62 = vcombine.high %v1742_v55, %v1750_v58  ;;  %v1719_v45 = vld [vmem:[#allocation13 + $0x2e0] sm:$0xff] }
 0xdf7   :  { %v11328_v5 = vpack.c.bf16 %v11324_v4, %v11322_v38 }
 0xdf9   :  { %2512 = vmatmul.mubr.bf16.vlgmr.msra.gmra.mrb[36].mxu1 %v11328_v5  ;;  %2555 = vmatmul.mubr.bf16.vlgmr.msra.gmra.mrb[40].mxu0 %v11328_v5 }
 0xdfa   :  { %2566 = vmatpush1.bf16.msra.mxu1 %v8523_v26  ;;  %2609 = vmatpush1.bf16.msra.mxu0 %v8525_v36  ;;  %v8589_v26 = vcombine.low %v1694_v16, %v1702_v17  ;;  %v1725_v36 = vld [vmem:[#allocation13 + $0x310] sm:$0xff]  ;;  %v1679_v16 = vld [vmem:[#allocation13 + $0x1a0] sm:$0xff] }
 0xdfb   :  { %2567 = vmatprep.subr.bf16.mxu1 %v8540_v31  ;;  %2610 = vmatprep.subr.bf16.mxu0 %v8542_v6  ;;  %v8620_v51 = vcombine.high %v1725_v36, %v1733_v37  ;;  %v8619_v59 = vcombine.low %v1725_v36, %v1733_v37  ;;  %v8635_v31 = vcombine.low %v1741_v53, %v1749_v54  ;;  %v1687_v17 = vld [vmem:[#allocation13 + $0x1e0] sm:$0xff] }
 0xdfc   :  { %2597 = vmatprep.mubr.bf16.mxu1 %v10763_v0  ;;  %2640 = vmatprep.mubr.bf16.mxu0 %v10763_v0  ;;  %v8637_v6 = vcombine.low %v1742_v55, %v1750_v58  ;;  %v8576_v22 = vcombine.high %v1679_v16, %v1687_v17  ;;  %v8592_v36 = vcombine.high %v1695_v23, %v1703_v24  ;;  %v1727_v55 = vld [vmem:[#allocation13 + $0x320] sm:$0xff] }
 0xdfd   :  { %v8608_v53 = vcombine.high %v1711_v40, %v1719_v45  ;;  %v1735_v58 = vld [vmem:[#allocation13 + $0x360] sm:$0xff] }
 0xdfe   :  { %2568 = vmatpush1.bf16.msra.mxu1 %v8539_v10  ;;  %2611 = vmatpush1.bf16.msra.mxu0 %v8541_v39  ;;  %v1648_v10 = vld [vmem:[#allocation13 + $0xa8] sm:$0xff] }
 0xdff   :  { %2569 = vmatprep.subr.bf16.mxu1 %v8556_v35  ;;  %2612 = vmatprep.subr.bf16.mxu0 %v8558_v42  ;;  %v1656_v39 = vld [vmem:[#allocation13 + $0xe8] sm:$0xff]  ;;  %v8527_v35 = vcombine.low %v1631_v63, %v1639_v2  ;;  %v8529_v42 = vcombine.low %v1632_v44, %v1640_v3  ;;  %v8624_v63 = vcombine.high %v1727_v55, %v1735_v58  ;;  %v1743_v44 = vld [vmem:[#allocation13 + $0x3a0] sm:$0xff] }
 0xe00   :  { %v8546_v43 = vcombine.high %v1648_v10, %v1656_v39  ;;  %v1751_v3 = vld [vmem:[#allocation13 + $0x3e0] sm:$0xff] }
 0xe02   :  { %2570 = vmatpush1.bf16.msra.mxu1 %v8555_v47  ;;  %2613 = vmatpush1.bf16.msra.mxu0 %v8557_v12  ;;  %v1664_v47 = vld [vmem:[#allocation13 + $0x128] sm:$0xff] }
 0xe03   :  { %2571 = vmatprep.subr.bf16.mxu1 %v8572_v13  ;;  %2614 = vmatprep.subr.bf16.mxu0 %v8574_v14  ;;  %v1672_v12 = vld [vmem:[#allocation13 + $0x168] sm:$0xff]  ;;  %v8543_v13 = vcombine.low %v1647_v57, %v1655_v34  ;;  %v8545_v14 = vcombine.low %v1648_v10, %v1656_v39  ;;  %v8640_v57 = vcombine.high %v1743_v44, %v1751_v3  ;;  %v1633_v10 = vld [vmem:[#allocation13 + $0x30] sm:$0xff] }
 0xe04   :  { %v8562_v56 = vcombine.high %v1664_v47, %v1672_v12  ;;  %v1641_v39 = vld [vmem:[#allocation13 + $0x70] sm:$0xff] }
 0xe06   :  { %2572 = vmatpush1.bf16.msra.mxu1 %v8571_v18  ;;  %2615 = vmatpush1.bf16.msra.mxu0 %v8573_v19  ;;  %v1680_v18 = vld [vmem:[#allocation13 + $0x1a8] sm:$0xff] }
 0xe07   :  { %2573 = vmatprep.subr.bf16.mxu1 %v8588_v20  ;;  %2616 = vmatprep.subr.bf16.mxu0 %v8590_v21  ;;  %v1688_v19 = vld [vmem:[#allocation13 + $0x1e8] sm:$0xff]  ;;  %v8559_v20 = vcombine.low %v1663_v41, %v1671_v11  ;;  %v8561_v21 = vcombine.low %v1664_v47, %v1672_v12  ;;  %v8532_v41 = vcombine.high %v1633_v10, %v1641_v39  ;;  %v1649_v47 = vld [vmem:[#allocation13 + $0xb0] sm:$0xff] }
 0xe08   :  { %v8578_v46 = vcombine.high %v1680_v18, %v1688_v19  ;;  %v1657_v12 = vld [vmem:[#allocation13 + $0xf0] sm:$0xff] }
 0xe0a   :  { %2574 = vmatpush1.bf16.msra.mxu1 %v8587_v25  ;;  %2617 = vmatpush1.bf16.msra.mxu0 %v8589_v26  ;;  %v1696_v25 = vld [vmem:[#allocation13 + $0x228] sm:$0xff] }
 0xe0b   :  { %2575 = vmatprep.subr.bf16.mxu1 %v8604_v30  ;;  %2618 = vmatprep.subr.bf16.mxu0 %v8606_v33  ;;  %v1704_v26 = vld [vmem:[#allocation13 + $0x268] sm:$0xff]  ;;  %v8575_v30 = vcombine.low %v1679_v16, %v1687_v17  ;;  %v8577_v33 = vcombine.low %v1680_v18, %v1688_v19  ;;  %v8548_v16 = vcombine.high %v1649_v47, %v1657_v12  ;;  %v1665_v18 = vld [vmem:[#allocation13 + $0x130] sm:$0xff] }
 0xe0c   :  { %v8594_v37 = vcombine.high %v1696_v25, %v1704_v26  ;;  %v1673_v19 = vld [vmem:[#allocation13 + $0x170] sm:$0xff] }
 0xe0e   :  { %2576 = vmatpush1.bf16.msra.mxu1 %v8603_v49  ;;  %2619 = vmatpush1.bf16.msra.mxu0 %v8605_v50  ;;  %v1712_v49 = vld [vmem:[#allocation13 + $0x2a8] sm:$0xff] }
 0xe0f   :  { %2577 = vmatprep.subr.bf16.mxu1 %v8620_v51  ;;  %2620 = vmatprep.subr.bf16.mxu0 %v8622_v52  ;;  %v1720_v50 = vld [vmem:[#allocation13 + $0x2e8] sm:$0xff]  ;;  %v8591_v51 = vcombine.low %v1695_v23, %v1703_v24  ;;  %v8593_v52 = vcombine.low %v1696_v25, %v1704_v26  ;;  %v8564_v23 = vcombine.high %v1665_v18, %v1673_v19  ;;  %v1681_v25 = vld [vmem:[#allocation13 + $0x1b0] sm:$0xff] }
 0xe10   :  { %v8610_v54 = vcombine.high %v1712_v49, %v1720_v50  ;;  %v1689_v26 = vld [vmem:[#allocation13 + $0x1f0] sm:$0xff] }
 0xe12   :  { %2578 = vmatpush1.bf16.msra.mxu1 %v8619_v59  ;;  %2621 = vmatpush1.bf16.msra.mxu0 %v8621_v60  ;;  %v1728_v59 = vld [vmem:[#allocation13 + $0x328] sm:$0xff] }
 0xe13   :  { %2579 = vmatprep.subr.bf16.mxu1 %v8636_v61  ;;  %2622 = vmatprep.subr.bf16.mxu0 %v8638_v62  ;;  %v1736_v60 = vld [vmem:[#allocation13 + $0x368] sm:$0xff]  ;;  %v8607_v61 = vcombine.low %v1711_v40, %v1719_v45  ;;  %v8609_v62 = vcombine.low %v1712_v49, %v1720_v50  ;;  %v8580_v40 = vcombine.high %v1681_v25, %v1689_v26  ;;  %v1697_v49 = vld [vmem:[#allocation13 + $0x230] sm:$0xff] }
 0xe14   :  { %v8626_v2 = vcombine.high %v1728_v59, %v1736_v60  ;;  %v1705_v50 = vld [vmem:[#allocation13 + $0x270] sm:$0xff] }
 0xe16   :  { %2580 = vmatpush1.bf16.msra.mxu1 %v8635_v31  ;;  %2623 = vmatpush1.bf16.msra.mxu0 %v8637_v6  ;;  %v1744_v31 = vld [vmem:[#allocation13 + $0x3a8] sm:$0xff] }
 0xe17   :  { %2651 = vmatprep.subr.bf16.mxu1 %v8528_v7  ;;  %2694 = vmatprep.subr.bf16.mxu0 %v8530_v9  ;;  %v1752_v6 = vld [vmem:[#allocation13 + $0x3e8] sm:$0xff]  ;;  %v8623_v7 = vcombine.low %v1727_v55, %v1735_v58  ;;  %v8625_v9 = vcombine.low %v1728_v59, %v1736_v60  ;;  %v8596_v55 = vcombine.high %v1697_v49, %v1705_v50  ;;  %v1713_v59 = vld [vmem:[#allocation13 + $0x2b0] sm:$0xff] }
 0xe18   :  { %v8642_v34 = vcombine.high %v1744_v31, %v1752_v6  ;;  %v1721_v60 = vld [vmem:[#allocation13 + $0x2f0] sm:$0xff] }
 0xe19   :  { %2598 = vmatmul.mubr.bf16.vlgmr.msra.gmra.mrb[40].mxu1 %v11328_v5  ;;  %2641 = vmatmul.mubr.bf16.vlgmr.msra.gmra.mrb[44].mxu0 %v11328_v5 }
 0xe1a   :  { %2652 = vmatpush1.bf16.msra.mxu1 %v8527_v35  ;;  %2695 = vmatpush1.bf16.msra.mxu0 %v8529_v42  ;;  %v1634_v35 = vld [vmem:[#allocation13 + $0x38] sm:$0xff] }
 0xe1b   :  { %2653 = vmatprep.subr.bf16.mxu1 %v8544_v27  ;;  %2696 = vmatprep.subr.bf16.mxu0 %v8546_v43  ;;  %v1642_v42 = vld [vmem:[#allocation13 + $0x78] sm:$0xff]  ;;  %v8639_v27 = vcombine.low %v1743_v44, %v1751_v3  ;;  %v8641_v43 = vcombine.low %v1744_v31, %v1752_v6  ;;  %v8612_v44 = vcombine.high %v1713_v59, %v1721_v60  ;;  %v1729_v31 = vld [vmem:[#allocation13 + $0x330] sm:$0xff] }
 0xe1c   :  { %2683 = vmatprep.mubr.bf16.mxu1 %v10763_v0  ;;  %2726 = vmatprep.mubr.bf16.mxu0 %v10763_v0  ;;  %v8534_v11 = vcombine.high %v1634_v35, %v1642_v42  ;;  %v1737_v6 = vld [vmem:[#allocation13 + $0x370] sm:$0xff] }
 0xe1e   :  { %2654 = vmatpush1.bf16.msra.mxu1 %v8543_v13  ;;  %2697 = vmatpush1.bf16.msra.mxu0 %v8545_v14  ;;  %v1650_v13 = vld [vmem:[#allocation13 + $0xb8] sm:$0xff] }
 0xe1f   :  { %2655 = vmatprep.subr.bf16.mxu1 %v8560_v15  ;;  %2698 = vmatprep.subr.bf16.mxu0 %v8562_v56  ;;  %v1658_v14 = vld [vmem:[#allocation13 + $0xf8] sm:$0xff]  ;;  %v8531_v15 = vcombine.low %v1633_v10, %v1641_v39  ;;  %v8533_v56 = vcombine.low %v1634_v35, %v1642_v42  ;;  %v8628_v10 = vcombine.high %v1729_v31, %v1737_v6  ;;  %v1745_v35 = vld [vmem:[#allocation13 + $0x3b0] sm:$0xff] }
 0xe20   :  { %v8550_v17 = vcombine.high %v1650_v13, %v1658_v14  ;;  %v1753_v42 = vld [vmem:[#allocation13 + $0x3f0] sm:$0xff] }
 0xe22   :  { %2656 = vmatpush1.bf16.msra.mxu1 %v8559_v20  ;;  %2699 = vmatpush1.bf16.msra.mxu0 %v8561_v21  ;;  %v1666_v20 = vld [vmem:[#allocation13 + $0x138] sm:$0xff] }
 0xe23   :  { %2657 = vmatprep.subr.bf16.mxu1 %v8576_v22  ;;  %2700 = vmatprep.subr.bf16.mxu0 %v8578_v46  ;;  %v1674_v21 = vld [vmem:[#allocation13 + $0x178] sm:$0xff]  ;;  %v8547_v22 = vcombine.low %v1649_v47, %v1657_v12  ;;  %v8549_v46 = vcombine.low %v1650_v13, %v1658_v14  ;;  %v8644_v47 = vcombine.high %v1745_v35, %v1753_v42 }
 0xe24   :  { %v8566_v24 = vcombine.high %v1666_v20, %v1674_v21  ;;  %v8643_v13 = vcombine.low %v1745_v35, %v1753_v42 }
 0xe26   :  { %2658 = vmatpush1.bf16.msra.mxu1 %v8575_v30  ;;  %2701 = vmatpush1.bf16.msra.mxu0 %v8577_v33  ;;  %v1682_v30 = vld [vmem:[#allocation13 + $0x1b8] sm:$0xff] }
 0xe27   :  { %2659 = vmatprep.subr.bf16.mxu1 %v8592_v36  ;;  %2702 = vmatprep.subr.bf16.mxu0 %v8594_v37  ;;  %v1690_v33 = vld [vmem:[#allocation13 + $0x1f8] sm:$0xff]  ;;  %v8563_v36 = vcombine.low %v1665_v18, %v1673_v19  ;;  %v8565_v37 = vcombine.low %v1666_v20, %v1674_v21  ;;  %v9957_v18 = vld [vmem:[#allocation16 + $0x48] sm:$0xff]  }
 0xe28   :  { %v8582_v45 = vcombine.high %v1682_v30, %v1690_v33  ;;  %v9958_v19 = vld [vmem:[#allocation16 + $0xc8] sm:$0xff]  }
 0xe29   :  { %v9959_v20 = vld [vmem:[#allocation16 + $0x8] sm:$0xff]  }
 0xe2a   :  { %2660 = vmatpush1.bf16.msra.mxu1 %v8591_v51  ;;  %2703 = vmatpush1.bf16.msra.mxu0 %v8593_v52  ;;  %v1698_v51 = vld [vmem:[#allocation13 + $0x238] sm:$0xff]  ;;  %v9960_v21 = vld [vmem:[#allocation16 + $0x88] sm:$0xff]  }
 0xe2b   :  { %2661 = vmatprep.subr.bf16.mxu1 %v8608_v53  ;;  %2704 = vmatprep.subr.bf16.mxu0 %v8610_v54  ;;  %v1706_v52 = vld [vmem:[#allocation13 + $0x278] sm:$0xff]  ;;  %v8579_v53 = vcombine.low %v1681_v25, %v1689_v26  ;;  %v8581_v54 = vcombine.low %v1682_v30, %v1690_v33  ;;  %v9969_v33 = vld [vmem:[#allocation16 + $0x60] sm:$0xff]  }
 0xe2c   :  { %v8598_v58 = vcombine.high %v1698_v51, %v1706_v52  ;;  %v9965_v25 = vld [vmem:[#allocation16 + $0x58] sm:$0xff]  }
 0xe2d   :  { %v9966_v26 = vld [vmem:[#allocation16 + $0xd8] sm:$0xff]  }
 0xe2e   :  { %2662 = vmatpush1.bf16.msra.mxu1 %v8607_v61  ;;  %2705 = vmatpush1.bf16.msra.mxu0 %v8609_v62  ;;  %v1714_v61 = vld [vmem:[#allocation13 + $0x2b8] sm:$0xff] }
 0xe2f   :  { %2663 = vmatprep.subr.bf16.mxu1 %v8624_v63  ;;  %2706 = vmatprep.subr.bf16.mxu0 %v8626_v2  ;;  %v1722_v62 = vld [vmem:[#allocation13 + $0x2f8] sm:$0xff]  ;;  %v8595_v63 = vcombine.low %v1697_v49, %v1705_v50  ;;  %v8597_v2 = vcombine.low %v1698_v51, %v1706_v52  ;;  %v9974_v49 = vld [vmem:[#allocation16 + $0xe8] sm:$0xff]   ;;  %v9977_v52 = vld [vmem:[#allocation16 + $0x70] sm:$0xff]  }
 0xe30   :  { %v8614_v3 = vcombine.high %v1714_v61, %v1722_v62  ;;  %v9967_v30 = vld [vmem:[#allocation16 + $0x18] sm:$0xff]   ;;  %v9975_v50 = vld [vmem:[#allocation16 + $0x28] sm:$0xff]  }
 0xe31   :  { %v9976_v51 = vld [vmem:[#allocation16 + $0xa8] sm:$0xff]  }
 0xe32   :  { %2664 = vmatpush1.bf16.msra.mxu1 %v8623_v7  ;;  %2707 = vmatpush1.bf16.msra.mxu0 %v8625_v9  ;;  %v1730_v7 = vld [vmem:[#allocation13 + $0x338] sm:$0xff] }
 0xe33   :  { %2665 = vmatprep.subr.bf16.mxu1 %v8640_v57  ;;  %2708 = vmatprep.subr.bf16.mxu0 %v8642_v34  ;;  %v1738_v9 = vld [vmem:[#allocation13 + $0x378] sm:$0xff]  ;;  %v8611_v57 = vcombine.low %v1713_v59, %v1721_v60  ;;  %v8613_v34 = vcombine.low %v1714_v61, %v1722_v62  ;;  %v9985_v62 = vld [vmem:[#allocation16 + $0x140] sm:$0xff]  }
 0xe34   :  { %v8630_v39 = vcombine.high %v1730_v7, %v1738_v9  ;;  %v9982_v59 = vld [vmem:[#allocation16 + $0xf8] sm:$0xff]  }
 0xe35   :  { %v9983_v60 = vld [vmem:[#allocation16 + $0x38] sm:$0xff]  }
 0xe36   :  { %2666 = vmatpush1.bf16.msra.mxu1 %v8639_v27  ;;  %2709 = vmatpush1.bf16.msra.mxu0 %v8641_v43  ;;  %v1746_v27 = vld [vmem:[#allocation13 + $0x3b8] sm:$0xff] }
 0xe37   :  { %2737 = vmatprep.subr.bf16.mxu1 %v8532_v41  ;;  %2780 = vmatprep.subr.bf16.mxu0 %v8534_v11  ;;  %v1754_v43 = vld [vmem:[#allocation13 + $0x3f8] sm:$0xff]  ;;  %v8627_v41 = vcombine.low %v1729_v31, %v1737_v6  ;;  %v8629_v11 = vcombine.low %v1730_v7, %v1738_v9 }
 0xe38   :  { %v8646_v12 = vcombine.high %v1746_v27, %v1754_v43  ;;  %v8645_v14 = vcombine.low %v1746_v27, %v1754_v43  ;;  %v9984_v61 = vld [vmem:[#allocation16 + $0xb8] sm:$0xff]  }
 0xe39   :  { %2684 = vmatmul.mubr.bf16.vlgmr.msra.gmra.mrb[44].mxu1 %v11328_v5  ;;  %2727 = vmatmul.mubr.bf16.vlgmr.msra.gmra.mrb[48].mxu0 %v11328_v5 }
 0xe3a   :  { %2738 = vmatpush1.bf16.msra.mxu1 %v8531_v15  ;;  %2781 = vmatpush1.bf16.msra.mxu0 %v8533_v56  ;;  %v9953_v15 = vld [vmem:[#allocation16 + $0x40] sm:$0xff]  }
 0xe3b   :  { %2739 = vmatprep.subr.bf16.mxu1 %v8548_v16  ;;  %2782 = vmatprep.subr.bf16.mxu0 %v8550_v17  ;;  %v9954_v56 = vld [vmem:[#allocation16 + $0xc0] sm:$0xff]  }
 0xe3c   :  { %2769 = vmatprep.mubr.bf16.mxu1 %v10763_v0  ;;  %2812 = vmatprep.mubr.bf16.mxu0 %v10763_v0  ;;  %v9955_v16 = vld [vmem:[#allocation16] sm:$0xff]  }
 0xe3d   :  { %v9956_v17 = vld [vmem:[#allocation16 + $0x80] sm:$0xff]  }
 0xe3e   :  { %2740 = vmatpush1.bf16.msra.mxu1 %v8547_v22  ;;  %2783 = vmatpush1.bf16.msra.mxu0 %v8549_v46  ;;  %v9961_v22 = vld [vmem:[#allocation16 + $0x50] sm:$0xff]  }
 0xe3f   :  { %2741 = vmatprep.subr.bf16.mxu1 %v8564_v23  ;;  %2784 = vmatprep.subr.bf16.mxu0 %v8566_v24  ;;  %v9962_v46 = vld [vmem:[#allocation16 + $0xd0] sm:$0xff]  }
 0xe40   :  { %v9963_v23 = vld [vmem:[#allocation16 + $0x10] sm:$0xff]  }
 0xe41   :  { %v9964_v24 = vld [vmem:[#allocation16 + $0x90] sm:$0xff]  }
 0xe42   :  { %2742 = vmatpush1.bf16.msra.mxu1 %v8563_v36  ;;  %2785 = vmatpush1.bf16.msra.mxu0 %v8565_v37  ;;  %v9970_v36 = vld [vmem:[#allocation16 + $0xe0] sm:$0xff]  }
 0xe43   :  { %2743 = vmatprep.subr.bf16.mxu1 %v8580_v40  ;;  %2786 = vmatprep.subr.bf16.mxu0 %v8582_v45  ;;  %v9971_v37 = vld [vmem:[#allocation16 + $0x20] sm:$0xff]   ;;  %v9973_v45 = vld [vmem:[#allocation16 + $0x68] sm:$0xff]  }
 0xe44   :  { %v9972_v40 = vld [vmem:[#allocation16 + $0xa0] sm:$0xff]  }
 0xe46   :  { %2744 = vmatpush1.bf16.msra.mxu1 %v8579_v53  ;;  %2787 = vmatpush1.bf16.msra.mxu0 %v8581_v54  ;;  %v9978_v53 = vld [vmem:[#allocation16 + $0xf0] sm:$0xff]  }
 0xe47   :  { %2745 = vmatprep.subr.bf16.mxu1 %v8596_v55  ;;  %2788 = vmatprep.subr.bf16.mxu0 %v8598_v58  ;;  %v9979_v54 = vld [vmem:[#allocation16 + $0x30] sm:$0xff]   ;;  %v9981_v58 = vld [vmem:[#allocation16 + $0x78] sm:$0xff]  }
 0xe48   :  { %v9980_v55 = vld [vmem:[#allocation16 + $0xb0] sm:$0xff]  }
 0xe4a   :  { %2746 = vmatpush1.bf16.msra.mxu1 %v8595_v63  ;;  %2789 = vmatpush1.bf16.msra.mxu0 %v8597_v2  ;;  %v9986_v63 = vld [vmem:[#allocation16 + $0x1c0] sm:$0xff]  }
 0xe4b   :  { %2747 = vmatprep.subr.bf16.mxu1 %v8612_v44  ;;  %2790 = vmatprep.subr.bf16.mxu0 %v8614_v3  ;;  %v11344_v2 = vld [vmem:[#allocation14] sm:$0xff]  ;;  %v11347_v44 = vsub.s32 3, %v11110_v28 }
 0xe4c   :  { %v1762_v3 = vrot.slane %v11344_v2, %v11117_v32  ;;  %v1770_v31 = vrot.slane %v11344_v2, %v11145_v48  ;;  %v1766_v6 = vrot.slane %v11344_v2, %v11113_v29 }
 0xe4d   :  { %v1774_v7 = vrot.slane %v11344_v2, %v11347_v44 }
 0xe4e   :  { %2748 = vmatpush1.bf16.msra.mxu1 %v8611_v57  ;;  %2791 = vmatpush1.bf16.msra.mxu0 %v8613_v34 }
 0xe4f   :  { %2749 = vmatprep.subr.bf16.mxu1 %v8628_v10  ;;  %2792 = vmatprep.subr.bf16.mxu0 %v8630_v39 }
 0xe52   :  { %2750 = vmatpush1.bf16.msra.mxu1 %v8627_v41  ;;  %2793 = vmatpush1.bf16.msra.mxu0 %v8629_v11 }
 0xe53   :  { %2751 = vmatprep.subr.bf16.mxu1 %v8644_v47  ;;  %2794 = vmatprep.subr.bf16.mxu0 %v8646_v12 }
 0xe56   :  { %2752 = vmatpush1.bf16.msra.mxu1 %v8643_v13  ;;  %2795 = vmatpush1.bf16.msra.mxu0 %v8645_v14 }
 0xe57   :  { %9147 = vmatprep.subr.bf16.mxu1 %v9953_v15  ;;  %9169 = vmatprep.subr.bf16.mxu0 %v9954_v56 }
 0xe59   :  { %2770 = vmatmul.mubr.bf16.vlgmr.msra.gmra.mrb[48].mxu1 %v11328_v5  ;;  %2813 = vmatmul.mubr.bf16.vlgmr.msra.gmra.mrb[52].mxu0 %v11328_v5  ;;  %v9968_v5 = vld [vmem:[#allocation16 + $0x98] sm:$0xff]  }
 0xe5a   :  { %9148 = vmatpush3.bf16.msra.mxu1 %v9955_v16  ;;  %9170 = vmatpush3.bf16.msra.mxu0 %v9956_v17 }
 0xe5b   :  { %9149 = vmatprep.subr.bf16.mxu1 %v9957_v18  ;;  %9171 = vmatprep.subr.bf16.mxu0 %v9958_v19 }
 0xe5e   :  { %9150 = vmatpush3.bf16.msra.mxu1 %v9959_v20  ;;  %9172 = vmatpush3.bf16.msra.mxu0 %v9960_v21 }
 0xe5f   :  { %9151 = vmatprep.subr.bf16.mxu1 %v9961_v22  ;;  %9173 = vmatprep.subr.bf16.mxu0 %v9962_v46 }
 0xe62   :  { %9152 = vmatpush3.bf16.msra.mxu1 %v9963_v23  ;;  %9174 = vmatpush3.bf16.msra.mxu0 %v9964_v24 }
 0xe63   :  { %9153 = vmatprep.subr.bf16.mxu1 %v9965_v25  ;;  %9175 = vmatprep.subr.bf16.mxu0 %v9966_v26  ;;  %v9987_v26 = vld [vmem:[#allocation16 + $0x100] sm:$0xff]  }
 0xe66   :  { %9154 = vmatpush3.bf16.msra.mxu1 %v9967_v30  ;;  %9176 = vmatpush3.bf16.msra.mxu0 %v9968_v5  ;;  %v9988_v30 = vld [vmem:[#allocation16 + $0x180] sm:$0xff]   ;;  %v9989_v5 = vld [vmem:[#allocation16 + $0x148] sm:$0xff]  }
 0xe67   :  { %9155 = vmatprep.subr.bf16.mxu1 %v9969_v33  ;;  %9177 = vmatprep.subr.bf16.mxu0 %v9970_v36  ;;  %v9990_v33 = vld [vmem:[#allocation16 + $0x1c8] sm:$0xff]  }
 0xe68   :  { %v9991_v36 = vld [vmem:[#allocation16 + $0x108] sm:$0xff]  }
 0xe6a   :  { %9156 = vmatpush3.bf16.msra.mxu1 %v9971_v37  ;;  %9178 = vmatpush3.bf16.msra.mxu0 %v9972_v40  ;;  %v9992_v37 = vld [vmem:[#allocation16 + $0x188] sm:$0xff]   ;;  %v9993_v40 = vld [vmem:[#allocation16 + $0x150] sm:$0xff]  }
 0xe6b   :  { %9157 = vmatprep.subr.bf16.mxu1 %v9973_v45  ;;  %9179 = vmatprep.subr.bf16.mxu0 %v9974_v49  ;;  %v9994_v45 = vld [vmem:[#allocation16 + $0x1d0] sm:$0xff]  }
 0xe6c   :  { %v9995_v49 = vld [vmem:[#allocation16 + $0x110] sm:$0xff]  }
 0xe6e   :  { %9158 = vmatpush3.bf16.msra.mxu1 %v9975_v50  ;;  %9180 = vmatpush3.bf16.msra.mxu0 %v9976_v51  ;;  %v9996_v50 = vld [vmem:[#allocation16 + $0x190] sm:$0xff]   ;;  %v9997_v51 = vld [vmem:[#allocation16 + $0x158] sm:$0xff]  }
 0xe6f   :  { %9159 = vmatprep.subr.bf16.mxu1 %v9977_v52  ;;  %9181 = vmatprep.subr.bf16.mxu0 %v9978_v53  ;;  %v9998_v52 = vld [vmem:[#allocation16 + $0x1d8] sm:$0xff]  }
 0xe70   :  { %v9999_v53 = vld [vmem:[#allocation16 + $0x118] sm:$0xff]  }
 0xe72   :  { %9160 = vmatpush3.bf16.msra.mxu1 %v9979_v54  ;;  %9182 = vmatpush3.bf16.msra.mxu0 %v9980_v55  ;;  %v10000_v54 = vld [vmem:[#allocation16 + $0x198] sm:$0xff]   ;;  %v10001_v55 = vld [vmem:[#allocation16 + $0x160] sm:$0xff]  }
 0xe73   :  { %9161 = vmatprep.subr.bf16.mxu1 %v9981_v58  ;;  %9183 = vmatprep.subr.bf16.mxu0 %v9982_v59  ;;  %v10002_v58 = vld [vmem:[#allocation16 + $0x1e0] sm:$0xff]  }
 0xe74   :  { %v10003_v59 = vld [vmem:[#allocation16 + $0x120] sm:$0xff]  }
 0xe76   :  { %9162 = vmatpush3.bf16.msra.mxu1 %v9983_v60  ;;  %9184 = vmatpush3.bf16.msra.mxu0 %v9984_v61  ;;  %v10004_v60 = vld [vmem:[#allocation16 + $0x1a0] sm:$0xff]   ;;  %v10005_v61 = vld [vmem:[#allocation16 + $0x168] sm:$0xff]  }
 0xe77   :  { %9191 = vmatprep.subr.bf16.mxu1 %v9985_v62  ;;  %9213 = vmatprep.subr.bf16.mxu0 %v9986_v63  ;;  %v10006_v62 = vld [vmem:[#allocation16 + $0x1e8] sm:$0xff]   ;;  %v11358_v63 = vsub.s32 4, %v11110_v28 }
 0xecc   :  { %v2513_v9 = vpop.f32.mrb[36].mxu1  ;;  %v2556_v57 = vpop.f32.mrb[40].mxu0 }
 0xecd   :  { %v2514_v34 = vadd.f32 %v2513_v9, %v1762_v3  ;;  %v2557_v10 = vadd.f32 %v2556_v57, %v1770_v31  ;;  %v2515_v39 = vpop.f32.mrb[37].mxu1  ;;  %v2558_v35 = vpop.f32.mrb[41].mxu0  ;;  %v10008_v9 = vld [vmem:[#allocation16 + $0x1a8] sm:$0xff]   ;;  %v1778_v57 = vrot.slane %v11344_v2, %v11358_v63 }
 0xece   :  { %v2516_v42 = vadd.f32 %v2515_v39, %v1766_v6  ;;  %v2559_v27 = vadd.f32 %v2558_v35, %v1774_v7  ;;  %v2517_v43 = vpop.f32.mrb[38].mxu1  ;;  %v2560_v41 = vpop.f32.mrb[42].mxu0  ;;  %v10010_v39 = vld [vmem:[#allocation16 + $0x1f0] sm:$0xff]  }
 0xecf   :  { %v2518_v11 = vadd.f32 %v2517_v43, %v1762_v3  ;;  %v2561_v47 = vadd.f32 %v2560_v41, %v1770_v31  ;;  %v2519_v12 = vpop.f32.mrb[39].mxu1  ;;  %v2562_v13 = vpop.f32.mrb[43].mxu0  ;;  %v2823_v56 = vmax.f32 %v2514_v34, 0.0  ;;  %v2825_v16 = vmax.f32 %v2557_v10, 0.0  ;;  %v10009_v10 = vld [vmem:[#allocation16 + $0x170] sm:$0xff]  }
 0xed0   :  { %v2520_v14 = vadd.f32 %v2519_v12, %v1766_v6  ;;  %v2563_v15 = vadd.f32 %v2562_v13, %v1774_v7  ;;  %v2824_v19 = vmax.f32 %v2516_v42, 0.0  ;;  %v2826_v20 = vmax.f32 %v2559_v27, 0.0  ;;  %v10007_v7 = vld [vmem:[#allocation16 + $0x128] sm:$0xff]   ;;  %v10011_v43 = vld [vmem:[#allocation16 + $0x130] sm:$0xff]  }
 0xed1   :  { %v2839_v17 = vmax.f32 %v2518_v11, 0.0  ;;  %v2841_v18 = vmax.f32 %v2561_v47, 0.0  ;;  %v11361_v3 = vsub.s32 6, %v11110_v28  ;;  %v11364_v31 = vsub.s32 5, %v11110_v28  ;;  %v10012_v41 = vld [vmem:[#allocation16 + $0x1b0] sm:$0xff]  }
 0xed2   :  { %v2840_v21 = vmax.f32 %v2520_v14, 0.0  ;;  %v2842_v22 = vmax.f32 %v2563_v15, 0.0  ;;  %v11367_v6 = vsub.s32 7, %v11110_v28  ;;  %v10013_v14 = vld [vmem:[#allocation16 + $0x178] sm:$0xff]  }
 0xed3   :  { %v2855_v46 = vpack.c.bf16 %v2839_v17, %v2823_v56  ;;  %v2857_v23 = vpack.c.bf16 %v2841_v18, %v2825_v16  ;;  %v1786_v34 = vrot.slane %v11344_v2, %v11361_v3  ;;  %v1782_v35 = vrot.slane %v11344_v2, %v11364_v31  ;;  %v10014_v15 = vld [vmem:[#allocation16 + $0x1f8] sm:$0xff]  }
 0xed4   :  { %v2856_v24 = vpack.c.bf16 %v2840_v21, %v2824_v19  ;;  %v2858_v25 = vpack.c.bf16 %v2842_v22, %v2826_v20  ;;  %v1790_v28 = vrot.slane %v11344_v2, %v11367_v6 }
 0xed6   :  { %3934 = vmatprep.mubr.bf16.mxu1 %v2856_v24  ;;  %3975 = vmatprep.mubr.bf16.mxu0 %v2858_v25  ;;  %v10016_v24 = vld [vmem:[#allocation16 + $0x1b8] sm:$0xff]  }
 0xed7   :  { %3935 = vmatmul.mubr.bf16.vlgmr.msra.gmra.mrb[52].mxu1 %v2855_v46  ;;  %3976 = vmatmul.mubr.bf16.vlgmr.msra.gmra.mrb[56].mxu0 %v2857_v23  ;;  %v10015_v23 = vld [vmem:[#allocation16 + $0x138] sm:$0xff]  }
 0xed8   :  { %9192 = vmatpush3.bf16.msra.mxu1 %v9987_v26  ;;  %9214 = vmatpush3.bf16.msra.mxu0 %v9988_v30 }
 0xed9   :  { %9193 = vmatprep.subr.bf16.mxu1 %v9989_v5  ;;  %9215 = vmatprep.subr.bf16.mxu0 %v9990_v33  ;;  %v10017_v33 = vld [vmem:[#allocation16 + $0x240] sm:$0xff]  }
 0xedc   :  { %9194 = vmatpush3.bf16.msra.mxu1 %v9991_v36  ;;  %9216 = vmatpush3.bf16.msra.mxu0 %v9992_v37  ;;  %v10018_v36 = vld [vmem:[#allocation16 + $0x2c0] sm:$0xff]  }
 0xedd   :  { %9195 = vmatprep.subr.bf16.mxu1 %v9993_v40  ;;  %9217 = vmatprep.subr.bf16.mxu0 %v9994_v45 }
 0xee0   :  { %9196 = vmatpush3.bf16.msra.mxu1 %v9995_v49  ;;  %9218 = vmatpush3.bf16.msra.mxu0 %v9996_v50 }
 0xee1   :  { %9197 = vmatprep.subr.bf16.mxu1 %v9997_v51  ;;  %9219 = vmatprep.subr.bf16.mxu0 %v9998_v52 }
 0xee4   :  { %9198 = vmatpush3.bf16.msra.mxu1 %v9999_v53  ;;  %9220 = vmatpush3.bf16.msra.mxu0 %v10000_v54  ;;  %v10019_v54 = vld [vmem:[#allocation16 + $0x200] sm:$0xff]  }
 0xee5   :  { %9199 = vmatprep.subr.bf16.mxu1 %v10001_v55  ;;  %9221 = vmatprep.subr.bf16.mxu0 %v10002_v58  ;;  %v10020_v55 = vld [vmem:[#allocation16 + $0x280] sm:$0xff]   ;;  %v10021_v58 = vld [vmem:[#allocation16 + $0x248] sm:$0xff]  }
 0xee8   :  { %9200 = vmatpush3.bf16.msra.mxu1 %v10003_v59  ;;  %9222 = vmatpush3.bf16.msra.mxu0 %v10004_v60  ;;  %v10022_v59 = vld [vmem:[#allocation16 + $0x2c8] sm:$0xff]  }
 0xee9   :  { %9201 = vmatprep.subr.bf16.mxu1 %v10005_v61  ;;  %9223 = vmatprep.subr.bf16.mxu0 %v10006_v62  ;;  %v10023_v60 = vld [vmem:[#allocation16 + $0x208] sm:$0xff]   ;;  %v10025_v62 = vld [vmem:[#allocation16 + $0x250] sm:$0xff]  }
 0xeea   :  { %v10024_v61 = vld [vmem:[#allocation16 + $0x288] sm:$0xff]  }
 0xeec   :  { %v2599_v42 = vpop.f32.mrb[40].mxu1  ;;  %v2642_v27 = vpop.f32.mrb[44].mxu0  ;;  %9202 = vmatpush3.bf16.msra.mxu1 %v10007_v7  ;;  %9224 = vmatpush3.bf16.msra.mxu0 %v10008_v9  ;;  %v10026_v7 = vld [vmem:[#allocation16 + $0x2d0] sm:$0xff]  }
 0xeed   :  { %v2600_v11 = vadd.f32 %v2599_v42, %v1778_v57  ;;  %v2643_v47 = vadd.f32 %v2642_v27, %v1786_v34  ;;  %v2601_v12 = vpop.f32.mrb[41].mxu1  ;;  %v2644_v13 = vpop.f32.mrb[45].mxu0  ;;  %9203 = vmatprep.subr.bf16.mxu1 %v10009_v10  ;;  %9225 = vmatprep.subr.bf16.mxu0 %v10010_v39  ;;  %v10027_v9 = vld [vmem:[#allocation16 + $0x210] sm:$0xff]   ;;  %v10030_v10 = vld [vmem:[#allocation16 + $0x2d8] sm:$0xff]   ;;  %v10034_v42 = vld [vmem:[#allocation16 + $0x2e0] sm:$0xff]  }
 0xeee   :  { %v2602_v56 = vadd.f32 %v2601_v12, %v1782_v35  ;;  %v2645_v16 = vadd.f32 %v2644_v13, %v1790_v28  ;;  %v2603_v17 = vpop.f32.mrb[42].mxu1  ;;  %v2646_v18 = vpop.f32.mrb[46].mxu0  ;;  %v10031_v39 = vld [vmem:[#allocation16 + $0x218] sm:$0xff]   ;;  %v10035_v27 = vld [vmem:[#allocation16 + $0x220] sm:$0xff]   ;;  %v10039_v12 = vld [vmem:[#allocation16 + $0x228] sm:$0xff]  }
 0xeef   :  { %v2604_v19 = vadd.f32 %v2603_v17, %v1778_v57  ;;  %v2647_v2 = vadd.f32 %v2646_v18, %v1786_v34  ;;  %v2605_v20 = vpop.f32.mrb[43].mxu1  ;;  %v2648_v21 = vpop.f32.mrb[47].mxu0  ;;  %v2827_v25 = vmax.f32 %v2600_v11, 0.0  ;;  %v2829_v26 = vmax.f32 %v2643_v47, 0.0  ;;  %v10028_v57 = vld [vmem:[#allocation16 + $0x290] sm:$0xff]   ;;  %v10029_v34 = vld [vmem:[#allocation16 + $0x258] sm:$0xff]  }
 0xef0   :  { %v2606_v22 = vadd.f32 %v2605_v20, %v1782_v35  ;;  %v2649_v46 = vadd.f32 %v2648_v21, %v1790_v28  ;;  %9204 = vmatpush3.bf16.msra.mxu1 %v10011_v43  ;;  %9226 = vmatpush3.bf16.msra.mxu0 %v10012_v41  ;;  %v2828_v37 = vmax.f32 %v2602_v56, 0.0  ;;  %v2830_v40 = vmax.f32 %v2645_v16, 0.0  ;;  %v10032_v35 = vld [vmem:[#allocation16 + $0x298] sm:$0xff]   ;;  %v10033_v28 = vld [vmem:[#allocation16 + $0x260] sm:$0xff]   ;;  %v10037_v41 = vld [vmem:[#allocation16 + $0x268] sm:$0xff]  }
 0xef1   :  { %v2843_v30 = vmax.f32 %v2604_v19, 0.0  ;;  %v2845_v5 = vmax.f32 %v2647_v2, 0.0  ;;  %9205 = vmatprep.subr.bf16.mxu1 %v10013_v14  ;;  %9227 = vmatprep.subr.bf16.mxu0 %v10014_v15  ;;  %v10036_v43 = vld [vmem:[#allocation16 + $0x2a0] sm:$0xff]   ;;  %v10038_v11 = vld [vmem:[#allocation16 + $0x2e8] sm:$0xff]   ;;  %v10041_v56 = vld [vmem:[#allocation16 + $0x270] sm:$0xff]  }
 0xef2   :  { %v2844_v45 = vmax.f32 %v2606_v22, 0.0  ;;  %v2846_v49 = vmax.f32 %v2649_v46, 0.0  ;;  %v11377_v47 = vld [vmem:[#allocation14 + $0x8] sm:$0xff]  ;;  %v10042_v16 = vld [vmem:[#allocation16 + $0x2f0] sm:$0xff]  }
 0xef3   :  { %v2859_v50 = vpack.c.bf16 %v2843_v30, %v2827_v25  ;;  %v2861_v51 = vpack.c.bf16 %v2845_v5, %v2829_v26  ;;  %v10040_v13 = vld [vmem:[#allocation16 + $0x2a8] sm:$0xff]   ;;  %v1794_v14 = vrot.slane %v11377_v47, %v11117_v32  ;;  %v1802_v15 = vrot.slane %v11377_v47, %v11145_v48  ;;  %v10043_v20 = vld [vmem:[#allocation16 + $0x230] sm:$0xff]   ;;  %v10045_v25 = vld [vmem:[#allocation16 + $0x278] sm:$0xff]  }
 0xef4   :  { %v2860_v52 = vpack.c.bf16 %v2844_v45, %v2828_v37  ;;  %v2862_v53 = vpack.c.bf16 %v2846_v49, %v2830_v40  ;;  %9206 = vmatpush3.bf16.msra.mxu1 %v10015_v23  ;;  %9228 = vmatpush3.bf16.msra.mxu0 %v10016_v24  ;;  %v1798_v17 = vrot.slane %v11377_v47, %v11113_v29  ;;  %v10044_v21 = vld [vmem:[#allocation16 + $0x2b0] sm:$0xff]   ;;  %v10046_v26 = vld [vmem:[#allocation16 + $0x2f8] sm:$0xff]  }
 0xef5   :  { %9235 = vmatprep.subr.bf16.mxu1 %v10017_v33  ;;  %9257 = vmatprep.subr.bf16.mxu0 %v10018_v36  ;;  %v1806_v18 = vrot.slane %v11377_v47, %v11347_v44 }
 0xef6   :  { %4016 = vmatprep.mubr.bf16.mxu1 %v2860_v52  ;;  %4057 = vmatprep.mubr.bf16.mxu0 %v2862_v53  ;;  %v10047_v52 = vld [vmem:[#allocation16 + $0x238] sm:$0xff]  }
 0xef7   :  { %4017 = vmatmul.mubr.bf16.vlgmr.msra.gmra.mrb[56].mxu1 %v2859_v50  ;;  %4058 = vmatmul.mubr.bf16.vlgmr.msra.gmra.mrb[60].mxu0 %v2861_v51  ;;  %v10048_v53 = vld [vmem:[#allocation16 + $0x2b8] sm:$0xff]  }
 0xef8   :  { %9236 = vmatpush3.bf16.msra.mxu1 %v10019_v54  ;;  %9258 = vmatpush3.bf16.msra.mxu0 %v10020_v55 }
 0xef9   :  { %9237 = vmatprep.subr.bf16.mxu1 %v10021_v58  ;;  %9259 = vmatprep.subr.bf16.mxu0 %v10022_v59 }
 0xefc   :  { %9238 = vmatpush3.bf16.msra.mxu1 %v10023_v60  ;;  %9260 = vmatpush3.bf16.msra.mxu0 %v10024_v61  ;;  %v10049_v60 = vld [vmem:[#allocation16 + $0x340] sm:$0xff]  }
 0xefd   :  { %9239 = vmatprep.subr.bf16.mxu1 %v10025_v62  ;;  %9261 = vmatprep.subr.bf16.mxu0 %v10026_v7  ;;  %v10050_v61 = vld [vmem:[#allocation16 + $0x3c0] sm:$0xff]  }
 0xf00   :  { %9240 = vmatpush3.bf16.msra.mxu1 %v10027_v9  ;;  %9262 = vmatpush3.bf16.msra.mxu0 %v10028_v57 }
 0xf01   :  { %9241 = vmatprep.subr.bf16.mxu1 %v10029_v34  ;;  %9263 = vmatprep.subr.bf16.mxu0 %v10030_v10 }
 0xf04   :  { %9242 = vmatpush3.bf16.msra.mxu1 %v10031_v39  ;;  %9264 = vmatpush3.bf16.msra.mxu0 %v10032_v35 }
 0xf05   :  { %9243 = vmatprep.subr.bf16.mxu1 %v10033_v28  ;;  %9265 = vmatprep.subr.bf16.mxu0 %v10034_v42  ;;  %v10051_v28 = vld [vmem:[#allocation16 + $0x300] sm:$0xff]  }
 0xf06   :  { %v10052_v42 = vld [vmem:[#allocation16 + $0x380] sm:$0xff]  }
 0xf08   :  { %9244 = vmatpush3.bf16.msra.mxu1 %v10035_v27  ;;  %9266 = vmatpush3.bf16.msra.mxu0 %v10036_v43  ;;  %v10053_v27 = vld [vmem:[#allocation16 + $0x348] sm:$0xff]  }
 0xf09   :  { %9245 = vmatprep.subr.bf16.mxu1 %v10037_v41  ;;  %9267 = vmatprep.subr.bf16.mxu0 %v10038_v11  ;;  %v10054_v43 = vld [vmem:[#allocation16 + $0x3c8] sm:$0xff]  }
 0xf0a   :  { %v10055_v41 = vld [vmem:[#allocation16 + $0x308] sm:$0xff]  }
 0xf0b   :  { %v10056_v11 = vld [vmem:[#allocation16 + $0x388] sm:$0xff]  }
 0xf0c   :  { %v2685_v19 = vpop.f32.mrb[44].mxu1  ;;  %v2728_v2 = vpop.f32.mrb[48].mxu0  ;;  %9246 = vmatpush3.bf16.msra.mxu1 %v10039_v12  ;;  %9268 = vmatpush3.bf16.msra.mxu0 %v10040_v13  ;;  %v10057_v12 = vld [vmem:[#allocation16 + $0x350] sm:$0xff]  }
 0xf0d   :  { %v2686_v22 = vadd.f32 %v2685_v19, %v1794_v14  ;;  %v2729_v46 = vadd.f32 %v2728_v2, %v1802_v15  ;;  %v2687_v23 = vpop.f32.mrb[45].mxu1  ;;  %v2730_v24 = vpop.f32.mrb[49].mxu0  ;;  %9247 = vmatprep.subr.bf16.mxu1 %v10041_v56  ;;  %9269 = vmatprep.subr.bf16.mxu0 %v10042_v16  ;;  %v10058_v13 = vld [vmem:[#allocation16 + $0x3d0] sm:$0xff]   ;;  %v10061_v56 = vld [vmem:[#allocation16 + $0x358] sm:$0xff]   ;;  %v10065_v19 = vld [vmem:[#allocation16 + $0x360] sm:$0xff]  }
 0xf0e   :  { %v2688_v30 = vadd.f32 %v2687_v23, %v1798_v17  ;;  %v2731_v5 = vadd.f32 %v2730_v24, %v1806_v18  ;;  %v2689_v33 = vpop.f32.mrb[46].mxu1  ;;  %v2732_v36 = vpop.f32.mrb[50].mxu0  ;;  %v10062_v16 = vld [vmem:[#allocation16 + $0x3d8] sm:$0xff]   ;;  %v10066_v2 = vld [vmem:[#allocation16 + $0x3e0] sm:$0xff]   ;;  %v10071_v23 = vld [vmem:[#allocation16 + $0x328] sm:$0xff]  }
 0xf0f   :  { %v2690_v37 = vadd.f32 %v2689_v33, %v1794_v14  ;;  %v2733_v40 = vadd.f32 %v2732_v36, %v1802_v15  ;;  %v2691_v45 = vpop.f32.mrb[47].mxu1  ;;  %v2734_v49 = vpop.f32.mrb[51].mxu0  ;;  %v2831_v54 = vmax.f32 %v2686_v22, 0.0  ;;  %v2833_v55 = vmax.f32 %v2729_v46, 0.0  ;;  %v10059_v14 = vld [vmem:[#allocation16 + $0x310] sm:$0xff]   ;;  %v10069_v22 = vld [vmem:[#allocation16 + $0x368] sm:$0xff]  }
 0xf10   :  { %v2692_v50 = vadd.f32 %v2691_v45, %v1798_v17  ;;  %v2735_v51 = vadd.f32 %v2734_v49, %v1806_v18  ;;  %9248 = vmatpush3.bf16.msra.mxu1 %v10043_v20  ;;  %9270 = vmatpush3.bf16.msra.mxu0 %v10044_v21  ;;  %v2832_v62 = vmax.f32 %v2688_v30, 0.0  ;;  %v2834_v7 = vmax.f32 %v2731_v5, 0.0  ;;  %v10060_v15 = vld [vmem:[#allocation16 + $0x390] sm:$0xff]   ;;  %v10063_v17 = vld [vmem:[#allocation16 + $0x318] sm:$0xff]   ;;  %v10067_v20 = vld [vmem:[#allocation16 + $0x320] sm:$0xff]  }
 0xf11   :  { %v2847_v58 = vmax.f32 %v2690_v37, 0.0  ;;  %v2849_v59 = vmax.f32 %v2733_v40, 0.0  ;;  %9249 = vmatprep.subr.bf16.mxu1 %v10045_v25  ;;  %9271 = vmatprep.subr.bf16.mxu0 %v10046_v26  ;;  %v10064_v18 = vld [vmem:[#allocation16 + $0x398] sm:$0xff]   ;;  %v10068_v21 = vld [vmem:[#allocation16 + $0x3a0] sm:$0xff]   ;;  %v10070_v46 = vld [vmem:[#allocation16 + $0x3e8] sm:$0xff]   ;;  %v1810_v25 = vrot.slane %v11377_v47, %v11358_v63  ;;  %v1818_v26 = vrot.slane %v11377_v47, %v11361_v3 }
 0xf12   :  { %v2848_v9 = vmax.f32 %v2692_v50, 0.0  ;;  %v2850_v57 = vmax.f32 %v2735_v51, 0.0  ;;  %v10072_v24 = vld [vmem:[#allocation16 + $0x3a8] sm:$0xff]   ;;  %v10073_v30 = vld [vmem:[#allocation16 + $0x370] sm:$0xff]   ;;  %v1814_v33 = vrot.slane %v11377_v47, %v11364_v31  ;;  %v1822_v36 = vrot.slane %v11377_v47, %v11367_v6 }
 0xf13   :  { %v2863_v34 = vpack.c.bf16 %v2847_v58, %v2831_v54  ;;  %v2865_v10 = vpack.c.bf16 %v2849_v59, %v2833_v55  ;;  %v10074_v5 = vld [vmem:[#allocation16 + $0x3f0] sm:$0xff]   ;;  %v10077_v54 = vld [vmem:[#allocation16 + $0x378] sm:$0xff]  }
 0xf14   :  { %v2864_v39 = vpack.c.bf16 %v2848_v9, %v2832_v62  ;;  %v2866_v35 = vpack.c.bf16 %v2850_v57, %v2834_v7  ;;  %9250 = vmatpush3.bf16.msra.mxu1 %v10047_v52  ;;  %9272 = vmatpush3.bf16.msra.mxu0 %v10048_v53  ;;  %v10075_v45 = vld [vmem:[#allocation16 + $0x330] sm:$0xff]   ;;  %v10078_v55 = vld [vmem:[#allocation16 + $0x3f8] sm:$0xff]  }
 0xf15   :  { %9279 = vmatprep.subr.bf16.mxu1 %v10049_v60  ;;  %9301 = vmatprep.subr.bf16.mxu0 %v10050_v61  ;;  %v10076_v49 = vld [vmem:[#allocation16 + $0x3b0] sm:$0xff]  }
 0xf16   :  { %4098 = vmatprep.mubr.bf16.mxu1 %v2864_v39  ;;  %4139 = vmatprep.mubr.bf16.mxu0 %v2866_v35  ;;  %v10080_v39 = vld [vmem:[#allocation16 + $0x3b8] sm:$0xff]  }
 0xf17   :  { %4099 = vmatmul.mubr.bf16.vlgmr.msra.gmra.mrb[60].mxu1 %v2863_v34  ;;  %4140 = vmatmul.mubr.bf16.vlgmr.msra.gmra.mrb[64].mxu0 %v2865_v10  ;;  %v10079_v10 = vld [vmem:[#allocation16 + $0x338] sm:$0xff]  }
 0xf18   :  { %9280 = vmatpush3.bf16.msra.mxu1 %v10051_v28  ;;  %9302 = vmatpush3.bf16.msra.mxu0 %v10052_v42 }
 0xf19   :  { %9281 = vmatprep.subr.bf16.mxu1 %v10053_v27  ;;  %9303 = vmatprep.subr.bf16.mxu0 %v10054_v43 }
 0xf1c   :  { %9282 = vmatpush3.bf16.msra.mxu1 %v10055_v41  ;;  %9304 = vmatpush3.bf16.msra.mxu0 %v10056_v11 }
 0xf1d   :  { %9283 = vmatprep.subr.bf16.mxu1 %v10057_v12  ;;  %9305 = vmatprep.subr.bf16.mxu0 %v10058_v13 }
 0xf20   :  { %9284 = vmatpush3.bf16.msra.mxu1 %v10059_v14  ;;  %9306 = vmatpush3.bf16.msra.mxu0 %v10060_v15 }
 0xf21   :  { %9285 = vmatprep.subr.bf16.mxu1 %v10061_v56  ;;  %9307 = vmatprep.subr.bf16.mxu0 %v10062_v16 }
 0xf24   :  { %9286 = vmatpush3.bf16.msra.mxu1 %v10063_v17  ;;  %9308 = vmatpush3.bf16.msra.mxu0 %v10064_v18  ;;  %v8647_v18 = vld [vmem:[#allocation17] ss:$0 sm:$0xff] }
 0xf25   :  { %9287 = vmatprep.subr.bf16.mxu1 %v10065_v19  ;;  %9309 = vmatprep.subr.bf16.mxu0 %v10066_v2 }
 0xf28   :  { %9288 = vmatpush3.bf16.msra.mxu1 %v10067_v20  ;;  %9310 = vmatpush3.bf16.msra.mxu0 %v10068_v21 }
 0xf29   :  { %9289 = vmatprep.subr.bf16.mxu1 %v10069_v22  ;;  %9311 = vmatprep.subr.bf16.mxu0 %v10070_v46 }
 0xf2c   :  { %v2771_v37 = vpop.f32.mrb[48].mxu1  ;;  %v2814_v40 = vpop.f32.mrb[52].mxu0  ;;  %9290 = vmatpush3.bf16.msra.mxu1 %v10071_v23  ;;  %9312 = vmatpush3.bf16.msra.mxu0 %v10072_v24 }
 0xf2d   :  { %v2772_v50 = vadd.f32 %v2771_v37, %v1810_v25  ;;  %v2815_v51 = vadd.f32 %v2814_v40, %v1818_v26  ;;  %v2773_v52 = vpop.f32.mrb[49].mxu1  ;;  %v2816_v53 = vpop.f32.mrb[53].mxu0  ;;  %9291 = vmatprep.subr.bf16.mxu1 %v10073_v30  ;;  %9313 = vmatprep.subr.bf16.mxu0 %v10074_v5 }
 0xf2e   :  { %v2774_v58 = vadd.f32 %v2773_v52, %v1814_v33  ;;  %v2817_v59 = vadd.f32 %v2816_v53, %v1822_v36  ;;  %v2775_v60 = vpop.f32.mrb[50].mxu1  ;;  %v2818_v61 = vpop.f32.mrb[54].mxu0 }
 0xf2f   :  { %v2776_v62 = vadd.f32 %v2775_v60, %v1810_v25  ;;  %v2819_v47 = vadd.f32 %v2818_v61, %v1818_v26  ;;  %v2777_v7 = vpop.f32.mrb[51].mxu1  ;;  %v2820_v9 = vpop.f32.mrb[55].mxu0  ;;  %v2835_v35 = vmax.f32 %v2772_v50, 0.0  ;;  %v2837_v28 = vmax.f32 %v2815_v51, 0.0 }
 0xf30   :  { %v2778_v57 = vadd.f32 %v2777_v7, %v1814_v33  ;;  %v2821_v34 = vadd.f32 %v2820_v9, %v1822_v36  ;;  %9292 = vmatpush3.bf16.msra.mxu1 %v10075_v45  ;;  %9314 = vmatpush3.bf16.msra.mxu0 %v10076_v49  ;;  %v2836_v43 = vmax.f32 %v2774_v58, 0.0  ;;  %v2838_v41 = vmax.f32 %v2817_v59, 0.0 }
 0xf31   :  { %v2851_v42 = vmax.f32 %v2776_v62, 0.0  ;;  %v2853_v27 = vmax.f32 %v2819_v47, 0.0  ;;  %9293 = vmatprep.subr.bf16.mxu1 %v10077_v54  ;;  %9315 = vmatprep.subr.bf16.mxu0 %v10078_v55 }
 0xf32   :  { %v2852_v11 = vmax.f32 %v2778_v57, 0.0  ;;  %v2854_v12 = vmax.f32 %v2821_v34, 0.0 }
 0xf33   :  { %v2867_v13 = vpack.c.bf16 %v2851_v42, %v2835_v35  ;;  %v2869_v14 = vpack.c.bf16 %v2853_v27, %v2837_v28 }
 0xf34   :  { %v2868_v15 = vpack.c.bf16 %v2852_v11, %v2836_v43  ;;  %v2870_v56 = vpack.c.bf16 %v2854_v12, %v2838_v41  ;;  %9294 = vmatpush3.bf16.msra.mxu1 %v10079_v10  ;;  %9316 = vmatpush3.bf16.msra.mxu0 %v10080_v39 }
 0xf35   :  { %9694 = vmatprep.subr.bf16.mxu0 %v10764_v1 }
 0xf36   :  { %4180 = vmatprep.mubr.bf16.mxu1 %v2868_v15  ;;  %4221 = vmatprep.mubr.bf16.mxu0 %v2870_v56 }
 0xf37   :  { %4181 = vmatmul.mubr.bf16.vlgmr.msra.gmra.mrb[64].mxu1 %v2867_v13  ;;  %4222 = vmatmul.mubr.bf16.vlgmr.msra.gmra.mrb[68].mxu0 %v2869_v14 }
 0xf38   :  { %4488 = vmatprep.mubr.bf16.mxu1 %v10763_v0  ;;  %9710 = vmatprep.mubr.msk.bf16.mxu0 %vm10765_vm0, %v10764_v1 }
 0xfaa   :  { %v9163_v16 = vpop.f32.mrb[52].mxu1  ;;  %v9185_v17 = vpop.f32.mrb[56].mxu0 }
 0xfab   :  { %v9164_v19 = vpop.f32.mrb[53].mxu1  ;;  %v9186_v2 = vpop.f32.mrb[57].mxu0 }
 0xfac   :  { %v9165_v20 = vadd.f32 %v9164_v19, %v9163_v16  ;;  %v9187_v21 = vadd.f32 %v9186_v2, %v9185_v17  ;;  %v9166_v22 = vpop.f32.mrb[54].mxu1  ;;  %v9188_v46 = vpop.f32.mrb[58].mxu0 }
 0xfad   :  { %v9167_v23 = vpop.f32.mrb[55].mxu1  ;;  %v9189_v24 = vpop.f32.mrb[59].mxu0 }
 0xfae   :  { %v3937_v25 = vadd.f32 %v9165_v20, %v8647_v18  ;;  %v9168_v26 = vadd.f32 %v9167_v23, %v9166_v22  ;;  %v9190_v30 = vadd.f32 %v9189_v24, %v9188_v46 }
 0xfb0   :  { %v3978_v5 = vadd.f32 %v9187_v21, %v3937_v25  ;;  %v3940_v33 = vadd.f32 %v9168_v26, %v8647_v18 }
 0xfb2   :  { %v3981_v36 = vadd.f32 %v9190_v30, %v3940_v33 }
 0xfca   :  { %v9207_v37 = vpop.f32.mrb[56].mxu1  ;;  %v9229_v40 = vpop.f32.mrb[60].mxu0 }
 0xfcb   :  { %v9208_v45 = vpop.f32.mrb[57].mxu1  ;;  %v9230_v49 = vpop.f32.mrb[61].mxu0 }
 0xfcc   :  { %v9209_v50 = vadd.f32 %v9208_v45, %v9207_v37  ;;  %v9231_v51 = vadd.f32 %v9230_v49, %v9229_v40  ;;  %v9210_v52 = vpop.f32.mrb[58].mxu1  ;;  %v9232_v53 = vpop.f32.mrb[62].mxu0  ;;  %v10081_v40 = vld [vmem:[#allocation7 + $0xc0] ss:$12 sps:$4 sm:$0xff]   ;;  %v10083_v45 = vld [vmem:[#allocation7 + $0xc4] ss:$12 sps:$4 sm:$0xff]  }
 0xfcd   :  { %v9211_v54 = vpop.f32.mrb[59].mxu1  ;;  %v9233_v55 = vpop.f32.mrb[63].mxu0  ;;  %v10084_v49 = vld [vmem:[#allocation7 + $0xc8] ss:$12 sps:$4 sm:$0xff]   ;;  %4456 = vmatprep.subr.bf16.mxu1 %v10083_v45 }
 0xfce   :  { %v4019_v58 = vadd.f32 %v9209_v50, %v3978_v5  ;;  %v9212_v59 = vadd.f32 %v9211_v54, %v9210_v52  ;;  %v9234_v60 = vadd.f32 %v9233_v55, %v9232_v53  ;;  %v10087_v50 = vld [vmem:[#allocation7 + $0xdc] ss:$12 sps:$4 sm:$0xff]   ;;  %9695 = vmatpush3.bf16.msra.mxu0 %v10084_v49  ;;  %4457 = vmatpush1.bf16.msra.mxu1 %v10081_v40  ;;  %v10085_v52 = vld [vmem:[#allocation7 + $0xd8] ss:$12 sps:$4 sm:$0xff]  }
 0xfcf   :  { %9696 = vmatprep.subr.bf16.mxu0 %v10764_v1  ;;  %4458 = vmatprep.subr.bf16.mxu1 %v10087_v50 }
 0xfd0   :  { %v4060_v61 = vadd.f32 %v9231_v51, %v4019_v58  ;;  %v4022_v62 = vadd.f32 %v9212_v59, %v3981_v36  ;;  %v10088_v51 = vld [vmem:[#allocation7 + $0xe0] ss:$12 sps:$4 sm:$0xff]  }
 0xfd2   :  { %v4063_v47 = vadd.f32 %v9234_v60, %v4022_v62  ;;  %9697 = vmatpush3.bf16.msra.mxu0 %v10088_v51  ;;  %4459 = vmatpush1.bf16.msra.mxu1 %v10085_v52 }
 0xfd3   :  { %9698 = vmatprep.subr.bf16.mxu0 %v10764_v1 }
 0xfea   :  { %v9251_v7 = vpop.f32.mrb[60].mxu1  ;;  %v9273_v9 = vpop.f32.mrb[64].mxu0 }
 0xfeb   :  { %v9252_v57 = vpop.f32.mrb[61].mxu1  ;;  %v9274_v34 = vpop.f32.mrb[65].mxu0 }
 0xfec   :  { %v9253_v10 = vadd.f32 %v9252_v57, %v9251_v7  ;;  %v9275_v39 = vadd.f32 %v9274_v34, %v9273_v9  ;;  %v9254_v35 = vpop.f32.mrb[62].mxu1  ;;  %v9276_v28 = vpop.f32.mrb[66].mxu0  ;;  %v10089_v7 = vld [vmem:[#allocation7 + $0xf0] ss:$12 sps:$4 sm:$0xff]   ;;  %v10092_v9 = vld [vmem:[#allocation7 + $0xf8] ss:$12 sps:$4 sm:$0xff]  }
 0xfed   :  { %v9255_v42 = vpop.f32.mrb[63].mxu1  ;;  %v9277_v27 = vpop.f32.mrb[67].mxu0  ;;  %9699 = vmatpush3.bf16.msra.mxu0 %v10092_v9  ;;  %v10095_v57 = vld [vmem:[#allocation7 + $0x10c] ss:$12 sps:$4 sm:$0xff]   ;;  %v10093_v34 = vld [vmem:[#allocation7 + $0x108] ss:$12 sps:$4 sm:$0xff]  }
 0xfee   :  { %v4101_v43 = vadd.f32 %v9253_v10, %v4060_v61  ;;  %v9256_v41 = vadd.f32 %v9255_v42, %v9254_v35  ;;  %v9278_v11 = vadd.f32 %v9277_v27, %v9276_v28  ;;  %9700 = vmatprep.subr.bf16.mxu0 %v10764_v1  ;;  %v10096_v10 = vld [vmem:[#allocation7 + $0x110] ss:$12 sps:$4 sm:$0xff]   ;;  %v10097_v35 = vld [vmem:[#allocation7 + $0x120] ss:$12 sps:$4 sm:$0xff]   ;;  %v10100_v28 = vld [vmem:[#allocation7 + $0x128] ss:$12 sps:$4 sm:$0xff]  }
 0xfef   :  { %v10103_v42 = vld [vmem:[#allocation7 + $0x13c] ss:$12 sps:$4 sm:$0xff]   ;;  %v10101_v27 = vld [vmem:[#allocation7 + $0x138] ss:$12 sps:$4 sm:$0xff]  }
 0xff0   :  { %v4142_v12 = vadd.f32 %v9275_v39, %v4101_v43  ;;  %v4104_v13 = vadd.f32 %v9256_v41, %v4063_v47  ;;  %v10091_v47 = vld [vmem:[#allocation7 + $0xf4] ss:$12 sps:$4 sm:$0xff]   ;;  %v10099_v39 = vld [vmem:[#allocation7 + $0x124] ss:$12 sps:$4 sm:$0xff]  }
 0xff1   :  { %4460 = vmatprep.subr.bf16.mxu1 %v10091_v47  ;;  %9701 = vmatpush3.bf16.msra.mxu0 %v10096_v10  ;;  %v10104_v43 = vld [vmem:[#allocation7 + $0x140] ss:$12 sps:$4 sm:$0xff]  }
 0xff2   :  { %v4145_v14 = vadd.f32 %v9278_v11, %v4104_v13  ;;  %4461 = vmatpush1.bf16.msra.mxu1 %v10089_v7  ;;  %9702 = vmatprep.subr.bf16.mxu0 %v10764_v1  ;;  %v10107_v41 = vld [vmem:[#allocation7 + $0x154] ss:$12 sps:$4 sm:$0xff]   ;;  %v10105_v11 = vld [vmem:[#allocation7 + $0x150] ss:$12 sps:$4 sm:$0xff]   ;;  %v10111_v13 = vld [vmem:[#allocation7 + $0x16c] ss:$12 sps:$4 sm:$0xff]  }
 0xff3   :  { %4462 = vmatprep.subr.bf16.mxu1 %v10095_v57 }
 0xff5   :  { %9703 = vmatpush3.bf16.msra.mxu0 %v10100_v28 }
 0xff6   :  { %4463 = vmatpush1.bf16.msra.mxu1 %v10093_v34  ;;  %9704 = vmatprep.subr.bf16.mxu0 %v10764_v1 }
 0xff7   :  { %4464 = vmatprep.subr.bf16.mxu1 %v10099_v39 }
 0xff9   :  { %9705 = vmatpush3.bf16.msra.mxu0 %v10104_v43 }
 0xffa   :  { %4465 = vmatpush1.bf16.msra.mxu1 %v10097_v35  ;;  %9706 = vmatprep.subr.bf16.mxu0 %v10764_v1 }
 0xffb   :  { %4466 = vmatprep.subr.bf16.mxu1 %v10103_v42 }
 0xffe   :  { %4467 = vmatpush1.bf16.msra.mxu1 %v10101_v27 }
 0xfff   :  { %4468 = vmatprep.subr.bf16.mxu1 %v10107_v41 }
0x1002   :  { %4469 = vmatpush1.bf16.msra.mxu1 %v10105_v11 }
0x1003   :  { %4470 = vmatprep.subr.bf16.mxu1 %v10111_v13 }
0x100a   :  { %v9295_v15 = vpop.f32.mrb[64].mxu1  ;;  %v9317_v56 = vpop.f32.mrb[68].mxu0 }
0x100b   :  { %v9296_v16 = vpop.f32.mrb[65].mxu1  ;;  %v9318_v17 = vpop.f32.mrb[69].mxu0 }
0x100c   :  { %v9297_v18 = vadd.f32 %v9296_v16, %v9295_v15  ;;  %v9319_v19 = vadd.f32 %v9318_v17, %v9317_v56  ;;  %v9298_v2 = vpop.f32.mrb[66].mxu1  ;;  %v9320_v20 = vpop.f32.mrb[70].mxu0  ;;  %v10112_v15 = vld [vmem:[#allocation7 + $0x170] ss:$12 sps:$4 sm:$0xff]  }
0x100d   :  { %v9299_v21 = vpop.f32.mrb[67].mxu1  ;;  %v9321_v22 = vpop.f32.mrb[71].mxu0 }
0x100e   :  { %v4183_v46 = vadd.f32 %v9297_v18, %v4142_v12  ;;  %v9300_v23 = vadd.f32 %v9299_v21, %v9298_v2  ;;  %v9322_v24 = vadd.f32 %v9321_v22, %v9320_v20  ;;  %v10108_v12 = vld [vmem:[#allocation7 + $0x158] ss:$12 sps:$4 sm:$0xff]   ;;  %v8776_v21 = vld [vmem:[#allocation22] ss:$0 sm:$0xff] }
0x100f   :  { %9707 = vmatpush3.bf16.msra.mxu0 %v10108_v12 }
0x1010   :  { %v4224_v25 = vadd.f32 %v9319_v19, %v4183_v46  ;;  %v4186_v26 = vadd.f32 %v9300_v23, %v4145_v14  ;;  %v10109_v14 = vld [vmem:[#allocation7 + $0x168] ss:$12 sps:$4 sm:$0xff]   ;;  %9708 = vmatprep.subr.bf16.mxu0 %v10764_v1 }
0x1011   :  { %4471 = vmatpush1.bf16.msra.mxu1 %v10109_v14 }
0x1012   :  { %v4227_v30 = vadd.f32 %v9322_v24, %v4186_v26  ;;  %v4230_v5 = vadd.f32 %v4224_v25, %v11322_v38  ;;  %9714 = vmatprep.subr.bf16.mxu1 %v10764_v1  ;;  %v8777_v25 = vld [vmem:[#allocation23] ss:$0 sm:$0xff] }
0x1013   :  { %9709 = vmatpush3.bf16.msra.mxu0 %v10112_v15 }
0x1014   :  { %v4234_v33 = vmul.f32 %v11306_v8, %v4230_v5  ;;  %v4231_v36 = vadd.f32 %v4227_v30, %v11324_v4  ;;  %9738 = vmatprep.subr.bf16.mxu0 %v10764_v1 }
0x1016   :  { %4236 = vadd.xlane.f32.xlu1 %v4234_v33  ;;  %v4235_v37 = vmul.f32 %v11306_v8, %v4231_v36 }
0x1018   :  { %4238 = vadd.xlane.f32.xlu0 %v4235_v37 }
0x10a3   :  { %v4237_v38 = vpop.xlane.xlu1 %4236 }
0x10a4   :  { %v4240_v4 = vmul.f32 0.03125, %v4237_v38 }
0x10a5   :  { %v4239_v53 = vpop.xlane.xlu0 %4238 }
0x10a6   :  { %v4242_v54 = vsub.f32 %v4230_v5, %v4240_v4  ;;  %v4241_v55 = vmul.f32 0.03125, %v4239_v53 }
0x10a8   :  { %v4243_v58 = vsub.f32 %v4231_v36, %v4241_v55  ;;  %v4244_v59 = vmul.f32 %v11306_v8, %v4242_v54  ;;  %v4311_v36 = vld [vmem:[#allocation8 + $0x3] sm:$0x7] }
0x10a9   :  { %v4320_v37 = vrot.slane %v4311_v36, %v11113_v29  ;;  %v4324_v49 = vrot.slane %v4311_v36, %v11145_v48 }
0x10aa   :  { %v4246_v60 = vmul.f32 %v4244_v59, %v4244_v59  ;;  %v4245_v61 = vmul.f32 %v11306_v8, %v4243_v58  ;;  %v4316_v58 = vrot.slane %v4311_v36, %v11117_v32 }
0x10ac   :  { %4248 = vadd.xlane.f32.xlu1 %v4246_v60  ;;  %v4247_v62 = vmul.f32 %v4245_v61, %v4245_v61 }
0x10ae   :  { %4250 = vadd.xlane.f32.xlu0 %v4247_v62 }
0x1139   :  { %v4249_v56 = vpop.xlane.xlu1 %4248 }
0x113a   :  { %v4252_v16 = vmul.f32 0.03125, %v4249_v56 }
0x113b   :  { %v4251_v17 = vpop.xlane.xlu0 %4250 }
0x113c   :  { %v4254_v18 = vadd.f32 1e-05, %v4252_v16  ;;  %v4253_v19 = vmul.f32 0.03125, %v4251_v17 }
0x113e   :  { %10294 = vrsqrt.f32 %v4254_v18  ;;  %v4255_v2 = vadd.f32 1e-05, %v4253_v19 }
0x1140   :  { %10296 = vrsqrt.f32 %v4255_v2 }
0x1148   :  { %v10295_v20 = vpop.eup %10294 }
0x1149   :  { %v4258_v22 = vmul.f32 %v10295_v20, %v4244_v59 }
0x114a   :  { %v10297_v46 = vpop.eup %10296 }
0x114b   :  { %v4259_v23 = vmul.f32 %v10297_v46, %v4245_v61  ;;  %v4266_v24 = vmul.f32 %v8776_v21, %v4258_v22 }
0x114d   :  { %v4267_v26 = vmul.f32 %v8776_v21, %v4259_v23  ;;  %v11414_v30 = vadd.f32 %v8777_v25, %v4266_v24 }
0x114f   :  { %v11416_v5 = vadd.f32 %v8777_v25, %v4267_v26 }
0x1151   :  { %v4276_v33 = vpack.c.bf16 %v11416_v5, %v11414_v30 }
0x1153   :  { %4489 = vmatmul.mubr.bf16.vlgmr.msra.gmra.mrb[68].mxu1 %v4276_v33  ;;  %9711 = vmatmul.mubr.bf16.vlgmr.msra.gmra.mrb[72].mxu0 %v4276_v33 }
0x1154   :  { %9716 = vmatprep.mubr.msk.bf16.mxu1 %vm10765_vm0, %v10764_v1  ;;  %9740 = vmatprep.mubr.msk.bf16.mxu0 %vm10765_vm0, %v10764_v1 }
0x1226   :  { %v4490_v40 = vpop.f32.mrb[68].mxu1  ;;  %v4533_v45 = vpop.f32.mrb[72].mxu0 }
0x1227   :  { %v4492_v50 = vpop.f32.mrb[69].mxu1  ;;  %v9712_v51 = vpop.f32.mrb[73].mxu0  ;;  %v4491_v62 = vadd.f32 %v4490_v40, %v4316_v58  ;;  %v4534_v9 = vadd.f32 %v4533_v45, %v4324_v49 }
0x1228   :  { %v4493_v52 = vadd.f32 %v4492_v50, %v4320_v37  ;;  %v4494_v38 = vpop.f32.mrb[70].mxu1  ;;  %v4536_v4 = vpop.f32.mrb[74].mxu0 }
0x1229   :  { %v11426_v53 = vadd.f32 %v4536_v4, %v4324_v49  ;;  %v4496_v54 = vpop.f32.mrb[71].mxu1  ;;  %v9713_v55 = vpop.f32.mrb[75].mxu0  ;;  %v11436_v7 = vpack.c.bf16 %v4491_v62, %v4491_v62  ;;  %v4495_v34 = vadd.f32 %v4494_v38, %v4316_v58  ;;  %v11445_v10 = vpack.c.bf16 %v4534_v9, %v4534_v9 }
0x122a   :  { %v11429_v59 = vpack.c.bf16 %v4493_v52, %v4493_v52  ;;  %v4497_v60 = vadd.f32 %v4496_v54, %v4320_v37 }
0x122b   :  { %v11447_v39 = vpack.c.bf16 %v4495_v34, %v4495_v34  ;;  %v4668_v35 = vsel %vm673_vm2, %v11445_v10, 0  ;;  %v11472_v40 = vpack.c.bf16 %v11426_v53, %v11426_v53 }
0x122c   :  { %v4550_v61 = vsel %vm550_vm1, %v11429_v59, 0  ;;  %v11434_v47 = vpack.c.bf16 %v4497_v60, %v4497_v60 }
0x122d   :  { %9715 = vmatpush3.bf16.xpose.msra.mxu1 %v4550_v61  ;;  %v4714_v51 = vsel %vm673_vm2, %v11472_v40, 0 }
0x122e   :  { %9720 = vmatprep.subr.bf16.mxu1 %v10764_v1  ;;  %v4596_v57 = vsel %vm550_vm1, %v11434_v47, 0 }
0x1234   :  { %9717 = vmatmul.mubr.msk.bf16.vlgmr.msra.gmra.mrb[72].mxu1 %vm550_vm1, %v11436_v7 }
0x1235   :  { %9721 = vmatpush3.bf16.xpose.msra.mxu1 %v4596_v57  ;;  %9722 = vmatprep.mubr.msk.bf16.mxu1 %vm10765_vm0, %v10764_v1 }
0x1236   :  { %9726 = vmatprep.subr.bf16.mxu1 %v10764_v1 }
0x123c   :  { %9723 = vmatmul.mubr.msk.bf16.vlgmr.msra.gmra.mrb[76].mxu1 %vm550_vm1, %v11447_v39 }
0x123d   :  { %9727 = vmatpush3.bf16.msra.mxu1 %v4668_v35  ;;  %9728 = vmatprep.mubr.msk.bf16.mxu1 %vm10765_vm0, %v10764_v1 }
0x123e   :  { %9732 = vmatprep.subr.bf16.mxu1 %v10764_v1 }
0x1307   :  { %v4586_v28 = vpop.f32.mrb[72].mxu1 }
0x1308   :  { %v4638_v42 = vmul.f32 0.35355338, %v4586_v28  ;;  %v9718_v27 = vpop.f32.mrb[73].mxu1 }
0x1309   :  { %v4589_v43 = vpop.f32.mrb[74].mxu1 }
0x130a   :  { %v9719_v41 = vpop.f32.mrb[75].mxu1  ;;  %v4640_v11 = vsel %vm645_vm3, %v4638_v42, -inf }
0x130b   :  { %4641 = vmax.xlane.f32.xlu1 %v4640_v11 }
0x130f   :  { %v4632_v12 = vpop.f32.mrb[76].mxu1 }
0x1310   :  { %v4639_v13 = vmul.f32 0.35355338, %v4632_v12  ;;  %v9724_v14 = vpop.f32.mrb[77].mxu1 }
0x1311   :  { %v4635_v15 = vpop.f32.mrb[78].mxu1 }
0x1312   :  { %v9725_v56 = vpop.f32.mrb[79].mxu1  ;;  %v4643_v16 = vsel %vm645_vm3, %v4639_v13, -inf }
0x1313   :  { %4644 = vmax.xlane.f32.xlu0 %v4643_v16 }
0x1398   :  { %v4642_v17 = vpop.xlane.xlu1 %4641 }
0x1399   :  { %v4646_v18 = vsub.f32 %v4638_v42, %v4642_v17 }
0x139b   :  { %v4648_v19 = vmul.f32 1.442695, %v4646_v18 }
0x139d   :  { %10298 = vpow2.f32 %v4648_v19 }
0x13a0   :  { %v4645_v2 = vpop.xlane.xlu0 %4644 }
0x13a1   :  { %v4647_v20 = vsub.f32 %v4639_v13, %v4645_v2 }
0x13a3   :  { %v4650_v21 = vmul.f32 1.442695, %v4647_v20 }
0x13a5   :  { %10300 = vpow2.f32 %v4650_v21 }
0x13a7   :  { %v10299_v22 = vpop.eup %10298 }
0x13a8   :  { %v4652_v46 = vsel %vm645_vm3, %v10299_v22, 0.0 }
0x13a9   :  { %4653 = vadd.xlane.f32.xlu1 %v4652_v46 }
0x13af   :  { %v10301_v23 = vpop.eup %10300 }
0x13b0   :  { %v4655_v24 = vsel %vm645_vm3, %v10301_v23, 0.0 }
0x13b1   :  { %4656 = vadd.xlane.f32.xlu0 %v4655_v24 }
0x13ba   :  { %4760 = vrot.lane.b32.xlu1 %v11429_v59, %s10766_s15 }
0x13be   :  { %4757 = vrot.lane.b32.xlu1 %v11436_v7, %s10766_s15 }
0x13c2   :  { %4809 = vrot.lane.b32.xlu1 %v11447_v39, %s10766_s15 }
0x13c7   :  { %4812 = vrot.lane.b32.xlu0 %v11434_v47, %s10766_s15 }
0x1436   :  { %v4654_v25 = vpop.xlane.xlu1 %4653 }
0x1437   :  { %10302 = vrcp.f32 %v4654_v25 }
0x143a   :  { %v4761_v26 = vpop.permute.xlu1 %4760 }
0x143b   :  { %v4766_v33 = vsel %vm550_vm1, %v4761_v26, 0 }
0x143c   :  { %9739 = vmatpush3.bf16.xpose.msra.mxu0 %v4766_v33 }
0x143d   :  { %9750 = vmatprep.subr.bf16.mxu0 %v10764_v1 }
0x143e   :  { %v4657_v36 = vpop.xlane.xlu0 %4656  ;;  %v4758_v49 = vpop.permute.xlu1 %4757 }
0x143f   :  { %10304 = vrcp.f32 %v4657_v36 }
0x1441   :  { %v10303_v37 = vpop.eup %10302 }
0x1442   :  { %v4660_v45 = vmul.f32 %v10303_v37, %v10299_v22  ;;  %v4813_v4 = vpop.permute.xlu0 %4812  ;;  %v4810_v55 = vpop.permute.xlu1 %4809 }
0x1443   :  { %9741 = vmatmul.mubr.msk.bf16.vlgmr.msra.gmra.mrb[76].mxu0 %vm550_vm1, %v4758_v49  ;;  %v4818_v54 = vsel %vm550_vm1, %v4813_v4, 0 }
0x1444   :  { %v4662_v50 = vpack.c.bf16 %v4660_v45, %v4660_v45  ;;  %9752 = vmatprep.mubr.msk.bf16.mxu0 %vm10765_vm0, %v10764_v1 }
0x1446   :  { %9729 = vmatmul.mubr.msk.bf16.vlgmr.msra.gmra.mrb[80].mxu1 %vm645_vm3, %v4662_v50 }
0x1447   :  { %9733 = vmatpush3.bf16.msra.mxu1 %v4714_v51  ;;  %9734 = vmatprep.mubr.msk.bf16.mxu1 %vm10765_vm0, %v10764_v1 }
0x1448   :  { %9744 = vmatprep.subr.bf16.mxu1 %v10764_v1 }
0x1449   :  { %v10305_v52 = vpop.eup %10304 }
0x144a   :  { %v4661_v38 = vmul.f32 %v10305_v52, %v10301_v23 }
0x144c   :  { %v4663_v53 = vpack.c.bf16 %v4661_v38, %v4661_v38 }
0x144e   :  { %9735 = vmatmul.mubr.msk.bf16.vlgmr.msra.gmra.mrb[84].mxu1 %vm645_vm3, %v4663_v53 }
0x144f   :  { %9746 = vmatprep.mubr.msk.bf16.mxu1 %vm10765_vm0, %v10764_v1 }
0x1450   :  { %9745 = vmatpush3.bf16.xpose.msra.mxu1 %v4818_v54 }
0x1451   :  { %9756 = vmatprep.subr.bf16.mxu1 %v10764_v1 }
0x1457   :  { %9747 = vmatmul.mubr.msk.bf16.vlgmr.msra.gmra.mrb[88].mxu1 %vm550_vm1, %v4810_v55 }
0x1458   :  { %9758 = vmatprep.mubr.msk.bf16.mxu1 %vm10765_vm0, %v10764_v1 }
0x1516   :  { %v4802_v58 = vpop.f32.mrb[76].mxu0 }
0x1517   :  { %v4860_v60 = vmul.f32 0.35355338, %v4802_v58  ;;  %v9742_v61 = vpop.f32.mrb[77].mxu0 }
0x1518   :  { %v4805_v62 = vpop.f32.mrb[78].mxu0 }
0x1519   :  { %v11491_v9 = vpop.f32.mrb[80].mxu1  ;;  %v9743_v57 = vpop.f32.mrb[79].mxu0  ;;  %v4862_v34 = vsel %vm645_vm3, %v4860_v60, -inf }
0x151a   :  { %4863 = vmax.xlane.f32.xlu1 %v4862_v34  ;;  %v9730_v35 = vpop.f32.mrb[81].mxu1 }
0x151b   :  { %v4707_v28 = vpop.f32.mrb[82].mxu1 }
0x151c   :  { %v9731_v42 = vpop.f32.mrb[83].mxu1 }
0x1521   :  { %v11494_v27 = vpop.f32.mrb[84].mxu1 }
0x1522   :  { %v9736_v43 = vpop.f32.mrb[85].mxu1 }
0x1523   :  { %v4753_v41 = vpop.f32.mrb[86].mxu1 }
0x1524   :  { %v9737_v11 = vpop.f32.mrb[87].mxu1 }
0x152a   :  { %v4854_v12 = vpop.f32.mrb[88].mxu1 }
0x152b   :  { %v4861_v13 = vmul.f32 0.35355338, %v4854_v12  ;;  %v9748_v14 = vpop.f32.mrb[89].mxu1  ;;  %4887 = vrot.lane.b32.xlu1 %v11445_v10, %s10766_s15 }
0x152c   :  { %v4857_v15 = vpop.f32.mrb[90].mxu1 }
0x152d   :  { %v9749_v56 = vpop.f32.mrb[91].mxu1  ;;  %v4865_v16 = vsel %vm645_vm3, %v4861_v13, -inf }
0x152e   :  { %4866 = vmax.xlane.f32.xlu0 %v4865_v16 }
0x152f   :  { %4986 = vrot.lane.b32.xlu1 %v11429_v59, %s10750_s13 }
0x1533   :  { %5036 = vrot.lane.b32.xlu1 %v11434_v47, %s10750_s13 }
0x1537   :  { %4984 = vrot.lane.b32.xlu1 %v11436_v7, %s10750_s13 }
0x15a7   :  { %v4864_v17 = vpop.xlane.xlu1 %4863 }
0x15a8   :  { %v4868_v18 = vsub.f32 %v4860_v60, %v4864_v17 }
0x15aa   :  { %v4870_v19 = vmul.f32 1.442695, %v4868_v18 }
0x15ab   :  { %v4888_v2 = vpop.permute.xlu1 %4887 }
0x15ac   :  { %10306 = vpow2.f32 %v4870_v19  ;;  %v4893_v20 = vsel %vm673_vm2, %v4888_v2, 0 }
0x15ad   :  { %9751 = vmatpush3.bf16.msra.mxu0 %v4893_v20 }
0x15ae   :  { %9762 = vmatprep.subr.bf16.mxu0 %v10764_v1 }
0x15af   :  { %v4987_v37 = vpop.permute.xlu1 %4986 }
0x15b0   :  { %v4992_v50 = vsel %vm550_vm1, %v4987_v37, 0 }
0x15b3   :  { %v5037_v51 = vpop.permute.xlu1 %5036 }
0x15b4   :  { %v5042_v60 = vsel %vm550_vm1, %v5037_v51, 0 }
0x15b6   :  { %v10307_v21 = vpop.eup %10306 }
0x15b7   :  { %v4874_v22 = vsel %vm645_vm3, %v10307_v21, 0.0  ;;  %v4985_v38 = vpop.permute.xlu1 %4984 }
0x15b8   :  { %4875 = vadd.xlane.f32.xlu0 %v4874_v22 }
0x15bb   :  { %v4867_v46 = vpop.xlane.xlu0 %4866 }
0x15bc   :  { %v4869_v23 = vsub.f32 %v4861_v13, %v4867_v46 }
0x15be   :  { %v4872_v24 = vmul.f32 1.442695, %v4869_v23 }
0x15c0   :  { %10308 = vpow2.f32 %v4872_v24 }
0x15ca   :  { %v10309_v25 = vpop.eup %10308 }
0x15cb   :  { %v4877_v26 = vsel %vm645_vm3, %v10309_v25, 0.0 }
0x15cc   :  { %4878 = vadd.xlane.f32.xlu0 %v4877_v26 }
0x15e2   :  { %4936 = vrot.lane.b32.xlu0 %v11472_v40, %s10766_s15 }
0x15e6   :  { %5034 = vrot.lane.b32.xlu0 %v11447_v39, %s10750_s13 }
0x1645   :  { %v4876_v33 = vpop.xlane.xlu0 %4875 }
0x1646   :  { %10310 = vrcp.f32 %v4876_v33 }
0x1650   :  { %v10311_v36 = vpop.eup %10310 }
0x1651   :  { %v4882_v45 = vmul.f32 %v10311_v36, %v10307_v21 }
0x1653   :  { %v4884_v49 = vpack.c.bf16 %v4882_v45, %v4882_v45 }
0x1655   :  { %9753 = vmatmul.mubr.msk.bf16.vlgmr.msra.gmra.mrb[80].mxu0 %vm645_vm3, %v4884_v49 }
0x1656   :  { %9763 = vmatpush3.bf16.xpose.msra.mxu0 %v4992_v50  ;;  %9764 = vmatprep.mubr.msk.bf16.mxu0 %vm10765_vm0, %v10764_v1 }
0x1657   :  { %9774 = vmatprep.subr.bf16.mxu0 %v10764_v1 }
0x1659   :  { %v4879_v52 = vpop.xlane.xlu0 %4878 }
0x165a   :  { %10312 = vrcp.f32 %v4879_v52 }
0x165d   :  { %v4937_v4 = vpop.permute.xlu0 %4936  ;;  %9765 = vmatmul.mubr.msk.bf16.vlgmr.msra.gmra.mrb[84].mxu0 %vm550_vm1, %v4985_v38 }
0x165e   :  { %v4942_v53 = vsel %vm673_vm2, %v4937_v4, 0  ;;  %9776 = vmatprep.mubr.msk.bf16.mxu0 %vm10765_vm0, %v10764_v1 }
0x165f   :  { %9757 = vmatpush3.bf16.msra.mxu1 %v4942_v53 }
0x1660   :  { %9768 = vmatprep.subr.bf16.mxu1 %v10764_v1 }
0x1661   :  { %v5035_v61 = vpop.permute.xlu0 %5034 }
0x1664   :  { %v10313_v54 = vpop.eup %10312 }
0x1665   :  { %v4883_v55 = vmul.f32 %v10313_v54, %v10309_v25 }
0x1667   :  { %v4885_v58 = vpack.c.bf16 %v4883_v55, %v4883_v55 }
0x1669   :  { %9759 = vmatmul.mubr.msk.bf16.vlgmr.msra.gmra.mrb[92].mxu1 %vm645_vm3, %v4885_v58 }
0x166a   :  { %9769 = vmatpush3.bf16.xpose.msra.mxu1 %v5042_v60  ;;  %9770 = vmatprep.mubr.msk.bf16.mxu1 %vm10765_vm0, %v10764_v1 }
0x166b   :  { %9780 = vmatprep.subr.bf16.mxu1 %v10764_v1 }
0x1671   :  { %9771 = vmatmul.mubr.msk.bf16.vlgmr.msra.gmra.mrb[96].mxu1 %vm550_vm1, %v5035_v61 }
0x1672   :  { %9782 = vmatprep.mubr.msk.bf16.mxu1 %vm10765_vm0, %v10764_v1 }
0x1728   :  { %v11531_v62 = vpop.f32.mrb[80].mxu0 }
0x1729   :  { %v9754_v57 = vpop.f32.mrb[81].mxu0 }
0x172a   :  { %v4932_v34 = vpop.f32.mrb[82].mxu0 }
0x172b   :  { %v9755_v35 = vpop.f32.mrb[83].mxu0 }
0x1730   :  { %v5028_v28 = vpop.f32.mrb[84].mxu0 }
0x1731   :  { %v5084_v42 = vmul.f32 0.35355338, %v5028_v28  ;;  %v9766_v43 = vpop.f32.mrb[85].mxu0 }
0x1732   :  { %v5031_v41 = vpop.f32.mrb[86].mxu0 }
0x1733   :  { %v9767_v11 = vpop.f32.mrb[87].mxu0  ;;  %v5086_v12 = vsel %vm645_vm3, %v5084_v42, -inf }
0x1734   :  { %5087 = vmax.xlane.f32.xlu1 %v5086_v12 }
0x173c   :  { %v11534_v13 = vpop.f32.mrb[92].mxu1 }
0x173d   :  { %v9897_v14 = vpack.i.bf16 %v11534_v13, %v11531_v62  ;;  %v9760_v15 = vpop.f32.mrb[93].mxu1 }
0x173e   :  { %v4981_v56 = vpop.f32.mrb[94].mxu1 }
0x173f   :  { %v9761_v16 = vpop.f32.mrb[95].mxu1 }
0x1744   :  { %v5078_v17 = vpop.f32.mrb[96].mxu1 }
0x1745   :  { %v5085_v18 = vmul.f32 0.35355338, %v5078_v17  ;;  %v9772_v19 = vpop.f32.mrb[97].mxu1  ;;  %5110 = vrot.lane.b32.xlu1 %v11445_v10, %s10750_s13 }
0x1746   :  { %v5081_v2 = vpop.f32.mrb[98].mxu1 }
0x1747   :  { %v9773_v20 = vpop.f32.mrb[99].mxu1  ;;  %v5089_v21 = vsel %vm645_vm3, %v5085_v18, -inf }
0x1748   :  { %5090 = vmax.xlane.f32.xlu0 %v5089_v21 }
0x1749   :  { %5208 = vrot.lane.b32.xlu1 %v11429_v59, %s10767_s5 }
0x174d   :  { %5258 = vrot.lane.b32.xlu1 %v11434_v47, %s10767_s5 }
0x1751   :  { %5206 = vrot.lane.b32.xlu1 %v11436_v7, %s10767_s5 }
0x17c1   :  { %v5088_v22 = vpop.xlane.xlu1 %5087 }
0x17c2   :  { %v5092_v46 = vsub.f32 %v5084_v42, %v5088_v22 }
0x17c4   :  { %v5094_v23 = vmul.f32 1.442695, %v5092_v46 }
0x17c5   :  { %v5111_v24 = vpop.permute.xlu1 %5110 }
0x17c6   :  { %10314 = vpow2.f32 %v5094_v23  ;;  %v5116_v25 = vsel %vm673_vm2, %v5111_v24, 0 }
0x17c7   :  { %9775 = vmatpush3.bf16.msra.mxu0 %v5116_v25 }
0x17c8   :  { %9786 = vmatprep.subr.bf16.mxu0 %v10764_v1 }
0x17c9   :  { %v5209_v50 = vpop.permute.xlu1 %5208 }
0x17ca   :  { %v5214_v38 = vsel %vm550_vm1, %v5209_v50, 0 }
0x17cd   :  { %v5259_v4 = vpop.permute.xlu1 %5258 }
0x17ce   :  { %v5264_v57 = vsel %vm550_vm1, %v5259_v4, 0 }
0x17d0   :  { %v10315_v26 = vpop.eup %10314 }
0x17d1   :  { %v5098_v33 = vsel %vm645_vm3, %v10315_v26, 0.0 }
0x17d2   :  { %5099 = vadd.xlane.f32.xlu0 %v5098_v33 }
0x17d5   :  { %v5091_v59 = vpop.xlane.xlu0 %5090 }
0x17d6   :  { %v5093_v36 = vsub.f32 %v5085_v18, %v5091_v59 }
0x17d8   :  { %v5096_v47 = vmul.f32 1.442695, %v5093_v36 }
0x17da   :  { %10316 = vpow2.f32 %v5096_v47 }
0x17e4   :  { %v10317_v37 = vpop.eup %10316 }
0x17e5   :  { %v5101_v7 = vsel %vm645_vm3, %v10317_v37, 0.0 }
0x17e6   :  { %5102 = vadd.xlane.f32.xlu0 %v5101_v7 }
0x17fc   :  { %5158 = vrot.lane.b32.xlu0 %v11472_v40, %s10750_s13 }
0x1800   :  { %5256 = vrot.lane.b32.xlu0 %v11447_v39, %s10767_s5  ;;  %v5207_v39 = vpop.permute.xlu1 %5206 }
0x185f   :  { %v5100_v45 = vpop.xlane.xlu0 %5099 }
0x1860   :  { %10318 = vrcp.f32 %v5100_v45 }
0x186a   :  { %v10319_v49 = vpop.eup %10318 }
0x186b   :  { %v5106_v51 = vmul.f32 %v10319_v49, %v10315_v26 }
0x186d   :  { %v5108_v52 = vpack.c.bf16 %v5106_v51, %v5106_v51 }
0x186f   :  { %9777 = vmatmul.mubr.msk.bf16.vlgmr.msra.gmra.mrb[88].mxu0 %vm645_vm3, %v5108_v52 }
0x1870   :  { %9787 = vmatpush3.bf16.xpose.msra.mxu0 %v5214_v38  ;;  %9788 = vmatprep.mubr.msk.bf16.mxu0 %vm10765_vm0, %v10764_v1 }
0x1871   :  { %9798 = vmatprep.subr.bf16.mxu0 %v10764_v1 }
0x1873   :  { %v5103_v53 = vpop.xlane.xlu0 %5102 }
0x1874   :  { %10320 = vrcp.f32 %v5103_v53 }
0x1877   :  { %v5159_v54 = vpop.permute.xlu0 %5158  ;;  %9789 = vmatmul.mubr.msk.bf16.vlgmr.msra.gmra.mrb[92].mxu0 %vm550_vm1, %v5207_v39 }
0x1878   :  { %v5164_v55 = vsel %vm673_vm2, %v5159_v54, 0  ;;  %9800 = vmatprep.mubr.msk.bf16.mxu0 %vm10765_vm0, %v10764_v1 }
0x1879   :  { %9781 = vmatpush3.bf16.msra.mxu1 %v5164_v55 }
0x187a   :  { %9792 = vmatprep.subr.bf16.mxu1 %v10764_v1 }
0x187b   :  { %v5257_v34 = vpop.permute.xlu0 %5256 }
0x187e   :  { %v10321_v58 = vpop.eup %10320 }
0x187f   :  { %v5107_v60 = vmul.f32 %v10321_v58, %v10317_v37  ;;  %v10114_v58 = vld [vmem:[#allocation10 + $0x48] sm:$0xff]  }
0x1881   :  { %v5109_v61 = vpack.c.bf16 %v5107_v60, %v5107_v60  ;;  %v10115_v60 = vld [vmem:[#allocation10 + $0x50] sm:$0xff]  }
0x1883   :  { %9783 = vmatmul.mubr.msk.bf16.vlgmr.msra.gmra.mrb[100].mxu1 %vm645_vm3, %v5109_v61  ;;  %v10116_v61 = vld [vmem:[#allocation10 + $0x58] sm:$0xff]  }
0x1884   :  { %9793 = vmatpush3.bf16.xpose.msra.mxu1 %v5264_v57  ;;  %9794 = vmatprep.mubr.msk.bf16.mxu1 %vm10765_vm0, %v10764_v1  ;;  %v10117_v57 = vld [vmem:[#allocation10 + $0x60] sm:$0xff]  }
0x1885   :  { %9804 = vmatprep.subr.bf16.mxu1 %v10764_v1 }
0x188b   :  { %9795 = vmatmul.mubr.msk.bf16.vlgmr.msra.gmra.mrb[104].mxu1 %vm550_vm1, %v5257_v34  ;;  %v10118_v34 = vld [vmem:[#allocation10 + $0x68] sm:$0xff]  }
0x188c   :  { %9806 = vmatprep.mubr.msk.bf16.mxu1 %vm10765_vm0, %v10764_v1 }
0x1942   :  { %v5152_v35 = vpop.f32.mrb[88].mxu0 }
0x1943   :  { %v9778_v28 = vpop.f32.mrb[89].mxu0 }
0x1944   :  { %v5155_v42 = vpop.f32.mrb[90].mxu0 }
0x1945   :  { %v9779_v43 = vpop.f32.mrb[91].mxu0 }
0x194a   :  { %v5250_v41 = vpop.f32.mrb[92].mxu0 }
0x194b   :  { %v5306_v11 = vmul.f32 0.35355338, %v5250_v41  ;;  %v9790_v12 = vpop.f32.mrb[93].mxu0 }
0x194c   :  { %v5253_v15 = vpop.f32.mrb[94].mxu0 }
0x194d   :  { %v9791_v56 = vpop.f32.mrb[95].mxu0  ;;  %v5308_v16 = vsel %vm645_vm3, %v5306_v11, -inf }
0x194e   :  { %5309 = vmax.xlane.f32.xlu1 %v5308_v16 }
0x1956   :  { %v5200_v17 = vpop.f32.mrb[100].mxu1 }
0x1957   :  { %v9902_v18 = vpack.i.bf16 %v5200_v17, %v5152_v35  ;;  %v9784_v19 = vpop.f32.mrb[101].mxu1  ;;  %v10119_v35 = vld [vmem:[#allocation10 + $0x70] sm:$0xff]  }
0x1958   :  { %v5203_v2 = vpop.f32.mrb[102].mxu1 }
0x1959   :  { %v9785_v20 = vpop.f32.mrb[103].mxu1 }
0x195e   :  { %v5300_v21 = vpop.f32.mrb[104].mxu1 }
0x195f   :  { %v5307_v22 = vmul.f32 0.35355338, %v5300_v21  ;;  %v9796_v46 = vpop.f32.mrb[105].mxu1  ;;  %5332 = vrot.lane.b32.xlu1 %v11445_v10, %s10767_s5 }
0x1960   :  { %v5303_v23 = vpop.f32.mrb[106].mxu1 }
0x1961   :  { %v9797_v24 = vpop.f32.mrb[107].mxu1  ;;  %v5311_v25 = vsel %vm645_vm3, %v5307_v22, -inf }
0x1962   :  { %5312 = vmax.xlane.f32.xlu0 %v5311_v25 }
0x1963   :  { %9898 = vrot.lane.b32.xlu1 %v9897_v14, %s10767_s5 }
0x1967   :  { %9903 = vrot.lane.b32.xlu1 %v9902_v18, %s10750_s13  ;;  %s10768_s13 = smov [#allocation28]  }
0x1968   :  { %s8449_s20 = sshll.u32 %s10768_s13, 4  ;;  %s8450_s20 = int_to_ptr.vmem [resolvable:$true] %s8449_s20 }
0x1969   :  { %s10695_s10 = scalar_lea.vmem %s8450_s20, 32  ;;  %p10700_p3 = scmp.lt.s32.totalorder %s8450_s20, %s8450_s20 }
0x196a   :  { %p10696_p2 = scmp.ne.s32.totalorder %s8450_s20, %s10695_s10  ;;  %p10701_p4 = scmp.lt.s32.totalorder %s10695_s10, %s10695_s10 }
0x196c   :  { %p10702_p5 = por %p10701_p4, %p10700_p3 }
0x196e   :  { %p10703_p6 = pnand %p10702_p5, %p10696_p2 }
0x19db   :  { %v5310_v26 = vpop.xlane.xlu1 %5309 }
0x19dc   :  { %v5314_v33 = vsub.f32 %v5306_v11, %v5310_v26  ;;  %v10120_v11 = vld [vmem:[#allocation10 + $0x78] sm:$0xff]  }
0x19de   :  { %v5316_v59 = vmul.f32 1.442695, %v5314_v33 }
0x19df   :  { %v5333_v36 = vpop.permute.xlu1 %5332 }
0x19e0   :  { %10322 = vpow2.f32 %v5316_v59  ;;  %v5338_v47 = vsel %vm673_vm2, %v5333_v36, 0 }
0x19e1   :  { %9799 = vmatpush3.bf16.msra.mxu0 %v5338_v47 }
0x19e2   :  { %9810 = vmatprep.subr.bf16.mxu0 %v10764_v1 }
0x19e3   :  { %v9899_v18 = vpop.permute.xlu1 %9898 }
0x19e4   :  { %v9901_v2 = vunpack.i.h.bf16 %v9899_v18  ;;  %v9900_v20 = vunpack.i.l.bf16 %v9899_v18  ;;  %v5655_v18 = vld [vmem:[#allocation13 + $0x500] sm:$0xff] }
0x19e6   :  { %v5453_v23 = vsel %vm550_vm1, %v11494_v27, %v9901_v2  ;;  %v5452_v24 = vsel %vm550_vm1, %v11491_v9, %v9900_v20  ;;  %v5656_v2 = vld [vmem:[#allocation13 + $0x508] sm:$0xff] }
0x19e7   :  { %v9904_v19 = vpop.permute.xlu1 %9903 }
0x19e8   :  { %v9906_v21 = vunpack.i.h.bf16 %v9904_v19 }
0x19ea   :  { %v10323_v10 = vpop.eup %10322  ;;  %v5455_v33 = vsel %vm1461_vm4, %v5453_v23, %v9906_v21  ;;  %v5664_v21 = vld [vmem:[#allocation13 + $0x548] sm:$0xff] }
0x19eb   :  { %v5320_v37 = vsel %vm645_vm3, %v10323_v10, 0.0  ;;  %v8864_v23 = vcombine.high %v5656_v2, %v5664_v21 }
0x19ec   :  { %5321 = vadd.xlane.f32.xlu0 %v5320_v37  ;;  %v8818_v37 = vld [vmem:[#allocation11 + $0x1] ss:$0 sm:$0xff] }
0x19ef   :  { %v5313_v7 = vpop.xlane.xlu0 %5312 }
0x19f0   :  { %v5315_v45 = vsub.f32 %v5307_v22, %v5313_v7  ;;  %v9905_v22 = vunpack.i.l.bf16 %v9904_v19  ;;  %v5663_v19 = vld [vmem:[#allocation13 + $0x540] sm:$0xff] }
0x19f1   :  { %v8862_v20 = vcombine.high %v5655_v18, %v5663_v19 }
0x19f2   :  { %v5318_v62 = vmul.f32 1.442695, %v5315_v45  ;;  %v5454_v59 = vsel %vm1461_vm4, %v5452_v24, %v9905_v22  ;;  %v8861_v22 = vcombine.low %v5655_v18, %v5663_v19  ;;  %v5671_v24 = vld [vmem:[#allocation13 + $0x580] sm:$0xff] }
0x19f4   :  { %10324 = vpow2.f32 %v5318_v62 }
0x19fe   :  { %v10325_v13 = vpop.eup %10324 }
0x19ff   :  { %v5323_v14 = vsel %vm645_vm3, %v10325_v13, 0.0 }
0x1a00   :  { %5324 = vadd.xlane.f32.xlu0 %v5323_v14 }
0x1a16   :  { %5380 = vrot.lane.b32.xlu0 %v11472_v40, %s10767_s5  ;;  %v10113_v40 = vld [vmem:[#allocation10 + $0x40] sm:$0xff]  }
0x1a79   :  { %v5322_v49 = vpop.xlane.xlu0 %5321 }
0x1a7a   :  { %10326 = vrcp.f32 %v5322_v49 }
0x1a84   :  { %v10327_v50 = vpop.eup %10326 }
0x1a85   :  { %v5328_v51 = vmul.f32 %v10327_v50, %v10323_v10 }
0x1a87   :  { %v5330_v52 = vpack.c.bf16 %v5328_v51, %v5328_v51 }
0x1a89   :  { %9801 = vmatmul.mubr.msk.bf16.vlgmr.msra.gmra.mrb[96].mxu0 %vm645_vm3, %v5330_v52  ;;  %v5623_v52 = vld [vmem:[#allocation13 + $0x400] sm:$0xff] }
0x1a8a   :  { %9826 = vmatprep.mubr.msk.bf16.mxu0 %vm10765_vm0, %v10764_v1  ;;  %9811 = vmatpush3.bf16.msra.mxu0 %v10113_v40  ;;  %v5647_v40 = vld [vmem:[#allocation13 + $0x4c0] sm:$0xff] }
0x1a8b   :  { %9812 = vmatprep.subr.bf16.mxu0 %v10764_v1 }
0x1a8d   :  { %v5325_v38 = vpop.xlane.xlu0 %5324 }
0x1a8e   :  { %10328 = vrcp.f32 %v5325_v38  ;;  %9813 = vmatpush3.bf16.msra.mxu0 %v10114_v58  ;;  %v5631_v38 = vld [vmem:[#allocation13 + $0x440] sm:$0xff] }
0x1a8f   :  { %9814 = vmatprep.subr.bf16.mxu0 %v10764_v1 }
0x1a91   :  { %v5381_v4 = vpop.permute.xlu0 %5380 }
0x1a92   :  { %v5386_v53 = vsel %vm673_vm2, %v5381_v4, 0  ;;  %9815 = vmatpush3.bf16.msra.mxu0 %v10115_v60  ;;  %v5624_v4 = vld [vmem:[#allocation13 + $0x408] sm:$0xff] }
0x1a93   :  { %9805 = vmatpush3.bf16.msra.mxu1 %v5386_v53  ;;  %9816 = vmatprep.subr.bf16.mxu0 %v10764_v1  ;;  %v8829_v53 = vcombine.low %v5623_v52, %v5631_v38 }
0x1a96   :  { %9817 = vmatpush3.bf16.msra.mxu0 %v10116_v61  ;;  %v5640_v61 = vld [vmem:[#allocation13 + $0x488] sm:$0xff] }
0x1a97   :  { %9818 = vmatprep.subr.bf16.mxu0 %v10764_v1 }
0x1a98   :  { %v10329_v39 = vpop.eup %10328 }
0x1a99   :  { %v5329_v54 = vmul.f32 %v10329_v39, %v10325_v13  ;;  %v8830_v39 = vcombine.high %v5623_v52, %v5631_v38  ;;  %v5712_v38 = vld [vmem:[#allocation13 + $0x6c8] sm:$0xff] }
0x1a9a   :  { %9819 = vmatpush3.bf16.msra.mxu0 %v10117_v57  ;;  %v5648_v57 = vld [vmem:[#allocation13 + $0x4c8] sm:$0xff] }
0x1a9b   :  { %v5331_v55 = vpack.c.bf16 %v5329_v54, %v5329_v54  ;;  %9820 = vmatprep.subr.bf16.mxu0 %v10764_v1  ;;  %v5632_v54 = vld [vmem:[#allocation13 + $0x448] sm:$0xff]  ;;  %6476 = vmatprep.subr.bf16.mxu1 %v8830_v39 }
0x1a9c   :  { %v8831_v58 = vcombine.low %v5624_v4, %v5632_v54 }
0x1a9d   :  { %9807 = vmatmul.mubr.msk.bf16.vlgmr.msra.gmra.mrb[108].mxu1 %vm645_vm3, %v5331_v55  ;;  %v5639_v55 = vld [vmem:[#allocation13 + $0x480] sm:$0xff] }
0x1a9e   :  { %6508 = vmatprep.mubr.bf16.mxu1 %v10763_v0  ;;  %9821 = vmatpush3.bf16.msra.mxu0 %v10118_v34  ;;  %v8846_v60 = vcombine.high %v5639_v55, %v5647_v40  ;;  %v8845_v34 = vcombine.low %v5639_v55, %v5647_v40  ;;  %v5727_v55 = vld [vmem:[#allocation13 + $0x740] sm:$0xff]  ;;  %v5720_v40 = vld [vmem:[#allocation13 + $0x708] sm:$0xff] }
0x1a9f   :  { %9822 = vmatprep.subr.bf16.mxu0 %v10764_v1  ;;  %6477 = vmatpush1.bf16.msra.mxu1 %v8829_v53 }
0x1aa0   :  { %6478 = vmatprep.subr.bf16.mxu1 %v8846_v60 }
0x1aa2   :  { %9823 = vmatpush3.bf16.msra.mxu0 %v10119_v35  ;;  %v8847_v35 = vcombine.low %v5640_v61, %v5648_v57 }
0x1aa3   :  { %9824 = vmatprep.subr.bf16.mxu0 %v10764_v1  ;;  %6479 = vmatpush1.bf16.msra.mxu1 %v8845_v34  ;;  %v5743_v34 = vld [vmem:[#allocation13 + $0x7c0] sm:$0xff] }
0x1aa4   :  { %6480 = vmatprep.subr.bf16.mxu1 %v8862_v20 }
0x1aa6   :  { %9825 = vmatpush3.bf16.msra.mxu0 %v10120_v11 }
0x1aa7   :  { %6481 = vmatpush1.bf16.msra.mxu1 %v8861_v22 }
0x1b5c   :  { %v5374_v28 = vpop.f32.mrb[96].mxu0 }
0x1b5d   :  { %v9802_v42 = vpop.f32.mrb[97].mxu0 }
0x1b5e   :  { %v5377_v43 = vpop.f32.mrb[98].mxu0 }
0x1b5f   :  { %v9803_v41 = vpop.f32.mrb[99].mxu0 }
0x1b70   :  { %v5422_v12 = vpop.f32.mrb[108].mxu1 }
0x1b71   :  { %v9907_v15 = vpack.i.bf16 %v5422_v12, %v5374_v28  ;;  %v9808_v56 = vpop.f32.mrb[109].mxu1 }
0x1b72   :  { %v5425_v16 = vpop.f32.mrb[110].mxu1 }
0x1b73   :  { %9908 = vrot.lane.b32.xlu1 %v9907_v15, %s10766_s15  ;;  %v9809_v17 = vpop.f32.mrb[111].mxu1 }
0x1be5   :  { %v9909_v46 = vpop.permute.xlu1 %9908 }
0x1be6   :  { %v9911_v25 = vunpack.i.h.bf16 %v9909_v46  ;;  %v9910_v26 = vunpack.i.l.bf16 %v9909_v46  ;;  %v8863_v46 = vcombine.low %v5656_v2, %v5664_v21  ;;  %v5634_v2 = vld [vmem:[#allocation13 + $0x458] sm:$0xff] }
0x1be8   :  { %v5457_v36 = vsel %vm1464_vm5, %v5455_v33, %v9911_v25  ;;  %v5456_v47 = vsel %vm1464_vm5, %v5454_v59, %v9910_v26  ;;  %v5679_v25 = vld [vmem:[#allocation13 + $0x5c0] sm:$0xff]  ;;  %v5672_v26 = vld [vmem:[#allocation13 + $0x588] sm:$0xff] }
0x1be9   :  { %v5458_v10 = vpack.c.bf16 %v5457_v36, %v5456_v47  ;;  %v8878_v33 = vcombine.high %v5671_v24, %v5679_v25  ;;  %v5680_v59 = vld [vmem:[#allocation13 + $0x5c8] sm:$0xff]  ;;  %v8877_v36 = vcombine.low %v5671_v24, %v5679_v25 }
0x1bea   :  { %v8879_v47 = vcombine.low %v5672_v26, %v5680_v59 }
0x1beb   :  { %9827 = vmatmul.mubr.bf16.vlgmr.msra.gmra.mrb[100].mxu0 %v5458_v10  ;;  %v8880_v10 = vcombine.high %v5672_v26, %v5680_v59  ;;  %6482 = vmatprep.subr.bf16.mxu1 %v8878_v33 }
0x1bec   :  { %6551 = vmatprep.mubr.bf16.mxu0 %v10763_v0  ;;  %6483 = vmatpush1.bf16.msra.mxu1 %v8877_v36  ;;  %v8827_v36 = vld [vmem:[#allocation19 + $0x1] ss:$0 sm:$0xff] }
0x1cbe   :  { %v5566_v7 = vpop.f32.mrb[100].mxu0 }
0x1cbf   :  { %v5567_v27 = vadd.f32 %v8818_v37, %v5566_v7  ;;  %v9828_v45 = vpop.f32.mrb[101].mxu0  ;;  %v5695_v7 = vld [vmem:[#allocation13 + $0x640] sm:$0xff] }
0x1cc0   :  { %v5569_v62 = vpop.f32.mrb[102].mxu0 }
0x1cc1   :  { %v5573_v9 = vadd.f32 %v5567_v27, %v11414_v30  ;;  %v5570_v13 = vadd.f32 %v8818_v37, %v5569_v62  ;;  %v9829_v14 = vpop.f32.mrb[103].mxu0  ;;  %v8832_v30 = vcombine.high %v5624_v4, %v5632_v54  ;;  %v5687_v37 = vld [vmem:[#allocation13 + $0x600] sm:$0xff]  ;;  %v5688_v27 = vld [vmem:[#allocation13 + $0x608] sm:$0xff] }
0x1cc2   :  { %v8894_v45 = vcombine.high %v5687_v37, %v5695_v7  ;;  %v5696_v62 = vld [vmem:[#allocation13 + $0x648] sm:$0xff]  ;;  %v5719_v54 = vld [vmem:[#allocation13 + $0x700] sm:$0xff] }
0x1cc3   :  { %v5574_v49 = vadd.f32 %v5570_v13, %v11416_v5  ;;  %v5579_v50 = vmul.f32 %v11306_v8, %v5573_v9  ;;  %v8848_v5 = vcombine.high %v5640_v61, %v5648_v57  ;;  %6519 = vmatprep.subr.bf16.mxu0 %v8832_v30  ;;  %v8895_v13 = vcombine.low %v5688_v27, %v5696_v62  ;;  %v5728_v30 = vld [vmem:[#allocation13 + $0x748] sm:$0xff] }
0x1cc4   :  { %6520 = vmatpush1.bf16.msra.mxu0 %v8831_v58  ;;  %v8896_v14 = vcombine.high %v5688_v27, %v5696_v62  ;;  %6484 = vmatprep.subr.bf16.mxu1 %v8894_v45  ;;  %v8926_v58 = vcombine.high %v5719_v54, %v5727_v55  ;;  %v8925_v60 = vcombine.low %v5719_v54, %v5727_v55  ;;  %v5641_v45 = vld [vmem:[#allocation13 + $0x490] sm:$0xff] }
0x1cc5   :  { %5581 = vadd.xlane.f32.xlu0 %v5579_v50  ;;  %v5580_v51 = vmul.f32 %v11306_v8, %v5574_v49  ;;  %6521 = vmatprep.subr.bf16.mxu0 %v8848_v5  ;;  %v5711_v50 = vld [vmem:[#allocation13 + $0x6c0] sm:$0xff]  ;;  %v8927_v61 = vcombine.low %v5720_v40, %v5728_v30  ;;  %v8928_v57 = vcombine.high %v5720_v40, %v5728_v30  ;;  %v5649_v62 = vld [vmem:[#allocation13 + $0x4d0] sm:$0xff]  ;;  %v5674_v30 = vld [vmem:[#allocation13 + $0x598] sm:$0xff] }
0x1cc6   :  { %v5735_v5 = vld [vmem:[#allocation13 + $0x780] sm:$0xff]  ;;  %v5673_v40 = vld [vmem:[#allocation13 + $0x590] sm:$0xff] }
0x1cc7   :  { %5583 = vadd.xlane.f32.xlu1 %v5580_v51  ;;  %v5704_v51 = vld [vmem:[#allocation13 + $0x688] sm:$0xff] }
0x1cc8   :  { %6522 = vmatpush1.bf16.msra.mxu0 %v8847_v35  ;;  %v8911_v53 = vcombine.low %v5704_v51, %v5712_v38  ;;  %v8912_v39 = vcombine.high %v5704_v51, %v5712_v38  ;;  %v5736_v35 = vld [vmem:[#allocation13 + $0x788] sm:$0xff]  ;;  %v5665_v38 = vld [vmem:[#allocation13 + $0x550] sm:$0xff] }
0x1cc9   :  { %6523 = vmatprep.subr.bf16.mxu0 %v8864_v23 }
0x1ccc   :  { %6524 = vmatpush1.bf16.msra.mxu0 %v8863_v46 }
0x1ccd   :  { %6525 = vmatprep.subr.bf16.mxu0 %v8880_v10 }
0x1cd0   :  { %6526 = vmatpush1.bf16.msra.mxu0 %v8879_v47 }
0x1cd1   :  { %6527 = vmatprep.subr.bf16.mxu0 %v8896_v14 }
0x1cd4   :  { %6528 = vmatpush1.bf16.msra.mxu0 %v8895_v13  ;;  %v5650_v13 = vld [vmem:[#allocation13 + $0x4d8] sm:$0xff] }
0x1cd5   :  { %6529 = vmatprep.subr.bf16.mxu0 %v8912_v39 }
0x1cd8   :  { %6530 = vmatpush1.bf16.msra.mxu0 %v8911_v53  ;;  %v8849_v53 = vcombine.low %v5641_v45, %v5649_v62 }
0x1cd9   :  { %6531 = vmatprep.subr.bf16.mxu0 %v8928_v57 }
0x1cdc   :  { %6532 = vmatpush1.bf16.msra.mxu0 %v8927_v61 }
0x1d52   :  { %v5582_v28 = vpop.xlane.xlu0 %5581 }
0x1d53   :  { %v5585_v42 = vmul.f32 0.03125, %v5582_v28  ;;  %v8942_v28 = vcombine.high %v5735_v5, %v5743_v34 }
0x1d54   :  { %v5584_v43 = vpop.xlane.xlu1 %5583 }
0x1d55   :  { %v5587_v41 = vsub.f32 %v5573_v9, %v5585_v42  ;;  %v5586_v11 = vmul.f32 0.03125, %v5584_v43  ;;  %v8893_v9 = vcombine.low %v5687_v37, %v5695_v7  ;;  %v5744_v42 = vld [vmem:[#allocation13 + $0x7c8] sm:$0xff]  ;;  %v8941_v43 = vcombine.low %v5735_v5, %v5743_v34  ;;  %v8828_v7 = vld [vmem:[#allocation20 + $0x1] ss:$0 sm:$0xff] }
0x1d57   :  { %v5588_v12 = vsub.f32 %v5574_v49, %v5586_v11  ;;  %v11616_v15 = vmul.f32 %v11306_v8, %v5587_v41  ;;  %6485 = vmatpush1.bf16.msra.mxu1 %v8893_v9  ;;  %v5703_v49 = vld [vmem:[#allocation13 + $0x680] sm:$0xff]  ;;  %v8943_v41 = vcombine.low %v5736_v35, %v5744_v42  ;;  %v8944_v11 = vcombine.high %v5736_v35, %v5744_v42  ;;  %v5642_v9 = vld [vmem:[#allocation13 + $0x498] sm:$0xff]  ;;  %v5689_v35 = vld [vmem:[#allocation13 + $0x610] sm:$0xff] }
0x1d58   :  { %v8910_v52 = vcombine.high %v5703_v49, %v5711_v50  ;;  %v8909_v4 = vcombine.low %v5703_v49, %v5711_v50  ;;  %v8852_v51 = vcombine.high %v5642_v9, %v5650_v13  ;;  %v8851_v39 = vcombine.low %v5642_v9, %v5650_v13  ;;  %v5690_v42 = vld [vmem:[#allocation13 + $0x618] sm:$0xff] }
0x1d59   :  { %v5591_v56 = vmul.f32 %v11616_v15, %v11616_v15  ;;  %v11621_v16 = vmul.f32 %v11306_v8, %v5588_v12  ;;  %6533 = vmatprep.subr.bf16.mxu0 %v8944_v11  ;;  %v5625_v12 = vld [vmem:[#allocation13 + $0x410] sm:$0xff] }
0x1d5a   :  { %6486 = vmatprep.subr.bf16.mxu1 %v8910_v52  ;;  %6534 = vmatpush1.bf16.msra.mxu0 %v8943_v41  ;;  %v5657_v52 = vld [vmem:[#allocation13 + $0x510] sm:$0xff] }
0x1d5b   :  { %5593 = vadd.xlane.f32.xlu0 %v5591_v56  ;;  %v5592_v17 = vmul.f32 %v11621_v16, %v11621_v16  ;;  %6487 = vmatpush1.bf16.msra.mxu1 %v8909_v4  ;;  %v5633_v56 = vld [vmem:[#allocation13 + $0x450] sm:$0xff]  ;;  %v5658_v4 = vld [vmem:[#allocation13 + $0x518] sm:$0xff]  ;;  %v8866_v54 = vcombine.high %v5657_v52, %v5665_v38  ;;  %v8865_v61 = vcombine.low %v5657_v52, %v5665_v38  ;;  %v5628_v52 = vld [vmem:[#allocation13 + $0x428] sm:$0xff] }
0x1d5c   :  { %6488 = vmatprep.subr.bf16.mxu1 %v8926_v58  ;;  %v8833_v18 = vcombine.low %v5625_v12, %v5633_v56  ;;  %v8834_v19 = vcombine.high %v5625_v12, %v5633_v56  ;;  %v5681_v58 = vld [vmem:[#allocation13 + $0x5d0] sm:$0xff]  ;;  %v5636_v38 = vld [vmem:[#allocation13 + $0x468] sm:$0xff] }
0x1d5d   :  { %v8882_v5 = vcombine.high %v5673_v40, %v5681_v58  ;;  %v8881_v41 = vcombine.low %v5673_v40, %v5681_v58  ;;  %v5644_v40 = vld [vmem:[#allocation13 + $0x4a8] sm:$0xff] }
0x1d5e   :  { %v5652_v58 = vld [vmem:[#allocation13 + $0x4e8] sm:$0xff] }
0x1d5f   :  { %5595 = vadd.xlane.f32.xlu0 %v5592_v17  ;;  %6489 = vmatpush1.bf16.msra.mxu1 %v8925_v60  ;;  %v5626_v17 = vld [vmem:[#allocation13 + $0x418] sm:$0xff] }
0x1d60   :  { %6490 = vmatprep.subr.bf16.mxu1 %v8942_v28  ;;  %v8835_v20 = vcombine.low %v5626_v17, %v5634_v2  ;;  %v8836_v21 = vcombine.high %v5626_v17, %v5634_v2  ;;  %v5682_v60 = vld [vmem:[#allocation13 + $0x5d8] sm:$0xff]  ;;  %v5697_v28 = vld [vmem:[#allocation13 + $0x650] sm:$0xff] }
0x1d61   :  { %v8884_v34 = vcombine.high %v5674_v30, %v5682_v60  ;;  %v8883_v11 = vcombine.low %v5674_v30, %v5682_v60  ;;  %v8898_v12 = vcombine.high %v5689_v35, %v5697_v28  ;;  %v5705_v17 = vld [vmem:[#allocation13 + $0x690] sm:$0xff]  ;;  %v5714_v2 = vld [vmem:[#allocation13 + $0x6d8] sm:$0xff]  ;;  %v8839_v60 = vcombine.low %v5628_v52, %v5636_v38 }
0x1d62   :  { %6605 = vmatprep.subr.bf16.mxu0 %v8836_v21 }
0x1d63   :  { %6491 = vmatpush1.bf16.msra.mxu1 %v8941_v43  ;;  %v5698_v43 = vld [vmem:[#allocation13 + $0x658] sm:$0xff] }
0x1d64   :  { %6562 = vmatprep.subr.bf16.mxu1 %v8834_v19  ;;  %v8900_v56 = vcombine.high %v5690_v42, %v5698_v43  ;;  %v5706_v19 = vld [vmem:[#allocation13 + $0x698] sm:$0xff]  ;;  %v8899_v21 = vcombine.low %v5690_v42, %v5698_v43  ;;  %v8855_v43 = vcombine.low %v5644_v40, %v5652_v58 }
0x1de8   :  { %v5594_v22 = vpop.xlane.xlu0 %5593 }
0x1de9   :  { %v5597_v46 = vmul.f32 0.03125, %v5594_v22 }
0x1deb   :  { %v5599_v23 = vadd.f32 1e-05, %v5597_v46  ;;  %v8916_v46 = vcombine.high %v5706_v19, %v5714_v2 }
0x1dec   :  { %v5596_v24 = vpop.xlane.xlu0 %5595 }
0x1ded   :  { %10330 = vrsqrt.f32 %v5599_v23  ;;  %v5598_v25 = vmul.f32 0.03125, %v5596_v24  ;;  %v5721_v23 = vld [vmem:[#allocation13 + $0x710] sm:$0xff] }
0x1dee   :  { %v5729_v24 = vld [vmem:[#allocation13 + $0x750] sm:$0xff] }
0x1def   :  { %v5600_v26 = vadd.f32 1e-05, %v5598_v25  ;;  %v5722_v25 = vld [vmem:[#allocation13 + $0x718] sm:$0xff] }
0x1df1   :  { %10332 = vrsqrt.f32 %v5600_v26  ;;  %v5730_v26 = vld [vmem:[#allocation13 + $0x758] sm:$0xff] }
0x1df7   :  { %v10331_v33 = vpop.eup %10330 }
0x1df8   :  { %v5603_v59 = vmul.f32 %v10331_v33, %v11616_v15  ;;  %v8850_v15 = vcombine.high %v5641_v45, %v5649_v62  ;;  %v8929_v45 = vcombine.low %v5721_v23, %v5729_v24  ;;  %v8931_v62 = vcombine.low %v5722_v25, %v5730_v26 }
0x1dfa   :  { %v5611_v10 = vmul.f32 %v8827_v36, %v5603_v59  ;;  %v8915_v59 = vcombine.low %v5706_v19, %v5714_v2 }
0x1dfb   :  { %v10333_v47 = vpop.eup %10332 }
0x1dfc   :  { %v5604_v37 = vmul.f32 %v10333_v47, %v11621_v16  ;;  %v11627_v14 = vadd.f32 %v8828_v7, %v5611_v10  ;;  %v5666_v16 = vld [vmem:[#allocation13 + $0x558] sm:$0xff]  ;;  %v8932_v47 = vcombine.high %v5722_v25, %v5730_v26  ;;  %v5737_v10 = vld [vmem:[#allocation13 + $0x790] sm:$0xff] }
0x1dfd   :  { %v8868_v55 = vcombine.high %v5658_v4, %v5666_v16  ;;  %v8867_v57 = vcombine.low %v5658_v4, %v5666_v16 }
0x1dfe   :  { %v5612_v27 = vmul.f32 %v8827_v36, %v5604_v37  ;;  %v8930_v36 = vcombine.high %v5721_v23, %v5729_v24  ;;  %v5745_v37 = vld [vmem:[#allocation13 + $0x7d0] sm:$0xff]  ;;  %v5692_v23 = vld [vmem:[#allocation13 + $0x628] sm:$0xff] }
0x1dff   :  { %v8946_v9 = vcombine.high %v5737_v10, %v5745_v37  ;;  %v8945_v4 = vcombine.low %v5737_v10, %v5745_v37  ;;  %v5700_v24 = vld [vmem:[#allocation13 + $0x668] sm:$0xff] }
0x1e00   :  { %v11629_v49 = vadd.f32 %v8828_v7, %v5612_v27  ;;  %v5738_v7 = vld [vmem:[#allocation13 + $0x798] sm:$0xff]  ;;  %v5708_v10 = vld [vmem:[#allocation13 + $0x6a8] sm:$0xff] }
0x1e01   :  { %v5746_v27 = vld [vmem:[#allocation13 + $0x7d8] sm:$0xff]  ;;  %v5716_v37 = vld [vmem:[#allocation13 + $0x6e8] sm:$0xff] }
0x1e02   :  { %v11633_v50 = vpack.c.bf16 %v11629_v49, %v11627_v14  ;;  %v8948_v13 = vcombine.high %v5738_v7, %v5746_v27  ;;  %v8947_v16 = vcombine.low %v5738_v7, %v5746_v27  ;;  %v8903_v27 = vcombine.low %v5692_v23, %v5700_v24 }
0x1e04   :  { %6509 = vmatmul.mubr.bf16.vlgmr.msra.gmra.mrb[112].mxu1 %v11633_v50  ;;  %6552 = vmatmul.mubr.bf16.vlgmr.msra.gmra.mrb[104].mxu0 %v11633_v50 }
0x1e05   :  { %6563 = vmatpush1.bf16.msra.mxu1 %v8833_v18  ;;  %6606 = vmatpush1.bf16.msra.mxu0 %v8835_v20  ;;  %v5713_v18 = vld [vmem:[#allocation13 + $0x6d0] sm:$0xff]  ;;  %v8897_v20 = vcombine.low %v5689_v35, %v5697_v28  ;;  %v5660_v35 = vld [vmem:[#allocation13 + $0x528] sm:$0xff] }
0x1e06   :  { %6564 = vmatprep.subr.bf16.mxu1 %v8850_v15  ;;  %6607 = vmatprep.subr.bf16.mxu0 %v8852_v51  ;;  %v8914_v22 = vcombine.high %v5705_v17, %v5713_v18  ;;  %v8913_v33 = vcombine.low %v5705_v17, %v5713_v18  ;;  %v5627_v15 = vld [vmem:[#allocation13 + $0x420] sm:$0xff]  ;;  %v5668_v28 = vld [vmem:[#allocation13 + $0x568] sm:$0xff] }
0x1e07   :  { %6594 = vmatprep.mubr.bf16.mxu1 %v10763_v0  ;;  %6637 = vmatprep.mubr.bf16.mxu0 %v10763_v0  ;;  %v5635_v51 = vld [vmem:[#allocation13 + $0x460] sm:$0xff]  ;;  %v5676_v17 = vld [vmem:[#allocation13 + $0x5a8] sm:$0xff]  ;;  %v8871_v2 = vcombine.low %v5660_v35, %v5668_v28 }
0x1e08   :  { %v8837_v30 = vcombine.low %v5627_v15, %v5635_v51  ;;  %v5684_v18 = vld [vmem:[#allocation13 + $0x5e8] sm:$0xff] }
0x1e09   :  { %6565 = vmatpush1.bf16.msra.mxu1 %v8849_v53  ;;  %6608 = vmatpush1.bf16.msra.mxu0 %v8851_v39  ;;  %v8838_v53 = vcombine.high %v5627_v15, %v5635_v51  ;;  %v8840_v39 = vcombine.high %v5628_v52, %v5636_v38  ;;  %v8887_v26 = vcombine.low %v5676_v17, %v5684_v18  ;;  %v5724_v15 = vld [vmem:[#allocation13 + $0x728] sm:$0xff] }
0x1e0a   :  { %6566 = vmatprep.subr.bf16.mxu1 %v8866_v54  ;;  %6609 = vmatprep.subr.bf16.mxu0 %v8868_v55  ;;  %v5643_v54 = vld [vmem:[#allocation13 + $0x4a0] sm:$0xff]  ;;  %v5732_v51 = vld [vmem:[#allocation13 + $0x768] sm:$0xff]  ;;  %v8919_v38 = vcombine.low %v5708_v10, %v5716_v37 }
0x1e0b   :  { %v5651_v55 = vld [vmem:[#allocation13 + $0x4e0] sm:$0xff] }
0x1e0c   :  { %v8853_v42 = vcombine.low %v5643_v54, %v5651_v55 }
0x1e0d   :  { %6567 = vmatpush1.bf16.msra.mxu1 %v8865_v61  ;;  %6610 = vmatpush1.bf16.msra.mxu0 %v8867_v57  ;;  %v8854_v61 = vcombine.high %v5643_v54, %v5651_v55  ;;  %v8856_v57 = vcombine.high %v5644_v40, %v5652_v58  ;;  %v5740_v54 = vld [vmem:[#allocation13 + $0x7a8] sm:$0xff]  ;;  %v8935_v58 = vcombine.low %v5724_v15, %v5732_v51 }
0x1e0e   :  { %6568 = vmatprep.subr.bf16.mxu1 %v8882_v5  ;;  %6611 = vmatprep.subr.bf16.mxu0 %v8884_v34  ;;  %v5659_v5 = vld [vmem:[#allocation13 + $0x520] sm:$0xff]  ;;  %v5748_v55 = vld [vmem:[#allocation13 + $0x7e8] sm:$0xff] }
0x1e0f   :  { %v5667_v34 = vld [vmem:[#allocation13 + $0x560] sm:$0xff] }
0x1e10   :  { %v8869_v19 = vcombine.low %v5659_v5, %v5667_v34 }
0x1e11   :  { %6569 = vmatpush1.bf16.msra.mxu1 %v8881_v41  ;;  %6612 = vmatpush1.bf16.msra.mxu0 %v8883_v11  ;;  %v8870_v41 = vcombine.high %v5659_v5, %v5667_v34  ;;  %v8872_v11 = vcombine.high %v5660_v35, %v5668_v28  ;;  %v5630_v5 = vld [vmem:[#allocation13 + $0x438] sm:$0xff]  ;;  %v8951_v28 = vcombine.low %v5740_v54, %v5748_v55 }
0x1e12   :  { %6570 = vmatprep.subr.bf16.mxu1 %v8898_v12  ;;  %6613 = vmatprep.subr.bf16.mxu0 %v8900_v56  ;;  %v5675_v12 = vld [vmem:[#allocation13 + $0x5a0] sm:$0xff]  ;;  %v5638_v34 = vld [vmem:[#allocation13 + $0x478] sm:$0xff] }
0x1e13   :  { %v5683_v56 = vld [vmem:[#allocation13 + $0x5e0] sm:$0xff] }
0x1e14   :  { %v8885_v25 = vcombine.low %v5675_v12, %v5683_v56 }
0x1e15   :  { %6571 = vmatpush1.bf16.msra.mxu1 %v8897_v20  ;;  %6614 = vmatpush1.bf16.msra.mxu0 %v8899_v21  ;;  %v8886_v20 = vcombine.high %v5675_v12, %v5683_v56  ;;  %v8888_v21 = vcombine.high %v5676_v17, %v5684_v18  ;;  %v5646_v12 = vld [vmem:[#allocation13 + $0x4b8] sm:$0xff]  ;;  %v8843_v18 = vcombine.low %v5630_v5, %v5638_v34 }
0x1e16   :  { %6572 = vmatprep.subr.bf16.mxu1 %v8914_v22  ;;  %6615 = vmatprep.subr.bf16.mxu0 %v8916_v46  ;;  %v5691_v22 = vld [vmem:[#allocation13 + $0x620] sm:$0xff]  ;;  %v5654_v56 = vld [vmem:[#allocation13 + $0x4f8] sm:$0xff] }
0x1e17   :  { %v5699_v46 = vld [vmem:[#allocation13 + $0x660] sm:$0xff] }
0x1e18   :  { %v8901_v7 = vcombine.low %v5691_v22, %v5699_v46 }
0x1e19   :  { %6573 = vmatpush1.bf16.msra.mxu1 %v8913_v33  ;;  %6616 = vmatpush1.bf16.msra.mxu0 %v8915_v59  ;;  %v8902_v33 = vcombine.high %v5691_v22, %v5699_v46  ;;  %v8904_v59 = vcombine.high %v5692_v23, %v5700_v24  ;;  %v5662_v22 = vld [vmem:[#allocation13 + $0x538] sm:$0xff]  ;;  %v8859_v24 = vcombine.low %v5646_v12, %v5654_v56 }
0x1e1a   :  { %6574 = vmatprep.subr.bf16.mxu1 %v8930_v36  ;;  %6617 = vmatprep.subr.bf16.mxu0 %v8932_v47  ;;  %v5707_v36 = vld [vmem:[#allocation13 + $0x6a0] sm:$0xff]  ;;  %v5670_v46 = vld [vmem:[#allocation13 + $0x578] sm:$0xff] }
0x1e1b   :  { %v5715_v47 = vld [vmem:[#allocation13 + $0x6e0] sm:$0xff] }
0x1e1c   :  { %v8917_v52 = vcombine.low %v5707_v36, %v5715_v47 }
0x1e1d   :  { %6575 = vmatpush1.bf16.msra.mxu1 %v8929_v45  ;;  %6618 = vmatpush1.bf16.msra.mxu0 %v8931_v62  ;;  %v8918_v45 = vcombine.high %v5707_v36, %v5715_v47  ;;  %v8920_v62 = vcombine.high %v5708_v10, %v5716_v37  ;;  %v5678_v36 = vld [vmem:[#allocation13 + $0x5b8] sm:$0xff]  ;;  %v8875_v37 = vcombine.low %v5662_v22, %v5670_v46 }
0x1e1e   :  { %6576 = vmatprep.subr.bf16.mxu1 %v8946_v9  ;;  %6619 = vmatprep.subr.bf16.mxu0 %v8948_v13  ;;  %v5723_v9 = vld [vmem:[#allocation13 + $0x720] sm:$0xff]  ;;  %v5686_v47 = vld [vmem:[#allocation13 + $0x5f8] sm:$0xff] }
0x1e1f   :  { %v5731_v13 = vld [vmem:[#allocation13 + $0x760] sm:$0xff] }
0x1e20   :  { %v8933_v40 = vcombine.low %v5723_v9, %v5731_v13 }
0x1e21   :  { %6577 = vmatpush1.bf16.msra.mxu1 %v8945_v4  ;;  %6620 = vmatpush1.bf16.msra.mxu0 %v8947_v16  ;;  %v8934_v4 = vcombine.high %v5723_v9, %v5731_v13  ;;  %v8936_v16 = vcombine.high %v5724_v15, %v5732_v51  ;;  %v5694_v9 = vld [vmem:[#allocation13 + $0x638] sm:$0xff]  ;;  %v8891_v51 = vcombine.low %v5678_v36, %v5686_v47 }
0x1e22   :  { %6648 = vmatprep.subr.bf16.mxu1 %v8838_v53  ;;  %6691 = vmatprep.subr.bf16.mxu0 %v8840_v39  ;;  %v5739_v53 = vld [vmem:[#allocation13 + $0x7a0] sm:$0xff]  ;;  %v5702_v13 = vld [vmem:[#allocation13 + $0x678] sm:$0xff] }
0x1e23   :  { %v5747_v39 = vld [vmem:[#allocation13 + $0x7e0] sm:$0xff] }
0x1e24   :  { %6595 = vmatmul.mubr.bf16.vlgmr.msra.gmra.mrb[116].mxu1 %v11633_v50  ;;  %6638 = vmatmul.mubr.bf16.vlgmr.msra.gmra.mrb[108].mxu0 %v11633_v50  ;;  %v8949_v35 = vcombine.low %v5739_v53, %v5747_v39 }
0x1e25   :  { %6649 = vmatpush1.bf16.msra.mxu1 %v8837_v30  ;;  %6692 = vmatpush1.bf16.msra.mxu0 %v8839_v60  ;;  %v8950_v30 = vcombine.high %v5739_v53, %v5747_v39  ;;  %v8952_v60 = vcombine.high %v5740_v54, %v5748_v55  ;;  %v5718_v53 = vld [vmem:[#allocation13 + $0x6f8] sm:$0xff]  ;;  %v8907_v54 = vcombine.low %v5694_v9, %v5702_v13 }
0x1e26   :  { %6650 = vmatprep.subr.bf16.mxu1 %v8854_v61  ;;  %6693 = vmatprep.subr.bf16.mxu0 %v8856_v57  ;;  %v5629_v61 = vld [vmem:[#allocation13 + $0x430] sm:$0xff] }
0x1e27   :  { %6680 = vmatprep.mubr.bf16.mxu1 %v10763_v0  ;;  %6723 = vmatprep.mubr.bf16.mxu0 %v10763_v0  ;;  %v5637_v57 = vld [vmem:[#allocation13 + $0x470] sm:$0xff] }
0x1e28   :  { %v8841_v17 = vcombine.low %v5629_v61, %v5637_v57 }
0x1e29   :  { %6651 = vmatpush1.bf16.msra.mxu1 %v8853_v42  ;;  %6694 = vmatpush1.bf16.msra.mxu0 %v8855_v43  ;;  %v8842_v42 = vcombine.high %v5629_v61, %v5637_v57  ;;  %v8844_v43 = vcombine.high %v5630_v5, %v5638_v34  ;;  %v5734_v61 = vld [vmem:[#allocation13 + $0x778] sm:$0xff] }
0x1e2a   :  { %6652 = vmatprep.subr.bf16.mxu1 %v8870_v41  ;;  %6695 = vmatprep.subr.bf16.mxu0 %v8872_v11  ;;  %v5645_v41 = vld [vmem:[#allocation13 + $0x4b0] sm:$0xff] }
0x1e2b   :  { %v5653_v11 = vld [vmem:[#allocation13 + $0x4f0] sm:$0xff] }
0x1e2c   :  { %v8857_v23 = vcombine.low %v5645_v41, %v5653_v11 }
0x1e2d   :  { %6653 = vmatpush1.bf16.msra.mxu1 %v8869_v19  ;;  %6696 = vmatpush1.bf16.msra.mxu0 %v8871_v2  ;;  %v8858_v19 = vcombine.high %v5645_v41, %v5653_v11  ;;  %v8860_v2 = vcombine.high %v5646_v12, %v5654_v56  ;;  %v5750_v41 = vld [vmem:[#allocation13 + $0x7f8] sm:$0xff] }
0x1e2e   :  { %6654 = vmatprep.subr.bf16.mxu1 %v8886_v20  ;;  %6697 = vmatprep.subr.bf16.mxu0 %v8888_v21  ;;  %v5661_v20 = vld [vmem:[#allocation13 + $0x530] sm:$0xff] }
0x1e2f   :  { %v5669_v21 = vld [vmem:[#allocation13 + $0x570] sm:$0xff] }
0x1e30   :  { %v8873_v10 = vcombine.low %v5661_v20, %v5669_v21 }
0x1e31   :  { %6655 = vmatpush1.bf16.msra.mxu1 %v8885_v25  ;;  %6698 = vmatpush1.bf16.msra.mxu0 %v8887_v26  ;;  %v8874_v25 = vcombine.high %v5661_v20, %v5669_v21  ;;  %v8876_v26 = vcombine.high %v5662_v22, %v5670_v46  ;;  %v10122_v20 = vld [vmem:[#allocation16 + $0x4c0] sm:$0xff]   ;;  %v10125_v46 = vld [vmem:[#allocation16 + $0x448] sm:$0xff]  }
0x1e32   :  { %6656 = vmatprep.subr.bf16.mxu1 %v8902_v33  ;;  %6699 = vmatprep.subr.bf16.mxu0 %v8904_v59  ;;  %v5677_v33 = vld [vmem:[#allocation13 + $0x5b0] sm:$0xff]  ;;  %v10123_v21 = vld [vmem:[#allocation16 + $0x400] sm:$0xff]  }
0x1e33   :  { %v5685_v59 = vld [vmem:[#allocation13 + $0x5f0] sm:$0xff]  ;;  %v10124_v22 = vld [vmem:[#allocation16 + $0x480] sm:$0xff]  }
0x1e34   :  { %v8889_v15 = vcombine.low %v5677_v33, %v5685_v59 }
0x1e35   :  { %6657 = vmatpush1.bf16.msra.mxu1 %v8901_v7  ;;  %6700 = vmatpush1.bf16.msra.mxu0 %v8903_v27  ;;  %v8890_v7 = vcombine.high %v5677_v33, %v5685_v59  ;;  %v8892_v27 = vcombine.high %v5678_v36, %v5686_v47  ;;  %v10130_v33 = vld [vmem:[#allocation16 + $0x4d0] sm:$0xff]   ;;  %v10133_v47 = vld [vmem:[#allocation16 + $0x458] sm:$0xff]  }
0x1e36   :  { %6658 = vmatprep.subr.bf16.mxu1 %v8918_v45  ;;  %6701 = vmatprep.subr.bf16.mxu0 %v8920_v62  ;;  %v5693_v45 = vld [vmem:[#allocation13 + $0x630] sm:$0xff] }
0x1e37   :  { %v5701_v62 = vld [vmem:[#allocation13 + $0x670] sm:$0xff] }
0x1e38   :  { %v8905_v39 = vcombine.low %v5693_v45, %v5701_v62  ;;  %v10131_v59 = vld [vmem:[#allocation16 + $0x410] sm:$0xff]  }
0x1e39   :  { %6659 = vmatpush1.bf16.msra.mxu1 %v8917_v52  ;;  %6702 = vmatpush1.bf16.msra.mxu0 %v8919_v38  ;;  %v8906_v52 = vcombine.high %v5693_v45, %v5701_v62  ;;  %v5709_v38 = vld [vmem:[#allocation13 + $0x6b0] sm:$0xff]  ;;  %v10139_v45 = vld [vmem:[#allocation16 + $0x420] sm:$0xff]  }
0x1e3a   :  { %6660 = vmatprep.subr.bf16.mxu1 %v8934_v4  ;;  %6703 = vmatprep.subr.bf16.mxu0 %v8936_v16  ;;  %v5717_v4 = vld [vmem:[#allocation13 + $0x6f0] sm:$0xff]  ;;  %v5710_v16 = vld [vmem:[#allocation13 + $0x6b8] sm:$0xff]  ;;  %v10140_v62 = vld [vmem:[#allocation16 + $0x4a0] sm:$0xff]  }
0x1e3b   :  { %v8922_v55 = vcombine.high %v5709_v38, %v5717_v4  ;;  %v8921_v57 = vcombine.low %v5709_v38, %v5717_v4  ;;  %v8923_v5 = vcombine.low %v5710_v16, %v5718_v53  ;;  %v10132_v36 = vld [vmem:[#allocation16 + $0x490] sm:$0xff]  }
0x1e3c   :  { %v10147_v38 = vld [vmem:[#allocation16 + $0x430] sm:$0xff]  }
0x1e3d   :  { %6661 = vmatpush1.bf16.msra.mxu1 %v8933_v40  ;;  %6704 = vmatpush1.bf16.msra.mxu0 %v8935_v58  ;;  %v8924_v40 = vcombine.high %v5710_v16, %v5718_v53  ;;  %v5725_v58 = vld [vmem:[#allocation13 + $0x730] sm:$0xff]  ;;  %v10149_v16 = vld [vmem:[#allocation16 + $0x478] sm:$0xff]  }
0x1e3e   :  { %6662 = vmatprep.subr.bf16.mxu1 %v8950_v30  ;;  %6705 = vmatprep.subr.bf16.mxu0 %v8952_v60  ;;  %v5733_v30 = vld [vmem:[#allocation13 + $0x770] sm:$0xff]  ;;  %v5726_v60 = vld [vmem:[#allocation13 + $0x738] sm:$0xff] }
0x1e3f   :  { %v8938_v34 = vcombine.high %v5725_v58, %v5733_v30  ;;  %v8937_v11 = vcombine.low %v5725_v58, %v5733_v30  ;;  %v8939_v12 = vcombine.low %v5726_v60, %v5734_v61  ;;  %v10148_v4 = vld [vmem:[#allocation16 + $0x4b0] sm:$0xff]   ;;  %v10150_v53 = vld [vmem:[#allocation16 + $0x4f8] sm:$0xff]  }
0x1e40   :  { %v11649_v58 = vld [vmem:[#allocation14 + $0x10] sm:$0xff] }
0x1e41   :  { %6663 = vmatpush1.bf16.msra.mxu1 %v8949_v35  ;;  %6706 = vmatpush1.bf16.msra.mxu0 %v8951_v28  ;;  %v8940_v35 = vcombine.high %v5726_v60, %v5734_v61  ;;  %v5741_v28 = vld [vmem:[#allocation13 + $0x7b0] sm:$0xff]  ;;  %v5759_v30 = vrot.slane %v11649_v58, %v11117_v32  ;;  %v5767_v60 = vrot.slane %v11649_v58, %v11145_v48 }
0x1e42   :  { %6734 = vmatprep.subr.bf16.mxu1 %v8842_v42  ;;  %6777 = vmatprep.subr.bf16.mxu0 %v8844_v43  ;;  %v5749_v42 = vld [vmem:[#allocation13 + $0x7f0] sm:$0xff]  ;;  %v5742_v43 = vld [vmem:[#allocation13 + $0x7b8] sm:$0xff]  ;;  %v5763_v61 = vrot.slane %v11649_v58, %v11113_v29 }
0x1e43   :  { %v8954_v56 = vcombine.high %v5741_v28, %v5749_v42 }
0x1e44   :  { %6681 = vmatmul.mubr.bf16.vlgmr.msra.gmra.mrb[120].mxu1 %v11633_v50  ;;  %6724 = vmatmul.mubr.bf16.vlgmr.msra.gmra.mrb[112].mxu0 %v11633_v50 }
0x1e45   :  { %6735 = vmatpush1.bf16.msra.mxu1 %v8841_v17  ;;  %6778 = vmatpush1.bf16.msra.mxu0 %v8843_v18  ;;  %v8956_v17 = vcombine.high %v5742_v43, %v5750_v41  ;;  %v8953_v18 = vcombine.low %v5741_v28, %v5749_v42 }
0x1e46   :  { %6736 = vmatprep.subr.bf16.mxu1 %v8858_v19  ;;  %6779 = vmatprep.subr.bf16.mxu0 %v8860_v2  ;;  %v8955_v19 = vcombine.low %v5742_v43, %v5750_v41  ;;  %v10121_v2 = vld [vmem:[#allocation16 + $0x440] sm:$0xff]  }
0x1e47   :  { %6766 = vmatprep.mubr.bf16.mxu1 %v10763_v0  ;;  %6809 = vmatprep.mubr.bf16.mxu0 %v10763_v0  ;;  %v8908_v0 = vcombine.high %v5694_v9, %v5702_v13  ;;  %v10141_v9 = vld [vmem:[#allocation16 + $0x468] sm:$0xff]  }
0x1e48   :  { %v10142_v13 = vld [vmem:[#allocation16 + $0x4e8] sm:$0xff]  }
0x1e49   :  { %6737 = vmatpush1.bf16.msra.mxu1 %v8857_v23  ;;  %6780 = vmatpush1.bf16.msra.mxu0 %v8859_v24  ;;  %v10126_v23 = vld [vmem:[#allocation16 + $0x4c8] sm:$0xff]  }
0x1e4a   :  { %6738 = vmatprep.subr.bf16.mxu1 %v8874_v25  ;;  %6781 = vmatprep.subr.bf16.mxu0 %v8876_v26  ;;  %v10127_v24 = vld [vmem:[#allocation16 + $0x408] sm:$0xff]   ;;  %v10129_v26 = vld [vmem:[#allocation16 + $0x450] sm:$0xff]  }
0x1e4b   :  { %v10128_v25 = vld [vmem:[#allocation16 + $0x488] sm:$0xff]  }
0x1e4d   :  { %6739 = vmatpush1.bf16.msra.mxu1 %v8873_v10  ;;  %6782 = vmatpush1.bf16.msra.mxu0 %v8875_v37  ;;  %v10134_v10 = vld [vmem:[#allocation16 + $0x4d8] sm:$0xff]  }
0x1e4e   :  { %6740 = vmatprep.subr.bf16.mxu1 %v8890_v7  ;;  %6783 = vmatprep.subr.bf16.mxu0 %v8892_v27  ;;  %v10135_v37 = vld [vmem:[#allocation16 + $0x418] sm:$0xff]   ;;  %v10137_v7 = vld [vmem:[#allocation16 + $0x460] sm:$0xff]  }
0x1e4f   :  { %v10138_v27 = vld [vmem:[#allocation16 + $0x4e0] sm:$0xff]  }
0x1e51   :  { %6741 = vmatpush1.bf16.msra.mxu1 %v8889_v15  ;;  %6784 = vmatpush1.bf16.msra.mxu0 %v8891_v51  ;;  %v10143_v15 = vld [vmem:[#allocation16 + $0x428] sm:$0xff]  }
0x1e52   :  { %6742 = vmatprep.subr.bf16.mxu1 %v8906_v52  ;;  %6785 = vmatprep.subr.bf16.mxu0 %v8908_v0  ;;  %v10144_v51 = vld [vmem:[#allocation16 + $0x4a8] sm:$0xff]   ;;  %v10145_v52 = vld [vmem:[#allocation16 + $0x470] sm:$0xff]  }
0x1e53   :  { %v10146_v0 = vld [vmem:[#allocation16 + $0x4f0] sm:$0xff]  }
0x1e55   :  { %6743 = vmatpush1.bf16.msra.mxu1 %v8905_v39  ;;  %6786 = vmatpush1.bf16.msra.mxu0 %v8907_v54  ;;  %v10151_v39 = vld [vmem:[#allocation16 + $0x438] sm:$0xff]  }
0x1e56   :  { %6744 = vmatprep.subr.bf16.mxu1 %v8922_v55  ;;  %6787 = vmatprep.subr.bf16.mxu0 %v8924_v40  ;;  %v10152_v54 = vld [vmem:[#allocation16 + $0x4b8] sm:$0xff]   ;;  %v10153_v55 = vld [vmem:[#allocation16 + $0x540] sm:$0xff]  }
0x1e57   :  { %v10154_v40 = vld [vmem:[#allocation16 + $0x5c0] sm:$0xff]  }
0x1e59   :  { %6745 = vmatpush1.bf16.msra.mxu1 %v8921_v57  ;;  %6788 = vmatpush1.bf16.msra.mxu0 %v8923_v5  ;;  %v5771_v57 = vrot.slane %v11649_v58, %v11347_v44 }
0x1e5a   :  { %6746 = vmatprep.subr.bf16.mxu1 %v8938_v34  ;;  %6789 = vmatprep.subr.bf16.mxu0 %v8940_v35 }
0x1e5d   :  { %6747 = vmatpush1.bf16.msra.mxu1 %v8937_v11  ;;  %6790 = vmatpush1.bf16.msra.mxu0 %v8939_v12 }
0x1e5e   :  { %6748 = vmatprep.subr.bf16.mxu1 %v8954_v56  ;;  %6791 = vmatprep.subr.bf16.mxu0 %v8956_v17 }
0x1e61   :  { %6749 = vmatpush1.bf16.msra.mxu1 %v8953_v18  ;;  %6792 = vmatpush1.bf16.msra.mxu0 %v8955_v19 }
0x1e62   :  { %9373 = vmatprep.subr.bf16.mxu1 %v10121_v2  ;;  %9395 = vmatprep.subr.bf16.mxu0 %v10122_v20 }
0x1e64   :  { %6767 = vmatmul.mubr.bf16.vlgmr.msra.gmra.mrb[124].mxu1 %v11633_v50  ;;  %6810 = vmatmul.mubr.bf16.vlgmr.msra.gmra.mrb[116].mxu0 %v11633_v50  ;;  %v10136_v50 = vld [vmem:[#allocation16 + $0x498] sm:$0xff]  }
0x1e65   :  { %9374 = vmatpush3.bf16.msra.mxu1 %v10123_v21  ;;  %9396 = vmatpush3.bf16.msra.mxu0 %v10124_v22 }
0x1e66   :  { %9375 = vmatprep.subr.bf16.mxu1 %v10125_v46  ;;  %9397 = vmatprep.subr.bf16.mxu0 %v10126_v23 }
0x1e69   :  { %9376 = vmatpush3.bf16.msra.mxu1 %v10127_v24  ;;  %9398 = vmatpush3.bf16.msra.mxu0 %v10128_v25 }
0x1e6a   :  { %9377 = vmatprep.subr.bf16.mxu1 %v10129_v26  ;;  %9399 = vmatprep.subr.bf16.mxu0 %v10130_v33 }
0x1e6d   :  { %9378 = vmatpush3.bf16.msra.mxu1 %v10131_v59  ;;  %9400 = vmatpush3.bf16.msra.mxu0 %v10132_v36 }
0x1e6e   :  { %9379 = vmatprep.subr.bf16.mxu1 %v10133_v47  ;;  %9401 = vmatprep.subr.bf16.mxu0 %v10134_v10 }
0x1e71   :  { %9380 = vmatpush3.bf16.msra.mxu1 %v10135_v37  ;;  %9402 = vmatpush3.bf16.msra.mxu0 %v10136_v50  ;;  %v10155_v50 = vld [vmem:[#allocation16 + $0x500] sm:$0xff]  }
0x1e72   :  { %9381 = vmatprep.subr.bf16.mxu1 %v10137_v7  ;;  %9403 = vmatprep.subr.bf16.mxu0 %v10138_v27  ;;  %v10156_v7 = vld [vmem:[#allocation16 + $0x580] sm:$0xff]   ;;  %v10157_v27 = vld [vmem:[#allocation16 + $0x548] sm:$0xff]  }
0x1e75   :  { %9382 = vmatpush3.bf16.msra.mxu1 %v10139_v45  ;;  %9404 = vmatpush3.bf16.msra.mxu0 %v10140_v62  ;;  %v10158_v45 = vld [vmem:[#allocation16 + $0x5c8] sm:$0xff]  }
0x1e76   :  { %9383 = vmatprep.subr.bf16.mxu1 %v10141_v9  ;;  %9405 = vmatprep.subr.bf16.mxu0 %v10142_v13  ;;  %v10159_v62 = vld [vmem:[#allocation16 + $0x508] sm:$0xff]   ;;  %v10161_v13 = vld [vmem:[#allocation16 + $0x550] sm:$0xff]  }
0x1e77   :  { %v10160_v9 = vld [vmem:[#allocation16 + $0x588] sm:$0xff]  }
0x1e79   :  { %9384 = vmatpush3.bf16.msra.mxu1 %v10143_v15  ;;  %9406 = vmatpush3.bf16.msra.mxu0 %v10144_v51  ;;  %v10162_v15 = vld [vmem:[#allocation16 + $0x5d0] sm:$0xff]  }
0x1e7a   :  { %9385 = vmatprep.subr.bf16.mxu1 %v10145_v52  ;;  %9407 = vmatprep.subr.bf16.mxu0 %v10146_v0  ;;  %v10163_v51 = vld [vmem:[#allocation16 + $0x510] sm:$0xff]   ;;  %v10165_v0 = vld [vmem:[#allocation16 + $0x558] sm:$0xff]  }
0x1e7b   :  { %v10164_v52 = vld [vmem:[#allocation16 + $0x590] sm:$0xff]  }
0x1e7d   :  { %9386 = vmatpush3.bf16.msra.mxu1 %v10147_v38  ;;  %9408 = vmatpush3.bf16.msra.mxu0 %v10148_v4  ;;  %v10166_v38 = vld [vmem:[#allocation16 + $0x5d8] sm:$0xff]  }
0x1e7e   :  { %9387 = vmatprep.subr.bf16.mxu1 %v10149_v16  ;;  %9409 = vmatprep.subr.bf16.mxu0 %v10150_v53  ;;  %v10167_v4 = vld [vmem:[#allocation16 + $0x518] sm:$0xff]   ;;  %v10169_v53 = vld [vmem:[#allocation16 + $0x560] sm:$0xff]  }
0x1e7f   :  { %v10168_v16 = vld [vmem:[#allocation16 + $0x598] sm:$0xff]  }
0x1e81   :  { %9388 = vmatpush3.bf16.msra.mxu1 %v10151_v39  ;;  %9410 = vmatpush3.bf16.msra.mxu0 %v10152_v54  ;;  %v10170_v39 = vld [vmem:[#allocation16 + $0x5e0] sm:$0xff]  }
0x1e82   :  { %9417 = vmatprep.subr.bf16.mxu1 %v10153_v55  ;;  %9439 = vmatprep.subr.bf16.mxu0 %v10154_v40  ;;  %v10171_v54 = vld [vmem:[#allocation16 + $0x520] sm:$0xff]   ;;  %v10173_v40 = vld [vmem:[#allocation16 + $0x568] sm:$0xff]  }
0x1e83   :  { %v10172_v55 = vld [vmem:[#allocation16 + $0x5a0] sm:$0xff]  }
0x1ed7   :  { %v6510_v5 = vpop.f32.mrb[112].mxu1  ;;  %v6553_v34 = vpop.f32.mrb[104].mxu0 }
0x1ed8   :  { %v6511_v35 = vadd.f32 %v6510_v5, %v5759_v30  ;;  %v6554_v28 = vadd.f32 %v6553_v34, %v5767_v60  ;;  %v6512_v42 = vpop.f32.mrb[113].mxu1  ;;  %v6555_v43 = vpop.f32.mrb[105].mxu0  ;;  %v5783_v5 = vrot.slane %v11649_v58, %v11361_v3  ;;  %v10177_v34 = vld [vmem:[#allocation16 + $0x570] sm:$0xff]  }
0x1ed9   :  { %v6513_v41 = vadd.f32 %v6512_v42, %v5763_v61  ;;  %v6556_v11 = vadd.f32 %v6555_v43, %v5771_v57  ;;  %v6514_v12 = vpop.f32.mrb[114].mxu1  ;;  %v6557_v56 = vpop.f32.mrb[106].mxu0  ;;  %v5787_v42 = vrot.slane %v11649_v58, %v11367_v6 }
0x1eda   :  { %v6515_v17 = vadd.f32 %v6514_v12, %v5759_v30  ;;  %v6558_v18 = vadd.f32 %v6557_v56, %v5767_v60  ;;  %v6516_v19 = vpop.f32.mrb[115].mxu1  ;;  %v6559_v2 = vpop.f32.mrb[107].mxu0  ;;  %v6820_v22 = vmax.f32 %v6511_v35, 0.0  ;;  %v6822_v46 = vmax.f32 %v6554_v28, 0.0  ;;  %v10174_v30 = vld [vmem:[#allocation16 + $0x5e8] sm:$0xff]   ;;  %v10178_v35 = vld [vmem:[#allocation16 + $0x5f0] sm:$0xff]  }
0x1edb   :  { %v6517_v20 = vadd.f32 %v6516_v19, %v5763_v61  ;;  %v6560_v21 = vadd.f32 %v6559_v2, %v5771_v57  ;;  %v6821_v25 = vmax.f32 %v6513_v41, 0.0  ;;  %v6823_v26 = vmax.f32 %v6556_v11, 0.0  ;;  %v10175_v60 = vld [vmem:[#allocation16 + $0x528] sm:$0xff]   ;;  %v10179_v11 = vld [vmem:[#allocation16 + $0x530] sm:$0xff]   ;;  %v10181_v2 = vld [vmem:[#allocation16 + $0x578] sm:$0xff]  }
0x1edc   :  { %v6836_v23 = vmax.f32 %v6515_v17, 0.0  ;;  %v6838_v24 = vmax.f32 %v6558_v18, 0.0  ;;  %v10176_v61 = vld [vmem:[#allocation16 + $0x5a8] sm:$0xff]   ;;  %v5775_v57 = vrot.slane %v11649_v58, %v11358_v63  ;;  %v5779_v28 = vrot.slane %v11649_v58, %v11364_v31  ;;  %v10180_v12 = vld [vmem:[#allocation16 + $0x5b0] sm:$0xff]  }
0x1edd   :  { %v6837_v33 = vmax.f32 %v6517_v20, 0.0  ;;  %v6839_v59 = vmax.f32 %v6560_v21, 0.0  ;;  %v10182_v20 = vld [vmem:[#allocation16 + $0x5f8] sm:$0xff]  }
0x1ede   :  { %v6852_v36 = vpack.c.bf16 %v6836_v23, %v6820_v22  ;;  %v6854_v47 = vpack.c.bf16 %v6838_v24, %v6822_v46 }
0x1edf   :  { %v6853_v10 = vpack.c.bf16 %v6837_v33, %v6821_v25  ;;  %v6855_v37 = vpack.c.bf16 %v6839_v59, %v6823_v26 }
0x1ee1   :  { %7933 = vmatprep.mubr.bf16.mxu1 %v6853_v10  ;;  %7974 = vmatprep.mubr.bf16.mxu0 %v6855_v37 }
0x1ee2   :  { %7934 = vmatmul.mubr.bf16.vlgmr.msra.gmra.mrb[128].mxu1 %v6852_v36  ;;  %7975 = vmatmul.mubr.bf16.vlgmr.msra.gmra.mrb[120].mxu0 %v6854_v47  ;;  %v10183_v36 = vld [vmem:[#allocation16 + $0x538] sm:$0xff]  }
0x1ee3   :  { %9418 = vmatpush3.bf16.msra.mxu1 %v10155_v50  ;;  %9440 = vmatpush3.bf16.msra.mxu0 %v10156_v7  ;;  %v10184_v47 = vld [vmem:[#allocation16 + $0x5b8] sm:$0xff]  }
0x1ee4   :  { %9419 = vmatprep.subr.bf16.mxu1 %v10157_v27  ;;  %9441 = vmatprep.subr.bf16.mxu0 %v10158_v45  ;;  %v10185_v27 = vld [vmem:[#allocation16 + $0x640] sm:$0xff]  }
0x1ee5   :  { %v10186_v45 = vld [vmem:[#allocation16 + $0x6c0] sm:$0xff]  }
0x1ee7   :  { %9420 = vmatpush3.bf16.msra.mxu1 %v10159_v62  ;;  %9442 = vmatpush3.bf16.msra.mxu0 %v10160_v9 }
0x1ee8   :  { %9421 = vmatprep.subr.bf16.mxu1 %v10161_v13  ;;  %9443 = vmatprep.subr.bf16.mxu0 %v10162_v15 }
0x1eeb   :  { %9422 = vmatpush3.bf16.msra.mxu1 %v10163_v51  ;;  %9444 = vmatpush3.bf16.msra.mxu0 %v10164_v52 }
0x1eec   :  { %9423 = vmatprep.subr.bf16.mxu1 %v10165_v0  ;;  %9445 = vmatprep.subr.bf16.mxu0 %v10166_v38 }
0x1eef   :  { %9424 = vmatpush3.bf16.msra.mxu1 %v10167_v4  ;;  %9446 = vmatpush3.bf16.msra.mxu0 %v10168_v16  ;;  %v10187_v4 = vld [vmem:[#allocation16 + $0x600] sm:$0xff]  }
0x1ef0   :  { %9425 = vmatprep.subr.bf16.mxu1 %v10169_v53  ;;  %9447 = vmatprep.subr.bf16.mxu0 %v10170_v39  ;;  %v10188_v16 = vld [vmem:[#allocation16 + $0x680] sm:$0xff]   ;;  %v10189_v53 = vld [vmem:[#allocation16 + $0x648] sm:$0xff]  }
0x1ef1   :  { %v10190_v39 = vld [vmem:[#allocation16 + $0x6c8] sm:$0xff]  }
0x1ef3   :  { %9426 = vmatpush3.bf16.msra.mxu1 %v10171_v54  ;;  %9448 = vmatpush3.bf16.msra.mxu0 %v10172_v55  ;;  %v10191_v54 = vld [vmem:[#allocation16 + $0x608] sm:$0xff]  }
0x1ef4   :  { %9427 = vmatprep.subr.bf16.mxu1 %v10173_v40  ;;  %9449 = vmatprep.subr.bf16.mxu0 %v10174_v30  ;;  %v10192_v55 = vld [vmem:[#allocation16 + $0x688] sm:$0xff]   ;;  %v10193_v40 = vld [vmem:[#allocation16 + $0x650] sm:$0xff]  }
0x1ef5   :  { %v10194_v30 = vld [vmem:[#allocation16 + $0x6d0] sm:$0xff]  }
0x1ef7   :  { %v6596_v43 = vpop.f32.mrb[116].mxu1  ;;  %v6639_v41 = vpop.f32.mrb[108].mxu0  ;;  %9428 = vmatpush3.bf16.msra.mxu1 %v10175_v60  ;;  %9450 = vmatpush3.bf16.msra.mxu0 %v10176_v61  ;;  %v10195_v60 = vld [vmem:[#allocation16 + $0x610] sm:$0xff]  }
0x1ef8   :  { %v6597_v56 = vadd.f32 %v6596_v43, %v5775_v57  ;;  %v6640_v17 = vadd.f32 %v6639_v41, %v5783_v5  ;;  %v6598_v18 = vpop.f32.mrb[117].mxu1  ;;  %v6641_v19 = vpop.f32.mrb[109].mxu0  ;;  %9429 = vmatprep.subr.bf16.mxu1 %v10177_v34  ;;  %9451 = vmatprep.subr.bf16.mxu0 %v10178_v35  ;;  %v10196_v61 = vld [vmem:[#allocation16 + $0x690] sm:$0xff]   ;;  %v10199_v34 = vld [vmem:[#allocation16 + $0x618] sm:$0xff]   ;;  %v10203_v43 = vld [vmem:[#allocation16 + $0x620] sm:$0xff]  }
0x1ef9   :  { %v6599_v21 = vadd.f32 %v6598_v18, %v5779_v28  ;;  %v6642_v22 = vadd.f32 %v6641_v19, %v5787_v42  ;;  %v6600_v46 = vpop.f32.mrb[118].mxu1  ;;  %v6643_v23 = vpop.f32.mrb[110].mxu0  ;;  %v10200_v35 = vld [vmem:[#allocation16 + $0x698] sm:$0xff]   ;;  %v10204_v41 = vld [vmem:[#allocation16 + $0x6a0] sm:$0xff]   ;;  %v10208_v18 = vld [vmem:[#allocation16 + $0x6a8] sm:$0xff]  }
0x1efa   :  { %v6601_v24 = vadd.f32 %v6600_v46, %v5775_v57  ;;  %v6644_v58 = vadd.f32 %v6643_v23, %v5783_v5  ;;  %v6602_v25 = vpop.f32.mrb[119].mxu1  ;;  %v6645_v26 = vpop.f32.mrb[111].mxu0  ;;  %v6824_v10 = vmax.f32 %v6597_v56, 0.0  ;;  %v6826_v37 = vmax.f32 %v6640_v17, 0.0  ;;  %v10197_v57 = vld [vmem:[#allocation16 + $0x658] sm:$0xff]   ;;  %v10207_v17 = vld [vmem:[#allocation16 + $0x628] sm:$0xff]  }
0x1efb   :  { %v6603_v33 = vadd.f32 %v6602_v25, %v5779_v28  ;;  %v6646_v59 = vadd.f32 %v6645_v26, %v5787_v42  ;;  %9430 = vmatpush3.bf16.msra.mxu1 %v10179_v11  ;;  %9452 = vmatpush3.bf16.msra.mxu0 %v10180_v12  ;;  %v6825_v62 = vmax.f32 %v6599_v21, 0.0  ;;  %v6827_v9 = vmax.f32 %v6642_v22, 0.0  ;;  %v10198_v5 = vld [vmem:[#allocation16 + $0x6d8] sm:$0xff]   ;;  %v10201_v28 = vld [vmem:[#allocation16 + $0x660] sm:$0xff]   ;;  %v10205_v11 = vld [vmem:[#allocation16 + $0x668] sm:$0xff]  }
0x1efc   :  { %v6840_v50 = vmax.f32 %v6601_v24, 0.0  ;;  %v6842_v7 = vmax.f32 %v6644_v58, 0.0  ;;  %9431 = vmatprep.subr.bf16.mxu1 %v10181_v2  ;;  %9453 = vmatprep.subr.bf16.mxu0 %v10182_v20  ;;  %v10202_v42 = vld [vmem:[#allocation16 + $0x6e0] sm:$0xff]   ;;  %v10206_v12 = vld [vmem:[#allocation16 + $0x6e8] sm:$0xff]   ;;  %v11667_v56 = vld [vmem:[#allocation14 + $0x18] sm:$0xff] }
0x1efd   :  { %v6841_v13 = vmax.f32 %v6603_v33, 0.0  ;;  %v6843_v15 = vmax.f32 %v6646_v59, 0.0  ;;  %v5791_v19 = vrot.slane %v11667_v56, %v11117_v32  ;;  %v5799_v2 = vrot.slane %v11667_v56, %v11145_v48  ;;  %v10209_v20 = vld [vmem:[#allocation16 + $0x670] sm:$0xff]   ;;  %v10213_v48 = vld [vmem:[#allocation16 + $0x678] sm:$0xff]  }
0x1efe   :  { %v6856_v51 = vpack.c.bf16 %v6840_v50, %v6824_v10  ;;  %v6858_v52 = vpack.c.bf16 %v6842_v7, %v6826_v37  ;;  %v10210_v21 = vld [vmem:[#allocation16 + $0x6f0] sm:$0xff]   ;;  %v5795_v22 = vrot.slane %v11667_v56, %v11113_v29  ;;  %v5803_v46 = vrot.slane %v11667_v56, %v11347_v44 }
0x1eff   :  { %v6857_v0 = vpack.c.bf16 %v6841_v13, %v6825_v62  ;;  %v6859_v38 = vpack.c.bf16 %v6843_v15, %v6827_v9  ;;  %9432 = vmatpush3.bf16.msra.mxu1 %v10183_v36  ;;  %9454 = vmatpush3.bf16.msra.mxu0 %v10184_v47  ;;  %v10211_v58 = vld [vmem:[#allocation16 + $0x630] sm:$0xff]   ;;  %v10214_v47 = vld [vmem:[#allocation16 + $0x6f8] sm:$0xff]  }
0x1f00   :  { %9461 = vmatprep.subr.bf16.mxu1 %v10185_v27  ;;  %9483 = vmatprep.subr.bf16.mxu0 %v10186_v45  ;;  %v10212_v25 = vld [vmem:[#allocation16 + $0x6b0] sm:$0xff]   ;;  %v10215_v15 = vld [vmem:[#allocation16 + $0x638] sm:$0xff]  }
0x1f01   :  { %8015 = vmatprep.mubr.bf16.mxu1 %v6857_v0  ;;  %8056 = vmatprep.mubr.bf16.mxu0 %v6859_v38 }
0x1f02   :  { %8016 = vmatmul.mubr.bf16.vlgmr.msra.gmra.mrb[132].mxu1 %v6856_v51  ;;  %8057 = vmatmul.mubr.bf16.vlgmr.msra.gmra.mrb[124].mxu0 %v6858_v52  ;;  %v10216_v51 = vld [vmem:[#allocation16 + $0x6b8] sm:$0xff]  }
0x1f03   :  { %9462 = vmatpush3.bf16.msra.mxu1 %v10187_v4  ;;  %9484 = vmatpush3.bf16.msra.mxu0 %v10188_v16  ;;  %v10217_v16 = vld [vmem:[#allocation16 + $0x740] sm:$0xff]  }
0x1f04   :  { %9463 = vmatprep.subr.bf16.mxu1 %v10189_v53  ;;  %9485 = vmatprep.subr.bf16.mxu0 %v10190_v39  ;;  %v10218_v53 = vld [vmem:[#allocation16 + $0x7c0] sm:$0xff]  }
0x1f07   :  { %9464 = vmatpush3.bf16.msra.mxu1 %v10191_v54  ;;  %9486 = vmatpush3.bf16.msra.mxu0 %v10192_v55 }
0x1f08   :  { %9465 = vmatprep.subr.bf16.mxu1 %v10193_v40  ;;  %9487 = vmatprep.subr.bf16.mxu0 %v10194_v30 }
0x1f0b   :  { %9466 = vmatpush3.bf16.msra.mxu1 %v10195_v60  ;;  %9488 = vmatpush3.bf16.msra.mxu0 %v10196_v61 }
0x1f0c   :  { %9467 = vmatprep.subr.bf16.mxu1 %v10197_v57  ;;  %9489 = vmatprep.subr.bf16.mxu0 %v10198_v5  ;;  %v10219_v5 = vld [vmem:[#allocation16 + $0x700] sm:$0xff]  }
0x1f0f   :  { %9468 = vmatpush3.bf16.msra.mxu1 %v10199_v34  ;;  %9490 = vmatpush3.bf16.msra.mxu0 %v10200_v35  ;;  %v10220_v34 = vld [vmem:[#allocation16 + $0x780] sm:$0xff]   ;;  %v10221_v35 = vld [vmem:[#allocation16 + $0x748] sm:$0xff]  }
0x1f10   :  { %9469 = vmatprep.subr.bf16.mxu1 %v10201_v28  ;;  %9491 = vmatprep.subr.bf16.mxu0 %v10202_v42  ;;  %v10222_v28 = vld [vmem:[#allocation16 + $0x7c8] sm:$0xff]  }
0x1f11   :  { %v10223_v42 = vld [vmem:[#allocation16 + $0x708] sm:$0xff]  }
0x1f13   :  { %9470 = vmatpush3.bf16.msra.mxu1 %v10203_v43  ;;  %9492 = vmatpush3.bf16.msra.mxu0 %v10204_v41  ;;  %v10224_v43 = vld [vmem:[#allocation16 + $0x788] sm:$0xff]   ;;  %v10225_v41 = vld [vmem:[#allocation16 + $0x750] sm:$0xff]  }
0x1f14   :  { %9471 = vmatprep.subr.bf16.mxu1 %v10205_v11  ;;  %9493 = vmatprep.subr.bf16.mxu0 %v10206_v12  ;;  %v10226_v11 = vld [vmem:[#allocation16 + $0x7d0] sm:$0xff]  }
0x1f15   :  { %v10227_v12 = vld [vmem:[#allocation16 + $0x710] sm:$0xff]  }
0x1f17   :  { %v6682_v23 = vpop.f32.mrb[120].mxu1  ;;  %v6725_v24 = vpop.f32.mrb[112].mxu0  ;;  %9472 = vmatpush3.bf16.msra.mxu1 %v10207_v17  ;;  %9494 = vmatpush3.bf16.msra.mxu0 %v10208_v18  ;;  %v10228_v17 = vld [vmem:[#allocation16 + $0x790] sm:$0xff]   ;;  %v10229_v18 = vld [vmem:[#allocation16 + $0x758] sm:$0xff]  }
0x1f18   :  { %v6683_v26 = vadd.f32 %v6682_v23, %v5791_v19  ;;  %v6726_v33 = vadd.f32 %v6725_v24, %v5799_v2  ;;  %v6684_v59 = vpop.f32.mrb[121].mxu1  ;;  %v6727_v36 = vpop.f32.mrb[113].mxu0  ;;  %9473 = vmatprep.subr.bf16.mxu1 %v10209_v20  ;;  %9495 = vmatprep.subr.bf16.mxu0 %v10210_v21  ;;  %v10232_v20 = vld [vmem:[#allocation16 + $0x798] sm:$0xff]   ;;  %v10233_v21 = vld [vmem:[#allocation16 + $0x760] sm:$0xff]   ;;  %v10237_v24 = vld [vmem:[#allocation16 + $0x768] sm:$0xff]  }
0x1f19   :  { %v6685_v10 = vadd.f32 %v6684_v59, %v5795_v22  ;;  %v6728_v37 = vadd.f32 %v6727_v36, %v5803_v46  ;;  %v6686_v50 = vpop.f32.mrb[122].mxu1  ;;  %v6729_v7 = vpop.f32.mrb[114].mxu0  ;;  %v10236_v23 = vld [vmem:[#allocation16 + $0x7a0] sm:$0xff]   ;;  %v5815_v59 = vrot.slane %v11667_v56, %v11361_v3  ;;  %v10241_v36 = vld [vmem:[#allocation16 + $0x770] sm:$0xff]   ;;  %v10245_v3 = vld [vmem:[#allocation16 + $0x778] sm:$0xff]  }
0x1f1a   :  { %v6687_v27 = vadd.f32 %v6686_v50, %v5791_v19  ;;  %v6730_v44 = vadd.f32 %v6729_v7, %v5799_v2  ;;  %v6688_v45 = vpop.f32.mrb[123].mxu1  ;;  %v6731_v62 = vpop.f32.mrb[115].mxu0  ;;  %v6828_v52 = vmax.f32 %v6683_v26, 0.0  ;;  %v6830_v0 = vmax.f32 %v6726_v33, 0.0  ;;  %v10230_v19 = vld [vmem:[#allocation16 + $0x7d8] sm:$0xff]   ;;  %v10240_v26 = vld [vmem:[#allocation16 + $0x7a8] sm:$0xff]  }
0x1f1b   :  { %v6689_v9 = vadd.f32 %v6688_v45, %v5795_v22  ;;  %v6732_v13 = vadd.f32 %v6731_v62, %v5803_v46  ;;  %9474 = vmatpush3.bf16.msra.mxu1 %v10211_v58  ;;  %9496 = vmatpush3.bf16.msra.mxu0 %v10212_v25  ;;  %v6829_v39 = vmax.f32 %v6685_v10, 0.0  ;;  %v6831_v54 = vmax.f32 %v6728_v37, 0.0  ;;  %v10231_v2 = vld [vmem:[#allocation16 + $0x718] sm:$0xff]   ;;  %v10234_v22 = vld [vmem:[#allocation16 + $0x7e0] sm:$0xff]   ;;  %v10238_v58 = vld [vmem:[#allocation16 + $0x7e8] sm:$0xff]  }
0x1f1c   :  { %v6844_v38 = vmax.f32 %v6687_v27, 0.0  ;;  %v6846_v4 = vmax.f32 %v6730_v44, 0.0  ;;  %9475 = vmatprep.subr.bf16.mxu1 %v10213_v48  ;;  %9497 = vmatprep.subr.bf16.mxu0 %v10214_v47  ;;  %v10235_v46 = vld [vmem:[#allocation16 + $0x720] sm:$0xff]   ;;  %v10239_v25 = vld [vmem:[#allocation16 + $0x728] sm:$0xff]   ;;  %v5807_v33 = vrot.slane %v11667_v56, %v11358_v63  ;;  %v10242_v48 = vld [vmem:[#allocation16 + $0x7f0] sm:$0xff]   ;;  %v5811_v47 = vrot.slane %v11667_v56, %v11364_v31 }
0x1f1d   :  { %v6845_v55 = vmax.f32 %v6689_v9, 0.0  ;;  %v6847_v40 = vmax.f32 %v6732_v13, 0.0  ;;  %v5819_v10 = vrot.slane %v11667_v56, %v11367_v6  ;;  %v10243_v7 = vld [vmem:[#allocation16 + $0x730] sm:$0xff]   ;;  %v10246_v9 = vld [vmem:[#allocation16 + $0x7f8] sm:$0xff]  }
0x1f1e   :  { %v6860_v30 = vpack.c.bf16 %v6844_v38, %v6828_v52  ;;  %v6862_v60 = vpack.c.bf16 %v6846_v4, %v6830_v0  ;;  %v10244_v27 = vld [vmem:[#allocation16 + $0x7b0] sm:$0xff]  }
0x1f1f   :  { %v6861_v61 = vpack.c.bf16 %v6845_v55, %v6829_v39  ;;  %v6863_v57 = vpack.c.bf16 %v6847_v40, %v6831_v54  ;;  %9476 = vmatpush3.bf16.msra.mxu1 %v10215_v15  ;;  %9498 = vmatpush3.bf16.msra.mxu0 %v10216_v51 }
0x1f20   :  { %9505 = vmatprep.subr.bf16.mxu1 %v10217_v16  ;;  %9527 = vmatprep.subr.bf16.mxu0 %v10218_v53  ;;  %v10247_v16 = vld [vmem:[#allocation16 + $0x738] sm:$0xff]  }
0x1f21   :  { %8097 = vmatprep.mubr.bf16.mxu1 %v6861_v61  ;;  %8138 = vmatprep.mubr.bf16.mxu0 %v6863_v57  ;;  %v10248_v53 = vld [vmem:[#allocation16 + $0x7b8] sm:$0xff]  }
0x1f22   :  { %8098 = vmatmul.mubr.bf16.vlgmr.msra.gmra.mrb[136].mxu1 %v6860_v30  ;;  %8139 = vmatmul.mubr.bf16.vlgmr.msra.gmra.mrb[128].mxu0 %v6862_v60 }
0x1f23   :  { %9506 = vmatpush3.bf16.msra.mxu1 %v10219_v5  ;;  %9528 = vmatpush3.bf16.msra.mxu0 %v10220_v34 }
0x1f24   :  { %9507 = vmatprep.subr.bf16.mxu1 %v10221_v35  ;;  %9529 = vmatprep.subr.bf16.mxu0 %v10222_v28 }
0x1f27   :  { %9508 = vmatpush3.bf16.msra.mxu1 %v10223_v42  ;;  %9530 = vmatpush3.bf16.msra.mxu0 %v10224_v43 }
0x1f28   :  { %9509 = vmatprep.subr.bf16.mxu1 %v10225_v41  ;;  %9531 = vmatprep.subr.bf16.mxu0 %v10226_v11  ;;  %v8957_v41 = vld [vmem:[#allocation17 + $0x1] ss:$0 sm:$0xff] }
0x1f2b   :  { %9510 = vmatpush3.bf16.msra.mxu1 %v10227_v12  ;;  %9532 = vmatpush3.bf16.msra.mxu0 %v10228_v17 }
0x1f2c   :  { %9511 = vmatprep.subr.bf16.mxu1 %v10229_v18  ;;  %9533 = vmatprep.subr.bf16.mxu0 %v10230_v19 }
0x1f2f   :  { %9512 = vmatpush3.bf16.msra.mxu1 %v10231_v2  ;;  %9534 = vmatpush3.bf16.msra.mxu0 %v10232_v20 }
0x1f30   :  { %9513 = vmatprep.subr.bf16.mxu1 %v10233_v21  ;;  %9535 = vmatprep.subr.bf16.mxu0 %v10234_v22 }
0x1f33   :  { %9514 = vmatpush3.bf16.msra.mxu1 %v10235_v46  ;;  %9536 = vmatpush3.bf16.msra.mxu0 %v10236_v23 }
0x1f34   :  { %9515 = vmatprep.subr.bf16.mxu1 %v10237_v24  ;;  %9537 = vmatprep.subr.bf16.mxu0 %v10238_v58 }
0x1f37   :  { %v6768_v37 = vpop.f32.mrb[124].mxu1  ;;  %v6811_v50 = vpop.f32.mrb[116].mxu0  ;;  %9516 = vmatpush3.bf16.msra.mxu1 %v10239_v25  ;;  %9538 = vmatpush3.bf16.msra.mxu0 %v10240_v26 }
0x1f38   :  { %v6769_v44 = vadd.f32 %v6768_v37, %v5807_v33  ;;  %v6812_v45 = vadd.f32 %v6811_v50, %v5815_v59  ;;  %v6770_v63 = vpop.f32.mrb[125].mxu1  ;;  %v6813_v62 = vpop.f32.mrb[117].mxu0  ;;  %9517 = vmatprep.subr.bf16.mxu1 %v10241_v36  ;;  %9539 = vmatprep.subr.bf16.mxu0 %v10242_v48 }
0x1f39   :  { %v6771_v13 = vadd.f32 %v6770_v63, %v5811_v47  ;;  %v6814_v15 = vadd.f32 %v6813_v62, %v5819_v10  ;;  %v6772_v31 = vpop.f32.mrb[126].mxu1  ;;  %v6815_v51 = vpop.f32.mrb[118].mxu0 }
0x1f3a   :  { %v6773_v52 = vadd.f32 %v6772_v31, %v5807_v33  ;;  %v6816_v6 = vadd.f32 %v6815_v51, %v5815_v59  ;;  %v6774_v56 = vpop.f32.mrb[127].mxu1  ;;  %v6817_v0 = vpop.f32.mrb[119].mxu0  ;;  %v6832_v39 = vmax.f32 %v6769_v44, 0.0  ;;  %v6834_v54 = vmax.f32 %v6812_v45, 0.0 }
0x1f3b   :  { %v6775_v38 = vadd.f32 %v6774_v56, %v5811_v47  ;;  %v6818_v4 = vadd.f32 %v6817_v0, %v5819_v10  ;;  %9518 = vmatpush3.bf16.msra.mxu1 %v10243_v7  ;;  %9540 = vmatpush3.bf16.msra.mxu0 %v10244_v27  ;;  %v6833_v30 = vmax.f32 %v6771_v13, 0.0  ;;  %v6835_v60 = vmax.f32 %v6814_v15, 0.0 }
0x1f3c   :  { %v6848_v55 = vmax.f32 %v6773_v52, 0.0  ;;  %v6850_v40 = vmax.f32 %v6816_v6, 0.0  ;;  %9519 = vmatprep.subr.bf16.mxu1 %v10245_v3  ;;  %9541 = vmatprep.subr.bf16.mxu0 %v10246_v9 }
0x1f3d   :  { %v6849_v61 = vmax.f32 %v6775_v38, 0.0  ;;  %v6851_v57 = vmax.f32 %v6818_v4, 0.0 }
0x1f3e   :  { %v6864_v5 = vpack.c.bf16 %v6848_v55, %v6832_v39  ;;  %v6866_v34 = vpack.c.bf16 %v6850_v40, %v6834_v54 }
0x1f3f   :  { %v6865_v35 = vpack.c.bf16 %v6849_v61, %v6833_v30  ;;  %v6867_v28 = vpack.c.bf16 %v6851_v57, %v6835_v60  ;;  %9520 = vmatpush3.bf16.msra.mxu1 %v10247_v16  ;;  %9542 = vmatpush3.bf16.msra.mxu0 %v10248_v53 }
0x1f40   :  { %9830 = vmatprep.subr.bf16.mxu1 %v10764_v1 }
0x1f41   :  { %8179 = vmatprep.mubr.bf16.mxu1 %v6865_v35  ;;  %8220 = vmatprep.mubr.bf16.mxu0 %v6867_v28 }
0x1f42   :  { %8180 = vmatmul.mubr.bf16.vlgmr.msra.gmra.mrb[140].mxu1 %v6864_v5  ;;  %8221 = vmatmul.mubr.bf16.vlgmr.msra.gmra.mrb[132].mxu0 %v6866_v34 }
0x1f43   :  { %9846 = vmatprep.mubr.msk.bf16.mxu1 %vm10765_vm0, %v10764_v1 }
0x1fb5   :  { %v9389_v42 = vpop.f32.mrb[128].mxu1  ;;  %v9411_v43 = vpop.f32.mrb[120].mxu0 }
0x1fb6   :  { %v9390_v11 = vpop.f32.mrb[129].mxu1  ;;  %v9412_v12 = vpop.f32.mrb[121].mxu0 }
0x1fb7   :  { %v9391_v17 = vadd.f32 %v9390_v11, %v9389_v42  ;;  %v9413_v18 = vadd.f32 %v9412_v12, %v9411_v43  ;;  %v9392_v19 = vpop.f32.mrb[130].mxu1  ;;  %v9414_v2 = vpop.f32.mrb[122].mxu0 }
0x1fb8   :  { %v9393_v20 = vpop.f32.mrb[131].mxu1  ;;  %v9415_v21 = vpop.f32.mrb[123].mxu0 }
0x1fb9   :  { %v7936_v22 = vadd.f32 %v9391_v17, %v8957_v41  ;;  %v9394_v46 = vadd.f32 %v9393_v20, %v9392_v19  ;;  %v9416_v23 = vadd.f32 %v9415_v21, %v9414_v2 }
0x1fbb   :  { %v7977_v24 = vadd.f32 %v9413_v18, %v7936_v22  ;;  %v7939_v58 = vadd.f32 %v9394_v46, %v8957_v41 }
0x1fbd   :  { %v7980_v25 = vadd.f32 %v9416_v23, %v7939_v58 }
0x1fd5   :  { %v9433_v26 = vpop.f32.mrb[132].mxu1  ;;  %v9455_v33 = vpop.f32.mrb[124].mxu0 }
0x1fd6   :  { %v9434_v59 = vpop.f32.mrb[133].mxu1  ;;  %v9456_v36 = vpop.f32.mrb[125].mxu0 }
0x1fd7   :  { %v9435_v48 = vadd.f32 %v9434_v59, %v9433_v26  ;;  %v9457_v47 = vadd.f32 %v9456_v36, %v9455_v33  ;;  %v9436_v10 = vpop.f32.mrb[134].mxu1  ;;  %v9458_v37 = vpop.f32.mrb[126].mxu0  ;;  %v8277_v36 = vld [vmem:[#allocation5] sm:$0x3] }
0x1fd8   :  { %v9437_v50 = vpop.f32.mrb[135].mxu1  ;;  %v9459_v7 = vpop.f32.mrb[127].mxu0 }
0x1fd9   :  { %v8018_v27 = vadd.f32 %v9435_v48, %v7977_v24  ;;  %v9438_v44 = vadd.f32 %v9437_v50, %v9436_v10  ;;  %v9460_v45 = vadd.f32 %v9459_v7, %v9458_v37  ;;  %v8281_v48 = vrot.slane %v8277_v36, %v11117_v32  ;;  %v10250_v10 = vld [vmem:[#allocation25 + $0x8] sm:$0xff]   ;;  %v10251_v37 = vld [vmem:[#allocation25 + $0x10] sm:$0xff]   ;;  %v10256_v7 = vld [vmem:[#allocation25 + $0x38] sm:$0xff]  }
0x1fda   :  { %v10254_v32 = vld [vmem:[#allocation25 + $0x28] sm:$0xff]   ;;  %v10255_v50 = vld [vmem:[#allocation25 + $0x30] sm:$0xff]  }
0x1fdb   :  { %v8059_v63 = vadd.f32 %v9457_v47, %v8018_v27  ;;  %v8021_v62 = vadd.f32 %v9438_v44, %v7980_v25  ;;  %v10249_v47 = vld [vmem:[#allocation25] sm:$0xff]  }
0x1fdc   :  { %9831 = vmatpush3.bf16.msra.mxu1 %v10249_v47 }
0x1fdd   :  { %v8062_v3 = vadd.f32 %v9460_v45, %v8021_v62  ;;  %9832 = vmatprep.subr.bf16.mxu1 %v10764_v1 }
0x1fe0   :  { %9833 = vmatpush3.bf16.msra.mxu1 %v10250_v10 }
0x1fe1   :  { %9834 = vmatprep.subr.bf16.mxu1 %v10764_v1 }
0x1fe4   :  { %9835 = vmatpush3.bf16.msra.mxu1 %v10251_v37 }
0x1fe5   :  { %9836 = vmatprep.subr.bf16.mxu1 %v10764_v1 }
0x1ff5   :  { %v9477_v9 = vpop.f32.mrb[136].mxu1  ;;  %v9499_v13 = vpop.f32.mrb[128].mxu0 }
0x1ff6   :  { %v9478_v15 = vpop.f32.mrb[137].mxu1  ;;  %v9500_v31 = vpop.f32.mrb[129].mxu0 }
0x1ff7   :  { %v9479_v51 = vadd.f32 %v9478_v15, %v9477_v9  ;;  %v9501_v52 = vadd.f32 %v9500_v31, %v9499_v13  ;;  %v9480_v6 = vpop.f32.mrb[138].mxu1  ;;  %v9502_v56 = vpop.f32.mrb[130].mxu0  ;;  %v9086_v13 = vld [vmem:[#allocation22 + $0x1] ss:$0 sm:$0xff] }
0x1ff8   :  { %v9481_v0 = vpop.f32.mrb[139].mxu1  ;;  %v9503_v38 = vpop.f32.mrb[131].mxu0 }
0x1ff9   :  { %v8100_v4 = vadd.f32 %v9479_v51, %v8059_v63  ;;  %v9482_v16 = vadd.f32 %v9481_v0, %v9480_v6  ;;  %v9504_v53 = vadd.f32 %v9503_v38, %v9502_v56  ;;  %v9087_v51 = vld [vmem:[#allocation23 + $0x1] ss:$0 sm:$0xff] }
0x1ffb   :  { %v8141_v39 = vadd.f32 %v9501_v52, %v8100_v4  ;;  %v8103_v54 = vadd.f32 %v9482_v16, %v8062_v3 }
0x1ffd   :  { %v8144_v55 = vadd.f32 %v9504_v53, %v8103_v54 }
0x2015   :  { %v9521_v40 = vpop.f32.mrb[140].mxu1  ;;  %v9543_v30 = vpop.f32.mrb[132].mxu0 }
0x2016   :  { %v9522_v60 = vpop.f32.mrb[141].mxu1  ;;  %v9544_v61 = vpop.f32.mrb[133].mxu0 }
0x2017   :  { %v9523_v57 = vadd.f32 %v9522_v60, %v9521_v40  ;;  %v9545_v5 = vadd.f32 %v9544_v61, %v9543_v30  ;;  %v9524_v34 = vpop.f32.mrb[142].mxu1  ;;  %v9546_v35 = vpop.f32.mrb[134].mxu0 }
0x2018   :  { %v9525_v28 = vpop.f32.mrb[143].mxu1  ;;  %v9547_v42 = vpop.f32.mrb[135].mxu0 }
0x2019   :  { %v8182_v43 = vadd.f32 %v9523_v57, %v8141_v39  ;;  %v9526_v41 = vadd.f32 %v9525_v28, %v9524_v34  ;;  %v9548_v11 = vadd.f32 %v9547_v42, %v9546_v35 }
0x201b   :  { %v8223_v12 = vadd.f32 %v9545_v5, %v8182_v43  ;;  %v8185_v17 = vadd.f32 %v9526_v41, %v8144_v55 }
0x201d   :  { %v8226_v18 = vadd.f32 %v9548_v11, %v8185_v17  ;;  %v8229_v19 = vadd.f32 %v8223_v12, %v11627_v14 }
0x201f   :  { %v8235_v2 = vmul.f32 %v11306_v8, %v8229_v19  ;;  %v8230_v20 = vadd.f32 %v8226_v18, %v11629_v49  ;;  %v8288_v49 = vrot.slane %v8277_v36, %v11113_v29  ;;  %v10253_v29 = vld [vmem:[#allocation25 + $0x20] sm:$0xff]  }
0x2020   :  { %v9088_v18 = vld [vmem:[#allocation26] ss:$0 sm:$0xff] }
0x2021   :  { %8237 = vadd.xlane.f32.xlu0 %v8235_v2  ;;  %v8236_v21 = vmul.f32 %v11306_v8, %v8230_v20 }
0x2023   :  { %8239 = vadd.xlane.f32.xlu1 %v8236_v21 }
0x20ae   :  { %v8238_v22 = vpop.xlane.xlu0 %8237 }
0x20af   :  { %v8241_v46 = vmul.f32 0.03125, %v8238_v22 }
0x20b0   :  { %v8240_v23 = vpop.xlane.xlu1 %8239 }
0x20b1   :  { %v8243_v24 = vsub.f32 %v8229_v19, %v8241_v46  ;;  %v8242_v58 = vmul.f32 0.03125, %v8240_v23 }
0x20b3   :  { %v8244_v25 = vsub.f32 %v8230_v20, %v8242_v58  ;;  %v8245_v26 = vmul.f32 %v11306_v8, %v8243_v24 }
0x20b5   :  { %v8247_v33 = vmul.f32 %v8245_v26, %v8245_v26  ;;  %v8246_v59 = vmul.f32 %v11306_v8, %v8244_v25  ;;  %v10252_v8 = vld [vmem:[#allocation25 + $0x18] sm:$0xff]  }
0x20b6   :  { %9837 = vmatpush3.bf16.msra.mxu1 %v10252_v8 }
0x20b7   :  { %8249 = vadd.xlane.f32.xlu0 %v8247_v33  ;;  %v8248_v14 = vmul.f32 %v8246_v59, %v8246_v59  ;;  %9838 = vmatprep.subr.bf16.mxu1 %v10764_v1 }
0x20b9   :  { %8251 = vadd.xlane.f32.xlu1 %v8248_v14 }
0x20ba   :  { %9839 = vmatpush3.bf16.msra.mxu1 %v10253_v29 }
0x20bb   :  { %9840 = vmatprep.subr.bf16.mxu1 %v10764_v1 }
0x20be   :  { %9841 = vmatpush3.bf16.msra.mxu1 %v10254_v32 }
0x20bf   :  { %9842 = vmatprep.subr.bf16.mxu1 %v10764_v1 }
0x20c2   :  { %9843 = vmatpush3.bf16.msra.mxu1 %v10255_v50 }
0x20c3   :  { %9844 = vmatprep.subr.bf16.mxu1 %v10764_v1 }
0x20c6   :  { %9845 = vmatpush3.bf16.msra.mxu1 %v10256_v7 }
0x20ca   :  { %8290 = vbcast.lane.b32.xlu1 %v8288_v49, 256 }
0x20cd   :  { %8283 = vbcast.lane.b32.xlu0 %v8281_v48, 256 }
0x2144   :  { %v8250_v27 = vpop.xlane.xlu0 %8249 }
0x2145   :  { %v8253_v44 = vmul.f32 0.03125, %v8250_v27 }
0x2146   :  { %v8252_v45 = vpop.xlane.xlu1 %8251 }
0x2147   :  { %v8255_v63 = vadd.f32 1e-05, %v8253_v44  ;;  %v8254_v62 = vmul.f32 0.03125, %v8252_v45 }
0x2148   :  { %v8284_v56 = vpop.permute.xlu0 %8283 }
0x2149   :  { %10334 = vrsqrt.f32 %v8255_v63  ;;  %v8256_v3 = vadd.f32 1e-05, %v8254_v62 }
0x214a   :  { %v8291_v38 = vpop.permute.xlu1 %8290 }
0x214b   :  { %10336 = vrsqrt.f32 %v8256_v3 }
0x2153   :  { %v10335_v9 = vpop.eup %10334 }
0x2154   :  { %v8259_v15 = vmul.f32 %v10335_v9, %v8245_v26 }
0x2155   :  { %v10337_v31 = vpop.eup %10336 }
0x2156   :  { %v8267_v52 = vmul.f32 %v9086_v13, %v8259_v15  ;;  %v8260_v6 = vmul.f32 %v10337_v31, %v8246_v59 }
0x2158   :  { %v8275_v0 = vadd.f32 %v9087_v51, %v8267_v52  ;;  %v8268_v1 = vmul.f32 %v9086_v13, %v8260_v6 }
0x215a   :  { %v8292_v4 = vmul.f32 %v8284_v56, %v8275_v0  ;;  %v8276_v16 = vadd.f32 %v9087_v51, %v8268_v1 }
0x215c   :  { %v8294_v53 = vrot.slane %v8292_v4, 4  ;;  %v8293_v39 = vmul.f32 %v8291_v38, %v8276_v16 }
0x215e   :  { %v8295_v54 = vadd.f32 %v8294_v53, %v8292_v4  ;;  %v8300_v55 = vrot.slane %v8293_v39, 4 }
0x2160   :  { %v8296_v40 = vrot.slane %v8295_v54, 2  ;;  %v8301_v30 = vadd.f32 %v8300_v55, %v8293_v39 }
0x2162   :  { %v8297_v60 = vadd.f32 %v8296_v40, %v8295_v54  ;;  %v8302_v61 = vrot.slane %v8301_v30, 2 }
0x2164   :  { %v8298_v57 = vrot.slane %v8297_v60, 1  ;;  %v8303_v5 = vadd.f32 %v8302_v61, %v8301_v30 }
0x2166   :  { %v8299_v34 = vadd.f32 %v8298_v57, %v8297_v60  ;;  %v8304_v35 = vrot.slane %v8303_v5, 1 }
0x2168   :  { %v8306_v28 = vpack.c.bf16 %v8299_v34, %v8299_v34  ;;  %v8305_v42 = vadd.f32 %v8304_v35, %v8303_v5 }
0x216a   :  { %v8307_v43 = vpack.c.bf16 %v8305_v42, %v8305_v42  ;;  %v8333_v41 = vunpack.c.l.b16 %v8306_v28 }
0x216c   :  { %v8334_v11 = vunpack.c.l.b16 %v8307_v43 }
0x216e   :  { %v8336_v12 = vsel %vm8335_vm7, %v8334_v11, %v8333_v41 }
0x216f   :  { %v8337_v17 = vpack.c.b16 %v8336_v12, %v8336_v12 }
0x2171   :  { %9847 = vmatmul.mubr.bf16.vlgmr.msra.gmra.mrb[144].mxu1 %v8337_v17 }
0x2244   :  { %v8421_v19 = vpop.f32.mrb[144].mxu1 }
0x2245   :  { %v8422_v2 = vadd.f32 %v9088_v18, %v8421_v19  ;;  %v9848_v20 = vpop.f32.mrb[145].mxu1 }
0x2246   :  { %v8424_v21 = vpop.f32.mrb[146].mxu1 }
0x2247   :  { %v9849_v22 = vpop.f32.mrb[147].mxu1  ;;  %v8427_v46 = vmul.f32 %v8422_v2, %v8422_v2 }
0x2249   :  { %v8429_v23 = vsel %vm8428_vm8, %v8427_v46, 0.0 }
0x224a   :  { %8430 = vadd.xlane.f32.xlu1 %v8429_v23 }
0x22d7   :  { %v8431_v24 = vpop.xlane.xlu1 %8430 }
0x22d8   :  { %10338 = vrsqrt.f32 %v8431_v24  ;;  %vm8434_vm9 = vcmp.eq.f32.partialorder %v8431_v24, inf  ;;  %v8437_v26 = vand.u32 2147483648, %v8431_v24  ;;  %vm8436_vm10 = vcmp.eq.f32.partialorder %v8431_v24, 0.0 }
0x22e2   :  { %v10339_v58 = vpop.eup %10338 }
0x22e3   :  { %v8433_v25 = vmul.f32 %v10339_v58, %v8431_v24 }
0x22e5   :  { %v8435_v33 = vsel %vm8434_vm9, %v8431_v24, %v8433_v25 }
0x22e6   :  { %v8438_v59 = vsel %vm8436_vm10, %v8437_v26, %v8435_v33 }
0x22e7   :  { %v8439_v14 = vmax.f32 %v8438_v59, 1e-12 }
0x22e9   :  { %10340 = vrcp.f32 %v8439_v14 }
0x22f3   :  { %v10341_v36 = vpop.eup %10340 }
0x22f4   :  { %v8441_v49 = vmul.f32 %v10341_v36, %v8422_v2 }
0x22f6   :  { %8442 = vst [vmem:[#allocation28] sm:$0x3] %v8441_v49 }
0x22f7   :  { %10706 = shalt.err (!%p10703_p6)
}
0x22f8   :  { %s10707_s7 = scalar_lea.hbm %s11731_s16, 32 }
0x22f9   :  { %p10708_p7 = scmp.ne.s32.totalorder %s11731_s16, %s10707_s7  ;;  %p10711_p8 = scmp.lt.u32.totalorder %s10707_s7, %s11731_s16 }
0x22fb   :  { %p10713_p9 = pnand %p10711_p8, %p10708_p7 }
0x22fd   :  { %10716 = shalt.err (!%p10713_p9)
}
0x22fe   :  { %8452 = dma.vmem_to_hbm [thread:$0]  %s8450_s20, 32, %s11731_s16, [#allocation4]  }
0x22ff   :  { %10735 = dma.done.wait [#allocation4], 32  }
0x2300   :  { %10736 = vsyncadd [#allocation4], 4294967264 }
0x2301   :  { %8456 = vsyncpa [#allocation3], 1 }
0x2302   :  { %8457 = vsyncpa [#allocation6], 1 }
0x2303   :  { %8458 = vsyncpa [#allocation9], 1 }
0x2304   :  { %8459 = vsyncpa [#allocation12], 1 }
0x2305   :  { %8460 = vsyncpa [#allocation15], 1 }
0x2306   :  { %8461 = vsyncpa [#allocation18], 1 }
0x2307   :  { %8462 = vsyncpa [#allocation21], 1 }
0x2308   :  { %8463 = vsyncpa [#allocation24], 1 }
0x2309   :  { %8464 = vsyncpa [#allocation27], 1 }
0x230a   :  { %8465 = vsyncpa [#allocation4], 1 }

</bundles_post_ra>
